<compile_context>
chip_gen: v7x
topology: tpu7x:2x2x1
jax: 0.10.0
libtpu: 0.0.40
codegen_flags: <defaults>
</compile_context>

<pallas_src>
import functools

import jax
import jax.numpy as jnp
from jax.experimental import pallas as pl
from jax.experimental.pallas import tpu as pltpu


N_OUT = 10000          # fc5 output features (100 * 100)
TN = 2560              # lane tile width for the final layer (multiple of 128)
N_PAD = pl.cdiv(N_OUT, TN) * TN   # 10240 = 80 * 128 -> 4 grid steps
HEAD_DIMS = [(5, 64), (64, 128), (128, 256), (256, 512)]


# ---------------------------------------------------------------------------
# Fused kernel: recompute the cheap 4-layer head, then one (512, TN) slice of
# the final layer.  Grid is 1-D over the padded output width (parallel axis).
# ---------------------------------------------------------------------------
def fused_mlp_kernel(x_ref, w1_ref, b1_ref, w2_ref, b2_ref,
                     w3_ref, b3_ref, w4_ref, b4_ref,
                     w5_ref, b5_ref, o_ref):
    h = x_ref[...]
    h = jnp.maximum(
        jnp.dot(h, w1_ref[...], preferred_element_type=jnp.float32) + b1_ref[...], 0.0)
    h = jnp.maximum(
        jnp.dot(h, w2_ref[...], preferred_element_type=jnp.float32) + b2_ref[...], 0.0)
    h = jnp.maximum(
        jnp.dot(h, w3_ref[...], preferred_element_type=jnp.float32) + b3_ref[...], 0.0)
    h = jnp.maximum(
        jnp.dot(h, w4_ref[...], preferred_element_type=jnp.float32) + b4_ref[...], 0.0)
    o = jnp.dot(h, w5_ref[...], preferred_element_type=jnp.float32) + b5_ref[...]
    o_ref[...] = jnp.maximum(o, 0.0).astype(o_ref.dtype)


def _full_spec(shape):
    # Full-array block that is resident across all grid steps (block index fixed).
    return pl.BlockSpec(shape, lambda j: (0,) * len(shape))


def my_model_forward(x, prepared_params):
    """x: (B, 5) f32 -> (B, 100, 100) f32, matching MyModel.forward.

    `prepared_params` must come from prepare_params(): w5/b5 are already padded
    to N_PAD columns so no per-call jnp.pad copy of the 21 MB weight happens.
    """
    (w1, b1), (w2, b2), (w3, b3), (w4, b4), (w5p, b5p) = prepared_params
    B = x.shape[0]

    head_bytes = sum(w.size * 4 + b.size * 4
                     for (w, b) in ((w1, b1), (w2, b2), (w3, b3), (w4, b4)))
    head_flops = 2 * B * sum(din * dout for din, dout in HEAD_DIMS)
    n_steps = N_PAD // TN
    cost = pl.CostEstimate(
        flops=2 * B * 512 * N_PAD + n_steps * head_flops,
        transcendentals=0,
        bytes_accessed=(w5p.size * 4 + b5p.size * 4          # streamed weight
                        + B * N_PAD * 4                       # output
                        + head_bytes + x.size * 4),
    )

    out = pl.pallas_call(
        fused_mlp_kernel,
        out_shape=jax.ShapeDtypeStruct((B, N_PAD), jnp.float32),
        grid_spec=pltpu.PrefetchScalarGridSpec(
            num_scalar_prefetch=0,
            grid=(n_steps,),
            in_specs=[
                _full_spec(x.shape),
                _full_spec(w1.shape), _full_spec(b1.shape),
                _full_spec(w2.shape), _full_spec(b2.shape),
                _full_spec(w3.shape), _full_spec(b3.shape),
                _full_spec(w4.shape), _full_spec(b4.shape),
                pl.BlockSpec((512, TN), lambda j: (0, j)),
                pl.BlockSpec((1, TN), lambda j: (0, j)),
            ],
            out_specs=pl.BlockSpec((B, TN), lambda j: (0, j)),
        ),
        compiler_params=pltpu.CompilerParams(
            dimension_semantics=("parallel",)),
        cost_estimate=cost,
    )(x, w1, b1, w2, b2, w3, b3, w4, b4, w5p, b5p)

    # TODO(synk): if a downstream consumer can accept the padded (B, N_PAD)
    # layout, fold this slice into it to skip one small HBM round-trip.
    return out[:, :N_OUT].reshape(-1, 100, 100)


def init_params(key):
    """Deterministic parameter init; weights stored as (in, out), like W.T of PyTorch."""
    dims = HEAD_DIMS + [(512, N_OUT)]
    params = []
    for i, (din, dout) in enumerate(dims):
        kw, kb = jax.random.split(jax.random.fold_in(key, i))
        bound = 1.0 / jnp.sqrt(din)
        w = jax.random.uniform(kw, (din, dout), jnp.float32, -bound, bound)
        b = jax.random.uniform(kb, (1, dout), jnp.float32, -bound, bound)
        params.append((w, b))
    return params


def prepare_params(params):
    """One-time prep: pad the final layer to a 128-multiple of lanes.

    Zero-padded columns produce ReLU(0 + 0) = 0 and are sliced off after the
    kernel, so semantics are unchanged.  Doing this once here (instead of every
    forward call) avoids re-materializing a ~21 MB copy of w5 per call.
    """
    (w1, b1), (w2, b2), (w3, b3), (w4, b4), (w5, b5) = params
    pad = N_PAD - w5.shape[1]
    w5p = jnp.pad(w5, ((0, 0), (0, pad)))
    b5p = jnp.pad(b5, ((0, 0), (0, pad)))
    return [(w1, b1), (w2, b2), (w3, b3), (w4, b4), (w5p, b5p)]


def reference_forward(x, params):
    h = x
    for w, b in params:
        h = jnp.maximum(h @ w + b, 0.0)
    return h.reshape(-1, 100, 100)


if __name__ == "__main__":
    key = jax.random.PRNGKey(0)
    params = init_params(key)
    prepared = jax.block_until_ready(prepare_params(params))

    B = 8  # meets the f32 (8, 128) sublane minimum
    x = jax.random.normal(jax.random.fold_in(key, 100), (B, 5), jnp.float32)

    fwd = jax.jit(functools.partial(my_model_forward, prepared_params=prepared))
    y = fwd(x)
    jax.block_until_ready(y)

    y_ref = reference_forward(x, params)
    assert y.shape == (B, 100, 100), y.shape
    assert jnp.allclose(y, y_ref, atol=1e-4, rtol=1e-4)
    print("KERNEL_OK")
</pallas_src>

<mosaic_0001>
module attributes {stable_mosaic.version = 11 : i64} {
  func.func @fused_mlp_kernel(%arg0: i32, %arg1: memref<8x5xf32, #tpu.memory_space<vmem>>, %arg2: memref<5x64xf32, #tpu.memory_space<vmem>>, %arg3: memref<1x64xf32, #tpu.memory_space<vmem>>, %arg4: memref<64x128xf32, #tpu.memory_space<vmem>>, %arg5: memref<1x128xf32, #tpu.memory_space<vmem>>, %arg6: memref<128x256xf32, #tpu.memory_space<vmem>>, %arg7: memref<1x256xf32, #tpu.memory_space<vmem>>, %arg8: memref<256x512xf32, #tpu.memory_space<vmem>>, %arg9: memref<1x512xf32, #tpu.memory_space<vmem>>, %arg10: memref<512x2560xf32, #tpu.memory_space<vmem>>, %arg11: memref<1x2560xf32, #tpu.memory_space<vmem>>, %arg12: memref<8x2560xf32, #tpu.memory_space<vmem>>) attributes {dimension_semantics = [#tpu.dimension_semantics<parallel>], iteration_bounds = array<i64: 4>, scalar_prefetch = 0 : i64, scratch_operands = 0 : i64, tpu.core_type = #tpu.core_type<tc>, window_params = [{pipeline_mode = #tpu.pipeline_mode<synchronous>, transform_indices = @transform_0, window_bounds = array<i64: 8, 5>}, {pipeline_mode = #tpu.pipeline_mode<synchronous>, transform_indices = @transform_1, window_bounds = array<i64: 5, 64>}, {pipeline_mode = #tpu.pipeline_mode<synchronous>, transform_indices = @transform_2, window_bounds = array<i64: 1, 64>}, {pipeline_mode = #tpu.pipeline_mode<synchronous>, transform_indices = @transform_3, window_bounds = array<i64: 64, 128>}, {pipeline_mode = #tpu.pipeline_mode<synchronous>, transform_indices = @transform_4, window_bounds = array<i64: 1, 128>}, {pipeline_mode = #tpu.pipeline_mode<synchronous>, transform_indices = @transform_5, window_bounds = array<i64: 128, 256>}, {pipeline_mode = #tpu.pipeline_mode<synchronous>, transform_indices = @transform_6, window_bounds = array<i64: 1, 256>}, {pipeline_mode = #tpu.pipeline_mode<synchronous>, transform_indices = @transform_7, window_bounds = array<i64: 256, 512>}, {pipeline_mode = #tpu.pipeline_mode<synchronous>, transform_indices = @transform_8, window_bounds = array<i64: 1, 512>}, {transform_indices = @transform_9, window_bounds = array<i64: 512, 2560>}, {transform_indices = @transform_10, window_bounds = array<i64: 1, 2560>}, {transform_indices = @transform_11, window_bounds = array<i64: 8, 2560>}]} {
    %c0 = arith.constant 0 : index
    %c0_0 = arith.constant 0 : index
    %0 = vector.load %arg1[%c0, %c0_0] : memref<8x5xf32, #tpu.memory_space<vmem>>, vector<8x5xf32>
    %c0_1 = arith.constant 0 : index
    %c0_2 = arith.constant 0 : index
    %1 = vector.load %arg2[%c0_1, %c0_2] : memref<5x64xf32, #tpu.memory_space<vmem>>, vector<5x64xf32>
    %cst = arith.constant dense<0.000000e+00> : vector<8x64xf32>
    %2 = tpu.matmul %0, %1, %cst {dimension_numbers = #tpu.dot_dimension_numbers<[1], [0], [0], [1], [0, 0, 1, 1], [], []>} : vector<8x5xf32>, vector<5x64xf32>, vector<8x64xf32> -> vector<8x64xf32>
    %c0_3 = arith.constant 0 : index
    %c0_4 = arith.constant 0 : index
    %3 = vector.load %arg3[%c0_3, %c0_4] : memref<1x64xf32, #tpu.memory_space<vmem>>, vector<1x64xf32>
    %4 = vector.broadcast %3 : vector<1x64xf32> to vector<8x64xf32>
    %5 = arith.addf %2, %4 : vector<8x64xf32>
    %cst_5 = arith.constant 0.000000e+00 : f32
    %6 = vector.broadcast %cst_5 : f32 to vector<8x64xf32>
    %7 = arith.maximumf %5, %6 : vector<8x64xf32>
    %c0_6 = arith.constant 0 : index
    %c0_7 = arith.constant 0 : index
    %8 = vector.load %arg4[%c0_6, %c0_7] : memref<64x128xf32, #tpu.memory_space<vmem>>, vector<64x128xf32>
    %cst_8 = arith.constant dense<0.000000e+00> : vector<8x128xf32>
    %9 = tpu.matmul %7, %8, %cst_8 {dimension_numbers = #tpu.dot_dimension_numbers<[1], [0], [0], [1], [0, 0, 1, 1], [], []>} : vector<8x64xf32>, vector<64x128xf32>, vector<8x128xf32> -> vector<8x128xf32>
    %c0_9 = arith.constant 0 : index
    %c0_10 = arith.constant 0 : index
    %10 = vector.load %arg5[%c0_9, %c0_10] : memref<1x128xf32, #tpu.memory_space<vmem>>, vector<1x128xf32>
    %11 = vector.broadcast %10 : vector<1x128xf32> to vector<8x128xf32>
    %12 = arith.addf %9, %11 : vector<8x128xf32>
    %cst_11 = arith.constant 0.000000e+00 : f32
    %13 = vector.broadcast %cst_11 : f32 to vector<8x128xf32>
    %14 = arith.maximumf %12, %13 : vector<8x128xf32>
    %c0_12 = arith.constant 0 : index
    %c0_13 = arith.constant 0 : index
    %15 = vector.load %arg6[%c0_12, %c0_13] : memref<128x256xf32, #tpu.memory_space<vmem>>, vector<128x256xf32>
    %cst_14 = arith.constant dense<0.000000e+00> : vector<8x256xf32>
    %16 = tpu.matmul %14, %15, %cst_14 {dimension_numbers = #tpu.dot_dimension_numbers<[1], [0], [0], [1], [0, 0, 1, 1], [], []>} : vector<8x128xf32>, vector<128x256xf32>, vector<8x256xf32> -> vector<8x256xf32>
    %c0_15 = arith.constant 0 : index
    %c0_16 = arith.constant 0 : index
    %17 = vector.load %arg7[%c0_15, %c0_16] : memref<1x256xf32, #tpu.memory_space<vmem>>, vector<1x256xf32>
    %18 = vector.broadcast %17 : vector<1x256xf32> to vector<8x256xf32>
    %19 = arith.addf %16, %18 : vector<8x256xf32>
    %cst_17 = arith.constant 0.000000e+00 : f32
    %20 = vector.broadcast %cst_17 : f32 to vector<8x256xf32>
    %21 = arith.maximumf %19, %20 : vector<8x256xf32>
    %c0_18 = arith.constant 0 : index
    %c0_19 = arith.constant 0 : index
    %22 = vector.load %arg8[%c0_18, %c0_19] : memref<256x512xf32, #tpu.memory_space<vmem>>, vector<256x512xf32>
    %cst_20 = arith.constant dense<0.000000e+00> : vector<8x512xf32>
    %23 = tpu.matmul %21, %22, %cst_20 {dimension_numbers = #tpu.dot_dimension_numbers<[1], [0], [0], [1], [0, 0, 1, 1], [], []>} : vector<8x256xf32>, vector<256x512xf32>, vector<8x512xf32> -> vector<8x512xf32>
    %c0_21 = arith.constant 0 : index
    %c0_22 = arith.constant 0 : index
    %24 = vector.load %arg9[%c0_21, %c0_22] : memref<1x512xf32, #tpu.memory_space<vmem>>, vector<1x512xf32>
    %25 = vector.broadcast %24 : vector<1x512xf32> to vector<8x512xf32>
    %26 = arith.addf %23, %25 : vector<8x512xf32>
    %cst_23 = arith.constant 0.000000e+00 : f32
    %27 = vector.broadcast %cst_23 : f32 to vector<8x512xf32>
    %28 = arith.maximumf %26, %27 : vector<8x512xf32>
    %c0_24 = arith.constant 0 : index
    %c0_25 = arith.constant 0 : index
    %29 = vector.load %arg10[%c0_24, %c0_25] : memref<512x2560xf32, #tpu.memory_space<vmem>>, vector<512x2560xf32>
    %cst_26 = arith.constant dense<0.000000e+00> : vector<8x2560xf32>
    %30 = tpu.matmul %28, %29, %cst_26 {dimension_numbers = #tpu.dot_dimension_numbers<[1], [0], [0], [1], [0, 0, 1, 1], [], []>} : vector<8x512xf32>, vector<512x2560xf32>, vector<8x2560xf32> -> vector<8x2560xf32>
    %c0_27 = arith.constant 0 : index
    %c0_28 = arith.constant 0 : index
    %31 = vector.load %arg11[%c0_27, %c0_28] : memref<1x2560xf32, #tpu.memory_space<vmem>>, vector<1x2560xf32>
    %32 = vector.broadcast %31 : vector<1x2560xf32> to vector<8x2560xf32>
    %33 = arith.addf %30, %32 : vector<8x2560xf32>
    %cst_29 = arith.constant 0.000000e+00 : f32
    %34 = vector.broadcast %cst_29 : f32 to vector<8x2560xf32>
    %35 = arith.maximumf %33, %34 : vector<8x2560xf32>
    %c0_30 = arith.constant 0 : index
    %c0_31 = arith.constant 0 : index
    %36 = vector.load %arg12[%c0_30, %c0_31] : memref<8x2560xf32, #tpu.memory_space<vmem>>, vector<8x2560xf32>
    tpu.vector_store %arg12[%c0_30, %c0_31], %35 {strides = array<i32>} : memref<8x2560xf32, #tpu.memory_space<vmem>>, vector<8x2560xf32>,
    return
  }
  func.func @transform_0(%arg0: i32) -> (i32, i32) {
    %c0_i32 = arith.constant 0 : i32
    %c0_i32_0 = arith.constant 0 : i32
    %c0_i32_1 = arith.constant 0 : i32
    return %c0_i32, %c0_i32_0 : i32, i32
  }
  func.func @transform_1(%arg0: i32) -> (i32, i32) {
    %c0_i32 = arith.constant 0 : i32
    %c0_i32_0 = arith.constant 0 : i32
    %c0_i32_1 = arith.constant 0 : i32
    return %c0_i32, %c0_i32_0 : i32, i32
  }
  func.func @transform_2(%arg0: i32) -> (i32, i32) {
    %c0_i32 = arith.constant 0 : i32
    %c0_i32_0 = arith.constant 0 : i32
    %c0_i32_1 = arith.constant 0 : i32
    return %c0_i32, %c0_i32_0 : i32, i32
  }
  func.func @transform_3(%arg0: i32) -> (i32, i32) {
    %c0_i32 = arith.constant 0 : i32
    %c0_i32_0 = arith.constant 0 : i32
    %c0_i32_1 = arith.constant 0 : i32
    return %c0_i32, %c0_i32_0 : i32, i32
  }
  func.func @transform_4(%arg0: i32) -> (i32, i32) {
    %c0_i32 = arith.constant 0 : i32
    %c0_i32_0 = arith.constant 0 : i32
    %c0_i32_1 = arith.constant 0 : i32
    return %c0_i32, %c0_i32_0 : i32, i32
  }
  func.func @transform_5(%arg0: i32) -> (i32, i32) {
    %c0_i32 = arith.constant 0 : i32
    %c0_i32_0 = arith.constant 0 : i32
    %c0_i32_1 = arith.constant 0 : i32
    return %c0_i32, %c0_i32_0 : i32, i32
  }
  func.func @transform_6(%arg0: i32) -> (i32, i32) {
    %c0_i32 = arith.constant 0 : i32
    %c0_i32_0 = arith.constant 0 : i32
    %c0_i32_1 = arith.constant 0 : i32
    return %c0_i32, %c0_i32_0 : i32, i32
  }
  func.func @transform_7(%arg0: i32) -> (i32, i32) {
    %c0_i32 = arith.constant 0 : i32
    %c0_i32_0 = arith.constant 0 : i32
    %c0_i32_1 = arith.constant 0 : i32
    return %c0_i32, %c0_i32_0 : i32, i32
  }
  func.func @transform_8(%arg0: i32) -> (i32, i32) {
    %c0_i32 = arith.constant 0 : i32
    %c0_i32_0 = arith.constant 0 : i32
    %c0_i32_1 = arith.constant 0 : i32
    return %c0_i32, %c0_i32_0 : i32, i32
  }
  func.func @transform_9(%arg0: i32) -> (i32, i32) {
    %c0_i32 = arith.constant 0 : i32
    %c0_i32_0 = arith.constant 0 : i32
    return %c0_i32, %arg0 : i32, i32
  }
  func.func @transform_10(%arg0: i32) -> (i32, i32) {
    %c0_i32 = arith.constant 0 : i32
    %c0_i32_0 = arith.constant 0 : i32
    return %c0_i32, %arg0 : i32, i32
  }
  func.func @transform_11(%arg0: i32) -> (i32, i32) {
    %c0_i32 = arith.constant 0 : i32
    %c0_i32_0 = arith.constant 0 : i32
    return %c0_i32, %arg0 : i32, i32
  }
}

</mosaic_0001>

<bundles_post_ra>
// kernel: my_model_forward.1
= control target key start
LH: loop header
LB: loop body
LE: loop exit
PB: predicated region body
PF: predicated region fallthrough
CT: control target
= control target key end

     0   :  { %s8165_s0 = inlined_call_operand.hbm [shape: f32[8,5], index: 0, kind: input, shape index: {}]   ;;  %s8166_s1 = inlined_call_operand.hbm [shape: f32[5,64], index: 1, kind: input, shape index: {}]   ;;  %s8167_s2 = inlined_call_operand.hbm [shape: f32[1,64], index: 2, kind: input, shape index: {}]   ;;  %s8168_s3 = inlined_call_operand.hbm [shape: f32[64,128], index: 3, kind: input, shape index: {}]   ;;  %s8169_s4 = inlined_call_operand.hbm [shape: f32[1,128], index: 4, kind: input, shape index: {}]   ;;  %s8170_s5 = inlined_call_operand.hbm [shape: f32[128,256], index: 5, kind: input, shape index: {}]   ;;  %s8171_s6 = inlined_call_operand.hbm [shape: f32[1,256], index: 6, kind: input, shape index: {}]   ;;  %s8172_s7 = inlined_call_operand.hbm [shape: f32[256,512], index: 7, kind: input, shape index: {}]   ;;  %s8173_s8 = inlined_call_operand.hbm [shape: f32[1,512], index: 8, kind: input, shape index: {}]   ;;  %s8174_s9 = inlined_call_operand.hbm [shape: f32[512,10240], index: 9, kind: input, shape index: {}]   ;;  %s8175_s10 = inlined_call_operand.hbm [shape: f32[1,10240], index: 10, kind: input, shape index: {}]   ;;  %s8176_s11 = inlined_call_operand.vmem [shape: f32[8,10240], index: 11, kind: output, shape index: {}]  }
   0x1   :  { %8188 = sst [smem:[#allocation27_spill]] %s8166_s1 }
   0x2   :  { %8189 = sst [smem:[#allocation28_spill]] %s8168_s3 }
   0x3   :  { %8190 = sst [smem:[#allocation29_spill]] %s8170_s5 }
   0x4   :  { %8191 = sst [smem:[#allocation30_spill]] %s8172_s7 }
   0x5   :  { %8192 = sst [smem:[#allocation31_spill]] %s8174_s9 }
   0x6   :  { %8193 = sst [smem:[#allocation32_spill]] %s8176_s11 }
   0x7   :  { %16 = vsyncpa [#allocation3], 0 }
   0x8   :  { %17 = vsyncpa [#allocation5], 0 }
   0x9   :  { %18 = vsyncpa [#allocation8], 0 }
   0xa   :  { %19 = vsyncpa [#allocation11], 0 }
   0xb   :  { %20 = vsyncpa [#allocation14], 0 }
   0xc   :  { %21 = vsyncpa [#allocation17], 0 }
   0xd   :  { %23 = vsyncpa [#allocation17 + $0x1], 0  ;;  %s6341_s17 = smov 0   ;;  %s6343_s18 = smov 0  }
   0xe   :  { %s6345_s19 = smov 0   ;;  %s6347_s20 = smov 0  }
   0xf LB: > { %s6258_s21 = smov [#allocation4]   ;;  %s6362_s23 = sadd.s32 4294967295, %s6256_s20   ;;  %s6256_s20 = sphi %s6347_s20, %s8226_s20   ;;  %s6252_s19 = sphi %s6345_s19, %s8230_s19   ;;  %s6248_s18 = sphi %s6343_s18, %s8229_s18   ;;  %s6244_s17 = sphi %s6341_s17, %s8228_s17  }
  0x10   : > { %s325_s22 = sshll.u32 %s6258_s21, 4  ;;  %p4178_p0 = scmp.ge.s32.totalorder %s6256_s20, 1  ;;  %s326_s22 = int_to_ptr.vmem [resolvable:$true] %s325_s22 }
  0x11   : > { %p8177_p1 = scmp.eq.s32.totalorder %s6362_s23, 0  ;;  %p301_p2 = scmp.lt.s32.totalorder %s6256_s20, 5 }
  0x12   : > { %s6259_s25 = smov [#allocation7]   ;;  %s6260_s28 = smov [#allocation10]  }
  0x13   : > { %p6367_p3 = pnand %p4178_p0, %p301_p2  ;;  %s346_s26 = sshll.u32 %s6259_s25, 4  ;;  %s6373_s26 = int_to_ptr.vmem [resolvable:$true] %s346_s26 }
  0x14   : > { %s370_s29 = sshll.u32 %s6260_s28, 4  ;;  %s8196_s1 = sld [smem:[#allocation27_spill]]  ;;  %s6381_s29 = int_to_ptr.vmem [resolvable:$true] %s370_s29 }
  0x15   : > { %s8194_s24 = scalar_select %p6367_p3, 1, 0 }
  0x16   : > { %p5782_p4 = pneg %p6367_p3 }
  0x18   : > { %p6377_p5 = pnand %p5782_p4, %p8177_p1 }
  0x1a   : > { %s8195_s27 = scalar_select %p6377_p5, 1, 0 }
  0x1b   : > { %s5890_s13 = scalar_lea.hbm %s8196_s1, 128  ;;  %p6391_p7 = pneg %p6377_p5 }
  0x1c   : > { %p5891_p6 = scmp.ne.s32.totalorder %s8196_s1, %s5890_s13  ;;  %p5897_p10 = scmp.lt.u32.totalorder %s5890_s13, %s8196_s1 }
  0x1e   : > { %p5893_p8 = pnand %p6391_p7, %p5891_p6 }
  0x20   : > { %p5894_p9 = pneg %p5893_p8 }
  0x22   : > { %p5899_p11 = pnand %p5897_p10, %p5894_p9 }
  0x24   : > { %5902 = shalt.err (!%p5899_p11)
}
  0x25   : > { %s5903_s28 = scalar_lea.vmem %s326_s22, 128  ;;  %p5911_p2 = scmp.lt.s32.totalorder %s326_s22, %s326_s22 }
  0x26   : > { %p5904_p12 = scmp.ne.s32.totalorder %s326_s22, %s5903_s28  ;;  %p5912_p4 = scmp.lt.s32.totalorder %s5903_s28, %s5903_s28 }
  0x28   : > { %p5906_p13 = pnand %p5904_p12, %p6391_p7  ;;  %p5913_p1 = por %p5912_p4, %p5911_p2 }
  0x2a   : > { %p5907_p0 = pneg %p5906_p13 }
  0x2c   : > { %p5914_p3 = pnand %p5913_p1, %p5907_p0 }
  0x2e   : > { %5917 = shalt.err (!%p5914_p3)
}
  0x2f   : > { %5788 = dma.hbm_to_vmem [thread:$0]  (!%p6377_p5), %s8196_s1, 128, %s326_s22, [#allocation5]  }
  0x30   : > { %s8198_s3 = sld [smem:[#allocation28_spill]] }
  0x36   : > { %s5918_s15 = scalar_lea.hbm %s8198_s3, 1024 }
  0x37   : > { %p5919_p6 = scmp.ne.s32.totalorder %s8198_s3, %s5918_s15  ;;  %p5925_p1 = scmp.lt.u32.totalorder %s5918_s15, %s8198_s3 }
  0x39   : > { %p5921_p8 = pnand %p5919_p6, %p6391_p7 }
  0x3b   : > { %p5922_p9 = pneg %p5921_p8 }
  0x3d   : > { %p5927_p3 = pnand %p5925_p1, %p5922_p9 }
  0x3f   : > { %5930 = shalt.err (!%p5927_p3)
}
  0x40   : > { %s5931_s22 = scalar_lea.vmem %s6373_s26, 1024  ;;  %p5939_p13 = scmp.lt.s32.totalorder %s6373_s26, %s6373_s26 }
  0x41   : > { %p5932_p10 = scmp.ne.s32.totalorder %s6373_s26, %s5931_s22  ;;  %p5940_p0 = scmp.lt.s32.totalorder %s5931_s22, %s5931_s22 }
  0x43   : > { %p5934_p11 = pnand %p5932_p10, %p6391_p7  ;;  %p5941_p2 = por %p5940_p0, %p5939_p13 }
  0x45   : > { %p5935_p12 = pneg %p5934_p11 }
  0x47   : > { %p5942_p4 = pnand %p5941_p2, %p5935_p12 }
  0x49   : > { %5945 = shalt.err (!%p5942_p4)
}
  0x4a   : > { %s6261_s30 = smov 128   ;;  %s6262_s11 = smov 8  }
  0x4b   : > { %5794 = dma.hbm_to_vmem [thread:$0]  (!%p6377_p5), %s8198_s3, 1024, %s6373_s26, [#allocation8], %s6261_s30, %s6261_s30, %s6262_s11  }
  0x4c   : > { %s8199_s5 = sld [smem:[#allocation29_spill]] }
  0x52   : > { %s5946_s21 = scalar_lea.hbm %s8199_s5, 4096 }
  0x53   : > { %p5947_p6 = scmp.ne.s32.totalorder %s8199_s5, %s5946_s21  ;;  %p5953_p1 = scmp.lt.u32.totalorder %s5946_s21, %s8199_s5 }
  0x55   : > { %p5949_p8 = pnand %p5947_p6, %p6391_p7 }
  0x57   : > { %p5950_p9 = pneg %p5949_p8 }
  0x59   : > { %p5955_p3 = pnand %p5953_p1, %p5950_p9 }
  0x5b   : > { %5958 = shalt.err (!%p5955_p3)
}
  0x5c   : > { %s5959_s26 = scalar_lea.vmem %s6381_s29, 4096  ;;  %p5967_p13 = scmp.lt.s32.totalorder %s6381_s29, %s6381_s29 }
  0x5d   : > { %p5960_p10 = scmp.ne.s32.totalorder %s6381_s29, %s5959_s26  ;;  %p5968_p0 = scmp.lt.s32.totalorder %s5959_s26, %s5959_s26 }
  0x5f   : > { %p5962_p11 = pnand %p5960_p10, %p6391_p7  ;;  %p5969_p2 = por %p5968_p0, %p5967_p13 }
  0x61   : > { %p5963_p12 = pneg %p5962_p11 }
  0x63   : > { %p5970_p4 = pnand %p5969_p2, %p5963_p12 }
  0x65   : > { %5973 = shalt.err (!%p5970_p4)
}
  0x66   : > { %s6263_s30 = smov 256   ;;  %s6264_s1 = smov 16  }
  0x67   : > { %5800 = dma.hbm_to_vmem [thread:$0]  (!%p6377_p5), %s8199_s5, 4096, %s6381_s29, [#allocation11], %s6263_s30, %s6263_s30, %s6264_s1  }
  0x68   : > { %s6265_s13 = smov [#allocation13]   ;;  %s8200_s7 = sld [smem:[#allocation30_spill]] }
  0x69   : > { %s394_s14 = sshll.u32 %s6265_s13, 4  ;;  %s395_s14 = int_to_ptr.vmem [resolvable:$true] %s394_s14 }
  0x6e   : > { %s5974_s25 = scalar_lea.hbm %s8200_s7, 16384 }
  0x6f   : > { %p5975_p6 = scmp.ne.s32.totalorder %s8200_s7, %s5974_s25  ;;  %p5981_p1 = scmp.lt.u32.totalorder %s5974_s25, %s8200_s7 }
  0x71   : > { %p5977_p8 = pnand %p5975_p6, %p6391_p7 }
  0x73   : > { %p5978_p9 = pneg %p5977_p8 }
  0x75   : > { %p5983_p3 = pnand %p5981_p1, %p5978_p9 }
  0x77   : > { %5986 = shalt.err (!%p5983_p3)
}
  0x78   : > { %s5987_s29 = scalar_lea.vmem %s395_s14, 16384  ;;  %p5995_p13 = scmp.lt.s32.totalorder %s395_s14, %s395_s14 }
  0x79   : > { %p5988_p10 = scmp.ne.s32.totalorder %s395_s14, %s5987_s29  ;;  %p5996_p0 = scmp.lt.s32.totalorder %s5987_s29, %s5987_s29 }
  0x7b   : > { %p5990_p11 = pnand %p5988_p10, %p6391_p7  ;;  %p5997_p2 = por %p5996_p0, %p5995_p13 }
  0x7d   : > { %p5991_p12 = pneg %p5990_p11 }
  0x7f   : > { %p5998_p4 = pnand %p5997_p2, %p5991_p12 }
  0x81   : > { %6001 = shalt.err (!%p5998_p4)
}
  0x82   : > { %s6266_s30 = smov 512   ;;  %s6267_s3 = smov 32  }
  0x83   : > { %5806 = dma.hbm_to_vmem [thread:$0]  (!%p6377_p5), %s8200_s7, 16384, %s395_s14, [#allocation14], %s6266_s30, %s6266_s30, %s6267_s3  }
  0x84   : > { %s6472_s12 = sadd.s32 1, %s6256_s20   ;;  %s225_s13 = sadd.s32 1, %s6252_s19 }
  0x85   : > { %8201 = sst [smem:[#allocation25_spill]] %s6472_s12  ;;  %s222_s15 = ssub.s32 %s6256_s20, %s6472_s12 }
  0x86   : > { %p232_p6 = scmp.ne.s32.totalorder %s6252_s19, %s6248_s18  ;;  %p223_p8 = scmp.eq.s32.totalorder %s222_s15, 0 }
  0x87   : > { %p233_p9 = scmp.eq.s32.totalorder %s6256_s20, 0  ;;  %p238_p1 = scmp.ne.s32.totalorder %s6248_s18, %s6244_s17 }
  0x88   : > { %p5826_p3 = scmp.lt.s32.totalorder %s6256_s20, 4  ;;  %p8203_p11 = scmp.eq.s32.totalorder %s6362_s23, 0 }
  0x89   : > { %s6484_s21 = scalar_select %p223_p8, %s6252_s19, %s225_s13  }
  0x8a   : > { %p234_p10 = por %p233_p9, %p232_p6  ;;  %p6488_p12 = por %p8203_p11, %p238_p1 }
  0x8b   : > { %8202 = sst [smem:[#allocation26_spill]] %s6484_s21  ;;  %s419_s28 = sand.u32 1, %s6256_s20  }
  0x8c   : > { %s8204_s25 = scalar_select %p6488_p12, 1, 0 }
  0x8d   : > { %s8179_s14 = sand.u32 1, %s6252_s19   ;;  %s4209_s26 = smul.u32 2560, %s6256_s20 }
  0x8e   : > { %s5738_s22 = smul.u32 10240, %s8179_s14  ;;  %p6497_p13 = pnand %p5826_p3, %p234_p10 }
  0x8f   : > { %s8206_s9 = sld [smem:[#allocation31_spill]]  ;;  %s6508_s13 = scalar_lea.sflag [#allocation17], %s419_s28 }
  0x90   : > { %s8205_s29 = scalar_select %p6497_p13, 1, 0 }
  0x91   : > { %s423_s1 = scalar_lea.vmem [#allocation16], %s5738_s22  ;;  %p8185_p2 = pneg %p6497_p13 }
  0x92   : > { %s430_s11 = sshll.u32 %s423_s1, 4  ;;  %s6506_s11 = int_to_ptr.vmem [resolvable:$true] %s430_s11 }
  0x95   : > { %s6504_s3 = scalar_lea.hbm %s8206_s9, %s4209_s26  ;;  %s6007_s17 = scalar_lea.hbm %s8206_s9, 655360 }
  0x96   : > { %s6002_s15 = scalar_lea.hbm %s6504_s3, 163840  ;;  %p6008_p8 = scmp.lt.u32.totalorder %s6504_s3, %s8206_s9 }
  0x97   : > { %p6003_p0 = scmp.ne.s32.totalorder %s6504_s3, %s6002_s15  ;;  %p6009_p9 = scmp.lt.u32.totalorder %s6007_s17, %s6002_s15 }
  0x98   : > { %p6011_p3 = scmp.lt.u32.totalorder %s6002_s15, %s6504_s3 }
  0x99   : > { %p6005_p4 = pnand %p8185_p2, %p6003_p0  ;;  %p6010_p1 = por %p6009_p9, %p6008_p8 }
  0x9b   : > { %p6006_p6 = pneg %p6005_p4  ;;  %p6012_p10 = por %p6011_p3, %p6010_p1 }
  0x9d   : > { %p6013_p11 = pnand %p6012_p10, %p6006_p6 }
  0x9f   : > { %6016 = shalt.err (!%p6013_p11)
}
  0xa0   : > { %s6017_s28 = scalar_lea.vmem %s6506_s11, 163840  ;;  %s6268_s22 = smov [#allocation16]  }
  0xa1   : > { %p6018_p0 = scmp.ne.s32.totalorder %s6506_s11, %s6017_s28  ;;  %s6022_s1 = sshll.u32 %s6268_s22, 4  ;;  %s6023_s1 = int_to_ptr.vmem [resolvable:$false] %s6022_s1 }
  0xa2   : > { %s6024_s5 = scalar_lea.vmem %s6023_s1, 327680  ;;  %p6025_p5 = scmp.lt.s32.totalorder %s6506_s11, %s6023_s1 }
  0xa3   : > { %p6020_p4 = pnand %p6018_p0, %p8185_p2  ;;  %p6026_p8 = scmp.lt.s32.totalorder %s6024_s5, %s6017_s28 }
  0xa5   : > { %p6021_p12 = pneg %p6020_p4  ;;  %p6027_p9 = por %p6026_p8, %p6025_p5 }
  0xa7   : > { %p6028_p1 = pnand %p6027_p9, %p6021_p12 }
  0xa9   : > { %6031 = shalt.err (!%p6028_p1)
}
  0xaa   : > { %s6269_s14 = smov 10240   ;;  %s6270_s15 = smov 2560  }
  0xab   : > { %s6271_s26 = smov 160   ;;  %s6272_s30 = smov [#allocation2]  }
  0xac   : > { %5813 = dma.hbm_to_vmem [thread:$0]  (!%p6497_p13), %s6504_s3, 163840, %s6506_s11, %s6508_s13, %s6269_s14, %s6270_s15, %s6271_s26  }
  0xad   : > { %s314_s17 = sshll.u32 %s6272_s30, 4  ;;  %s6273_s22 = smov [#allocation6]   ;;  %s315_s17 = int_to_ptr.vmem [resolvable:$true] %s314_s17 }
  0xae   : > { %s336_s7 = sshll.u32 %s6273_s22, 4  ;;  %s6032_s5 = scalar_lea.hbm %s8165_s0, 128  ;;  %s6536_s7 = int_to_ptr.vmem [resolvable:$true] %s336_s7 }
  0xaf   : > { %p6033_p5 = scmp.ne.s32.totalorder %s8165_s0, %s6032_s5  ;;  %p6039_p3 = scmp.lt.u32.totalorder %s6032_s5, %s8165_s0 }
  0xb1   : > { %p6035_p12 = pnand %p6033_p5, %p6391_p7 }
  0xb3   : > { %p6036_p6 = pneg %p6035_p12 }
  0xb5   : > { %p6041_p10 = pnand %p6039_p3, %p6036_p6 }
  0xb7   : > { %6044 = shalt.err (!%p6041_p10)
}
  0xb8   : > { %s6045_s11 = scalar_lea.vmem %s315_s17, 128  ;;  %p6053_p8 = scmp.lt.s32.totalorder %s315_s17, %s315_s17 }
  0xb9   : > { %p6046_p11 = scmp.ne.s32.totalorder %s315_s17, %s6045_s11  ;;  %p6054_p9 = scmp.lt.s32.totalorder %s6045_s11, %s6045_s11 }
  0xbb   : > { %p6048_p0 = pnand %p6046_p11, %p6391_p7  ;;  %p6055_p1 = por %p6054_p9, %p6053_p8 }
  0xbd   : > { %p6049_p4 = pneg %p6048_p0 }
  0xbf   : > { %p6056_p2 = pnand %p6055_p1, %p6049_p4 }
  0xc1   : > { %6059 = shalt.err (!%p6056_p2)
}
  0xc2   : > { %p8207_p5 = scmp.ne.s32.totalorder %s8195_s27, 0  ;;  %s6060_s15 = scalar_lea.hbm %s8167_s2, 16 }
  0xc3   : > { %p6061_p12 = scmp.ne.s32.totalorder %s8167_s2, %s6060_s15  ;;  %p6067_p2 = scmp.lt.u32.totalorder %s6060_s15, %s8167_s2 }
  0xc4   : > { %5785 = dma.hbm_to_vmem [thread:$0]  (!%p8207_p5), %s8165_s0, 128, %s315_s17, [#allocation3]  }
  0xc5   : > { %p6063_p6 = pnand %p6061_p12, %p6391_p7 }
  0xc7   : > { %p6064_p3 = pneg %p6063_p6 }
  0xc9   : > { %p6069_p10 = pnand %p6067_p2, %p6064_p3 }
  0xcb   : > { %6072 = shalt.err (!%p6069_p10)
}
  0xcc   : > { %s6073_s17 = scalar_lea.vmem %s6536_s7, 16  ;;  %s6080_s1 = scalar_lea.vmem %s6536_s7, 32 }
  0xcd   : > { %p6074_p11 = scmp.ne.s32.totalorder %s6536_s7, %s6073_s17  ;;  %p6081_p8 = scmp.lt.s32.totalorder %s6536_s7, %s6536_s7 }
  0xce   : > { %p6082_p9 = scmp.lt.s32.totalorder %s6080_s1, %s6073_s17 }
  0xcf   : > { %p6076_p0 = pnand %p6074_p11, %p6391_p7 }
  0xd0   : > { %p6083_p1 = por %p6082_p9, %p6081_p8 }
  0xd1   : > { %p6077_p4 = pneg %p6076_p0 }
  0xd3   : > { %p6084_p12 = pnand %p6083_p1, %p6077_p4 }
  0xd5   : > { %6087 = shalt.err (!%p6084_p12)
}
  0xd6   : > { %5791 = dma.hbm_to_vmem [thread:$0]  (!%p8207_p5), %s8167_s2, 16, %s6536_s7, [#allocation5]  }
  0xd7   : > { %s6274_s11 = smov [#allocation9]   ;;  %s6275_s21 = smov [#allocation12]  }
  0xd8   : > { %s360_s9 = sshll.u32 %s6274_s11, 4  ;;  %s384_s12 = sshll.u32 %s6275_s21, 4  ;;  %s361_s9 = int_to_ptr.vmem [resolvable:$true] %s360_s9  ;;  %s6580_s12 = int_to_ptr.vmem [resolvable:$true] %s384_s12 }
  0xd9   : > { %s6088_s26 = scalar_lea.hbm %s8169_s4, 16 }
  0xda   : > { %p6089_p6 = scmp.ne.s32.totalorder %s8169_s4, %s6088_s26  ;;  %p6095_p10 = scmp.lt.u32.totalorder %s6088_s26, %s8169_s4 }
  0xdc   : > { %p6091_p3 = pnand %p6089_p6, %p6391_p7 }
  0xde   : > { %p6092_p2 = pneg %p6091_p3 }
  0xe0   : > { %p6097_p11 = pnand %p6095_p10, %p6092_p2 }
  0xe2   : > { %6100 = shalt.err (!%p6097_p11)
}
  0xe3   : > { %s6101_s17 = scalar_lea.vmem %s361_s9, 16  ;;  %s6108_s1 = scalar_lea.vmem %s361_s9, 32 }
  0xe4   : > { %p6102_p0 = scmp.ne.s32.totalorder %s361_s9, %s6101_s17  ;;  %p6109_p9 = scmp.lt.s32.totalorder %s361_s9, %s361_s9 }
  0xe5   : > { %p6110_p1 = scmp.lt.s32.totalorder %s6108_s1, %s6101_s17 }
  0xe6   : > { %p6104_p4 = pnand %p6102_p0, %p6391_p7 }
  0xe7   : > { %p6111_p12 = por %p6110_p1, %p6109_p9 }
  0xe8   : > { %p6105_p8 = pneg %p6104_p4 }
  0xea   : > { %p6112_p13 = pnand %p6111_p12, %p6105_p8 }
  0xec   : > { %6115 = shalt.err (!%p6112_p13)
}
  0xed   : > { %5797 = dma.hbm_to_vmem [thread:$0]  (!%p8207_p5), %s8169_s4, 16, %s361_s9, [#allocation8]  }
  0xee   : > { %s6116_s14 = scalar_lea.hbm %s8171_s6, 32 }
  0xef   : > { %p6117_p6 = scmp.ne.s32.totalorder %s8171_s6, %s6116_s14  ;;  %p6123_p13 = scmp.lt.u32.totalorder %s6116_s14, %s8171_s6 }
  0xf1   : > { %p6119_p3 = pnand %p6117_p6, %p6391_p7 }
  0xf3   : > { %p6120_p2 = pneg %p6119_p3 }
  0xf5   : > { %p6125_p10 = pnand %p6123_p13, %p6120_p2 }
  0xf7   : > { %6128 = shalt.err (!%p6125_p10)
}
  0xf8   : > { %s6129_s9 = scalar_lea.vmem %s6580_s12, 32  ;;  %p6137_p8 = scmp.lt.s32.totalorder %s6580_s12, %s6580_s12 }
  0xf9   : > { %p6130_p11 = scmp.ne.s32.totalorder %s6580_s12, %s6129_s9  ;;  %p6138_p9 = scmp.lt.s32.totalorder %s6129_s9, %s6129_s9 }
  0xfb   : > { %p6132_p0 = pnand %p6130_p11, %p6391_p7  ;;  %p6139_p1 = por %p6138_p9, %p6137_p8 }
  0xfd   : > { %p6133_p4 = pneg %p6132_p0 }
  0xff   : > { %p6140_p12 = pnand %p6139_p1, %p6133_p4 }
 0x101   : > { %6143 = shalt.err (!%p6140_p12)
}
 0x102   : > { %5803 = dma.hbm_to_vmem [thread:$0]  (!%p8207_p5), %s8171_s6, 32, %s6580_s12, [#allocation11]  }
 0x103   : > { %s8208_s17 = sand.u32 1, %s6252_s19   ;;  %s6276_s5 = smov [#allocation15]  }
 0x104   : > { %s5739_s1 = smul.u32 20, %s8208_s17  ;;  %s408_s3 = sshll.u32 %s6276_s5, 4  ;;  %s409_s3 = int_to_ptr.vmem [resolvable:$true] %s408_s3 }
 0x105   : > { %s4210_s11 = smul.u32 320, %s6256_s20  ;;  %s6144_s15 = scalar_lea.hbm %s8173_s8, 64 }
 0x106   : > { %p6145_p6 = scmp.ne.s32.totalorder %s8173_s8, %s6144_s15  ;;  %p6151_p13 = scmp.lt.u32.totalorder %s6144_s15, %s8173_s8 }
 0x108   : > { %p6147_p3 = pnand %p6145_p6, %p6391_p7 }
 0x10a   : > { %p6148_p2 = pneg %p6147_p3 }
 0x10c   : > { %p6153_p10 = pnand %p6151_p13, %p6148_p2 }
 0x10e   : > { %6156 = shalt.err (!%p6153_p10)
}
 0x10f   : > { %s6157_s12 = scalar_lea.vmem %s409_s3, 64  ;;  %p6165_p8 = scmp.lt.s32.totalorder %s409_s3, %s409_s3 }
 0x110   : > { %p6158_p11 = scmp.ne.s32.totalorder %s409_s3, %s6157_s12  ;;  %p6166_p9 = scmp.lt.s32.totalorder %s6157_s12, %s6157_s12 }
 0x112   : > { %p6160_p0 = pnand %p6158_p11, %p6391_p7  ;;  %p6167_p1 = por %p6166_p9, %p6165_p8 }
 0x114   : > { %p6161_p4 = pneg %p6160_p0 }
 0x116   : > { %p6168_p12 = pnand %p6167_p1, %p6161_p4 }
 0x118   : > { %6171 = shalt.err (!%p6168_p12)
}
 0x119   : > { %5809 = dma.hbm_to_vmem [thread:$0]  (!%p8207_p5), %s8173_s8, 64, %s409_s3, [#allocation14]  }
 0x11a   : > { %s6647_s5 = scalar_lea.hbm %s8175_s10, %s4210_s11  ;;  %s444_s16 = scalar_lea.vmem [#allocation18], %s5739_s1 }
 0x11b   : > { %s452_s21 = sshll.u32 %s444_s16, 4  ;;  %s6172_s14 = scalar_lea.hbm %s6647_s5, 320  ;;  %s453_s21 = int_to_ptr.vmem [resolvable:$true] %s452_s21 }
 0x11c   : > { %p6173_p7 = scmp.ne.s32.totalorder %s6647_s5, %s6172_s14  ;;  %p8209_p6 = scmp.ne.s32.totalorder %s8205_s29, 0 }
 0x11d   : > { %s6177_s15 = scalar_lea.hbm %s8175_s10, 1280  ;;  %p6178_p5 = scmp.lt.u32.totalorder %s6647_s5, %s8175_s10 }
 0x11e   : > { %p8210_p3 = pneg %p8209_p6  ;;  %p6179_p10 = scmp.lt.u32.totalorder %s6177_s15, %s6172_s14 }
 0x11f   : > { %p6181_p0 = scmp.lt.u32.totalorder %s6172_s14, %s6647_s5 }
 0x120   : > { %p6175_p2 = pnand %p6173_p7, %p8210_p3  ;;  %p6180_p11 = por %p6179_p10, %p6178_p5 }
 0x122   : > { %p6176_p13 = pneg %p6175_p2  ;;  %p6182_p4 = por %p6181_p0, %p6180_p11 }
 0x124   : > { %p6183_p8 = pnand %p6182_p4, %p6176_p13 }
 0x126   : > { %6186 = shalt.err (!%p6183_p8)
}
 0x127   : > { %s6187_s1 = scalar_lea.vmem %s453_s21, 320  ;;  %p8211_p1 = pmov %p8210_p3 }
 0x128   : > { %p6188_p9 = scmp.ne.s32.totalorder %s453_s21, %s6187_s1  ;;  %s6277_s30 = smov [#allocation18]  }
 0x129   : > { %s6192_s22 = sshll.u32 %s6277_s30, 4  ;;  %s6193_s22 = int_to_ptr.vmem [resolvable:$false] %s6192_s22 }
 0x12a   : > { %p6190_p12 = pnand %p6188_p9, %p8211_p1  ;;  %s6194_s9 = scalar_lea.vmem %s6193_s22, 640 }
 0x12b   : > { %p6195_p3 = scmp.lt.s32.totalorder %s453_s21, %s6193_s22  ;;  %p6196_p2 = scmp.lt.s32.totalorder %s6194_s9, %s6187_s1 }
 0x12c   : > { %p6191_p7 = pneg %p6190_p12 }
 0x12d   : > { %p6197_p5 = por %p6196_p2, %p6195_p3 }
 0x12f   : > { %p6198_p10 = pnand %p6197_p5, %p6191_p7 }
 0x131   : > { %6201 = shalt.err (!%p6198_p10)
}
 0x132   : > { %5816 = dma.hbm_to_vmem [thread:$0]  (!%p8209_p6), %s6647_s5, 320, %s453_s21, %s6508_s13  }
 0x133   : > { %p8212_p13 = scmp.ne.s32.totalorder %s8194_s24, 0 }
 0x134   : > { %p8213_p11 = scmp.eq.s32.totalorder (!%p8212_p13), %s6362_s23, 0 }
 0x135   : > { %461 = sbr.rel (%p8212_p13) target bundleno = 2001 (0x7d1), region = 64 }
 0x13c   : > { %6219 = dma.done.wait (%p8213_p11), [#allocation3], 128   ;;  %p8214_p0 = pmov %p8213_p11 }
 0x13e   : > { %6221 = vsyncadd (%p8214_p0), [#allocation3], 4294967168  ;;  %p8215_p4 = pmov %p8214_p0 }
 0x13f   : > { %p8216_p8 = pmov %p8214_p0 }
 0x140   : > { %6223 = dma.done.wait (%p8215_p4), [#allocation5], 144  }
 0x141   : > { %6225 = vsyncadd (%p8216_p8), [#allocation5], 4294967152  ;;  %p8217_p9 = pmov %p8214_p0 }
 0x142   : > { %p8218_p6 = pmov %p8214_p0 }
 0x143   : > { %6227 = dma.done.wait (%p8217_p9), [#allocation8], 1040  }
 0x144   : > { %6229 = vsyncadd (%p8218_p6), [#allocation8], 4294966256  ;;  %p8219_p1 = pmov %p8214_p0 }
 0x145   : > { %p8220_p12 = pmov %p8214_p0 }
 0x146   : > { %6231 = dma.done.wait (%p8219_p1), [#allocation11], 4128  }
 0x147   : > { %6233 = vsyncadd (%p8220_p12), [#allocation11], 4294963168  ;;  %p8221_p7 = pmov %p8214_p0 }
 0x148   : > { %p8222_p3 = pmov %p8214_p0 }
 0x149   : > { %6235 = dma.done.wait (%p8221_p7), [#allocation14], 16448  }
 0x14a   : > { %6237 = vsyncadd (%p8222_p3), [#allocation14], 4294950848  ;;  %s499_s24 = sand.u32 1, %s6362_s23   ;;  %s501_s29 = sand.u32 1, %s6248_s18  }
 0x14b   : > { %s5740_s13 = smul.u32 10240, %s501_s29  ;;  %s500_s12 = scalar_lea.sflag [#allocation17], %s499_s24 }
 0x14c   : > { %p8223_p2 = scmp.ne.s32.totalorder %s8204_s25, 0 }
 0x14d   : > { %s6695_s20 = scalar_lea.vmem [#allocation16], %s5740_s13 }
 0x14e   : > { %6239 = dma.done.wait (%p8223_p2), %s500_s12, 164160  }
 0x14f   : > { %6241 = vsyncadd (%p8223_p2), %s500_s12, 4294803136  ;;  %v6278_v0 = vmov 0.0   ;;  %vm6279_vm0 = vmmov 0   ;;  %vm577_vm1 = vcmask 1044480   ;;  %vm573_vm2 = vcmask 39936   ;;  %v564_v2 = vld [vmem:[#allocation2] sm:$0xff] }
 0x150   : > { %4222 = vmatprep.subr.mxu1 %v6278_v0  ;;  %4224 = vmatprep.mubr.msk.f32.mxu1 %vm6279_vm0, %v6278_v0  ;;  %v565_v1 = vld [vmem:[#allocation4] sm:$0x1f]  ;;  %v652_v3 = vld [vmem:[#allocation7] sm:$0xff]  ;;  %v653_v4 = vld [vmem:[#allocation7 + $0x8] sm:$0xff]  ;;  %v6280_v7 = vmov 0.0|0.0   ;;  %vm667_vm3 = vcmask 523264  }
 0x151   : > { %850 = vmatprep.mubr.f32.mxu0 %v6278_v0  ;;  %4223 = vmatpush3.msk.msra.mxu1 %vm577_vm1, %v565_v1  ;;  %v654_v5 = vld [vmem:[#allocation7 + $0x10] sm:$0xff]  ;;  %v655_v6 = vld [vmem:[#allocation7 + $0x18] sm:$0xff]  ;;  %v4247_v8 = vpack.c.bf16 %v653_v4, %v652_v3  ;;  %v656_v10 = vld [vmem:[#allocation7 + $0x20] sm:$0xff]  ;;  %s7432_s25 = smul.u32 20, %s501_s29  ;;  %s8225_s21 = sld [smem:[#allocation32_spill]] }
 0x152   : > { %4225 = vmatmul.mubr.msk.f32.vlgmr.msra.gmra.mrb[0].mxu1 %vm573_vm2, %v564_v2  ;;  %4246 = vmatprep.subr.bf16.mxu1 %v6280_v7  ;;  %v4250_v9 = vpack.c.bf16 %v655_v6, %v654_v5  ;;  %v657_v11 = vld [vmem:[#allocation7 + $0x28] sm:$0xff]  ;;  %v658_v13 = vld [vmem:[#allocation7 + $0x30] sm:$0xff]  ;;  %v659_v14 = vld [vmem:[#allocation7 + $0x38] sm:$0xff]  ;;  %s558_s28 = smul.u32 20, %s6362_s23 }
 0x153   : > { %4243 = vmatprep.mubr.msk.f32.mxu1 %vm6279_vm0, %v6278_v0  ;;  %4248 = vmatpush3.bf16.msra.mxu1 %v4247_v8  ;;  %v4253_v12 = vpack.c.bf16 %v657_v11, %v656_v10  ;;  %v4256_v15 = vpack.c.bf16 %v659_v14, %v658_v13  ;;  %v743_v16 = vld [vmem:[#allocation10 + $0x8] sm:$0xff]  ;;  %v745_v17 = vld [vmem:[#allocation10 + $0x18] sm:$0xff]  ;;  %v742_v18 = vld [vmem:[#allocation10] sm:$0xff]  ;;  %s7458_s17 = scalar_lea.vmem [#allocation18], %s7432_s25 }
 0x154   : > { %4249 = vmatprep.subr.bf16.mxu1 %v6280_v7  ;;  %v4258_v19 = vpack.c.bf16 %v745_v17, %v743_v16  ;;  %v744_v20 = vld [vmem:[#allocation10 + $0x10] sm:$0xff]  ;;  %v747_v21 = vld [vmem:[#allocation10 + $0x28] sm:$0xff]  ;;  %v749_v22 = vld [vmem:[#allocation10 + $0x38] sm:$0xff]  ;;  %p7448_p5 = scmp.lt.s32.totalorder %s558_s28, 79 }
 0x155   : > { %v4260_v23 = vpack.c.bf16 %v744_v20, %v742_v18  ;;  %v4262_v24 = vpack.c.bf16 %v749_v22, %v747_v21  ;;  %v746_v25 = vld [vmem:[#allocation10 + $0x20] sm:$0xff]  ;;  %v748_v26 = vld [vmem:[#allocation10 + $0x30] sm:$0xff]  ;;  %v751_v27 = vld [vmem:[#allocation10 + $0x48] sm:$0xff] }
 0x156   : > { %4259 = vmatprep.subr.bf16.mxu0 %v4258_v19  ;;  %v753_v28 = vld [vmem:[#allocation10 + $0x58] sm:$0xff]  ;;  %v4264_v29 = vpack.c.bf16 %v748_v26, %v746_v25  ;;  %v750_v31 = vld [vmem:[#allocation10 + $0x40] sm:$0xff]  ;;  %v752_v32 = vld [vmem:[#allocation10 + $0x50] sm:$0xff]  ;;  %s8232_s28 = smov (!%p7448_p5, %s558_s28), 79 }
 0x157   : > { %4251 = vmatpush3.bf16.msra.mxu1 %v4250_v9  ;;  %4261 = vmatpush1.bf16.msra.mxu0 %v4260_v23  ;;  %v4266_v30 = vpack.c.bf16 %v753_v28, %v751_v27  ;;  %v755_v33 = vld [vmem:[#allocation10 + $0x68] sm:$0xff]  ;;  %v757_v34 = vld [vmem:[#allocation10 + $0x78] sm:$0xff]  ;;  %v4268_v35 = vpack.c.bf16 %v752_v32, %v750_v31  ;;  %v754_v37 = vld [vmem:[#allocation10 + $0x60] sm:$0xff]  ;;  %s4201_s23 = sshll.u32 %s8232_s28, 3 }
 0x158   : > { %4252 = vmatprep.subr.bf16.mxu1 %v6280_v7  ;;  %4263 = vmatprep.subr.bf16.mxu0 %v4262_v24  ;;  %v4270_v36 = vpack.c.bf16 %v757_v34, %v755_v33  ;;  %v756_v38 = vld [vmem:[#allocation10 + $0x70] sm:$0xff]  ;;  %v759_v39 = vld [vmem:[#allocation10 + $0x88] sm:$0xff]  ;;  %v761_v40 = vld [vmem:[#allocation10 + $0x98] sm:$0xff]  ;;  %s7491_s14 = scalar_lea.vmem %s8225_s21, %s4201_s23 }
 0x159   : > { %v4272_v41 = vpack.c.bf16 %v756_v38, %v754_v37  ;;  %v4274_v42 = vpack.c.bf16 %v761_v40, %v759_v39  ;;  %v758_v43 = vld [vmem:[#allocation10 + $0x80] sm:$0xff]  ;;  %v760_v44 = vld [vmem:[#allocation10 + $0x90] sm:$0xff]  ;;  %v763_v45 = vld [vmem:[#allocation10 + $0xa8] sm:$0xff] }
 0x15a   : > { %v765_v46 = vld [vmem:[#allocation10 + $0xb8] sm:$0xff]  ;;  %v4276_v47 = vpack.c.bf16 %v760_v44, %v758_v43  ;;  %v762_v49 = vld [vmem:[#allocation10 + $0xa0] sm:$0xff]  ;;  %v764_v50 = vld [vmem:[#allocation10 + $0xb0] sm:$0xff] }
 0x15b   : > { %4254 = vmatpush3.bf16.msra.mxu1 %v4253_v12  ;;  %4265 = vmatpush1.bf16.msra.mxu0 %v4264_v29  ;;  %v4278_v48 = vpack.c.bf16 %v765_v46, %v763_v45  ;;  %v767_v51 = vld [vmem:[#allocation10 + $0xc8] sm:$0xff]  ;;  %v769_v52 = vld [vmem:[#allocation10 + $0xd8] sm:$0xff]  ;;  %v4280_v53 = vpack.c.bf16 %v764_v50, %v762_v49  ;;  %v766_v55 = vld [vmem:[#allocation10 + $0xc0] sm:$0xff] }
 0x15c   : > { %4255 = vmatprep.subr.bf16.mxu1 %v6280_v7  ;;  %4267 = vmatprep.subr.bf16.mxu0 %v4266_v30  ;;  %v4282_v54 = vpack.c.bf16 %v769_v52, %v767_v51  ;;  %v768_v56 = vld [vmem:[#allocation10 + $0xd0] sm:$0xff]  ;;  %v4202_v58 = vld [vmem:[#allocation6] ss:$0 sm:$0xff]  ;;  %v771_v63 = vld [vmem:[#allocation10 + $0xe8] sm:$0xff] }
 0x15d   : > { %v4284_v57 = vpack.c.bf16 %v768_v56, %v766_v55  ;;  %v773_v0 = vld [vmem:[#allocation10 + $0xf8] sm:$0xff]  ;;  %v770_v2 = vld [vmem:[#allocation10 + $0xe0] sm:$0xff]  ;;  %v772_v3 = vld [vmem:[#allocation10 + $0xf0] sm:$0xff] }
 0x15e   : > { %v4286_v1 = vpack.c.bf16 %v773_v0, %v771_v63  ;;  %v4288_v4 = vpack.c.bf16 %v772_v3, %v770_v2  ;;  %v860_v5 = vld [vmem:[#allocation13 + $0x8] sm:$0xff]  ;;  %v862_v7 = vld [vmem:[#allocation13 + $0x18] sm:$0xff]  ;;  %v859_v10 = vld [vmem:[#allocation13] sm:$0xff] }
 0x15f   : > { %4257 = vmatpush3.bf16.msra.mxu1 %v4256_v15  ;;  %4269 = vmatpush1.bf16.msra.mxu0 %v4268_v35  ;;  %v864_v6 = vld [vmem:[#allocation13 + $0x28] sm:$0xff]  ;;  %v866_v9 = vld [vmem:[#allocation13 + $0x38] sm:$0xff]  ;;  %v863_v11 = vld [vmem:[#allocation13 + $0x20] sm:$0xff] }
 0x160   : > { %4271 = vmatprep.subr.bf16.mxu0 %v4270_v36  ;;  %v4290_v8 = vpack.c.bf16 %v864_v6, %v860_v5  ;;  %v4354_v12 = vpack.c.bf16 %v866_v9, %v862_v7  ;;  %v4292_v13 = vpack.c.bf16 %v863_v11, %v859_v10  ;;  %v868_v14 = vld [vmem:[#allocation13 + $0x48] sm:$0xff]  ;;  %v867_v17 = vld [vmem:[#allocation13 + $0x40] sm:$0xff] }
 0x161   : > { %v872_v15 = vld [vmem:[#allocation13 + $0x68] sm:$0xff]  ;;  %v871_v18 = vld [vmem:[#allocation13 + $0x60] sm:$0xff] }
 0x162   : > { %4291 = vmatprep.subr.bf16.mxu1 %v4290_v8  ;;  %v4294_v16 = vpack.c.bf16 %v872_v15, %v868_v14  ;;  %v4296_v19 = vpack.c.bf16 %v871_v18, %v867_v17  ;;  %v876_v20 = vld [vmem:[#allocation13 + $0x88] sm:$0xff]  ;;  %v875_v23 = vld [vmem:[#allocation13 + $0x80] sm:$0xff] }
 0x163   : > { %4273 = vmatpush1.bf16.msra.mxu0 %v4272_v41  ;;  %v880_v21 = vld [vmem:[#allocation13 + $0xa8] sm:$0xff]  ;;  %v879_v24 = vld [vmem:[#allocation13 + $0xa0] sm:$0xff] }
 0x164   : > { %4275 = vmatprep.subr.bf16.mxu0 %v4274_v42  ;;  %v4298_v22 = vpack.c.bf16 %v880_v21, %v876_v20  ;;  %v4300_v25 = vpack.c.bf16 %v879_v24, %v875_v23  ;;  %v884_v26 = vld [vmem:[#allocation13 + $0xc8] sm:$0xff]  ;;  %v883_v29 = vld [vmem:[#allocation13 + $0xc0] sm:$0xff] }
 0x165   : > { %v888_v27 = vld [vmem:[#allocation13 + $0xe8] sm:$0xff]  ;;  %v887_v30 = vld [vmem:[#allocation13 + $0xe0] sm:$0xff] }
 0x166   : > { %v4302_v28 = vpack.c.bf16 %v888_v27, %v884_v26  ;;  %v4304_v31 = vpack.c.bf16 %v887_v30, %v883_v29  ;;  %v892_v32 = vld [vmem:[#allocation13 + $0x108] sm:$0xff]  ;;  %v891_v35 = vld [vmem:[#allocation13 + $0x100] sm:$0xff] }
 0x167   : > { %4277 = vmatpush1.bf16.msra.mxu0 %v4276_v47  ;;  %v896_v33 = vld [vmem:[#allocation13 + $0x128] sm:$0xff]  ;;  %v895_v36 = vld [vmem:[#allocation13 + $0x120] sm:$0xff] }
 0x168   : > { %4279 = vmatprep.subr.bf16.mxu0 %v4278_v48  ;;  %v4306_v34 = vpack.c.bf16 %v896_v33, %v892_v32  ;;  %v4308_v37 = vpack.c.bf16 %v895_v36, %v891_v35  ;;  %v900_v38 = vld [vmem:[#allocation13 + $0x148] sm:$0xff]  ;;  %v899_v41 = vld [vmem:[#allocation13 + $0x140] sm:$0xff]  ;;  %v861_v32 = vld [vmem:[#allocation13 + $0x10] sm:$0xff] }
 0x169   : > { %v904_v39 = vld [vmem:[#allocation13 + $0x168] sm:$0xff]  ;;  %v903_v42 = vld [vmem:[#allocation13 + $0x160] sm:$0xff]  ;;  %v865_v33 = vld [vmem:[#allocation13 + $0x30] sm:$0xff] }
 0x16a   : > { %v4310_v40 = vpack.c.bf16 %v904_v39, %v900_v38  ;;  %v4312_v43 = vpack.c.bf16 %v903_v42, %v899_v41  ;;  %v908_v44 = vld [vmem:[#allocation13 + $0x188] sm:$0xff]  ;;  %v907_v47 = vld [vmem:[#allocation13 + $0x180] sm:$0xff]  ;;  %v870_v35 = vld [vmem:[#allocation13 + $0x58] sm:$0xff]  ;;  %v4356_v39 = vpack.c.bf16 %v865_v33, %v861_v32 }
 0x16b   : > { %4281 = vmatpush1.bf16.msra.mxu0 %v4280_v53  ;;  %v912_v45 = vld [vmem:[#allocation13 + $0x1a8] sm:$0xff]  ;;  %v911_v48 = vld [vmem:[#allocation13 + $0x1a0] sm:$0xff]  ;;  %v874_v36 = vld [vmem:[#allocation13 + $0x78] sm:$0xff] }
 0x16c   : > { %4283 = vmatprep.subr.bf16.mxu0 %v4282_v54  ;;  %v4314_v46 = vpack.c.bf16 %v912_v45, %v908_v44  ;;  %v4316_v49 = vpack.c.bf16 %v911_v48, %v907_v47  ;;  %v916_v50 = vld [vmem:[#allocation13 + $0x1c8] sm:$0xff]  ;;  %v915_v53 = vld [vmem:[#allocation13 + $0x1c0] sm:$0xff]  ;;  %v4358_v41 = vpack.c.bf16 %v874_v36, %v870_v35  ;;  %v869_v42 = vld [vmem:[#allocation13 + $0x50] sm:$0xff] }
 0x16d   : > { %v920_v51 = vld [vmem:[#allocation13 + $0x1e8] sm:$0xff]  ;;  %v919_v54 = vld [vmem:[#allocation13 + $0x1e0] sm:$0xff]  ;;  %v878_v44 = vld [vmem:[#allocation13 + $0x98] sm:$0xff] }
 0x16e   : > { %v4318_v52 = vpack.c.bf16 %v920_v51, %v916_v50  ;;  %v4320_v55 = vpack.c.bf16 %v919_v54, %v915_v53  ;;  %v924_v56 = vld [vmem:[#allocation13 + $0x208] sm:$0xff]  ;;  %v935_v2 = vld [vmem:[#allocation13 + $0x260] sm:$0xff]  ;;  %v882_v45 = vld [vmem:[#allocation13 + $0xb8] sm:$0xff] }
 0x16f   : > { %4285 = vmatpush1.bf16.msra.mxu0 %v4284_v57  ;;  %v928_v57 = vld [vmem:[#allocation13 + $0x228] sm:$0xff]  ;;  %v939_v7 = vld [vmem:[#allocation13 + $0x280] sm:$0xff]  ;;  %v4362_v47 = vpack.c.bf16 %v882_v45, %v878_v44  ;;  %v877_v48 = vld [vmem:[#allocation13 + $0x90] sm:$0xff] }
 0x170   : > { %4287 = vmatprep.subr.bf16.mxu0 %v4286_v1  ;;  %v936_v63 = vld [vmem:[#allocation13 + $0x268] sm:$0xff]  ;;  %v931_v1 = vld [vmem:[#allocation13 + $0x240] sm:$0xff]  ;;  %v886_v50 = vld [vmem:[#allocation13 + $0xd8] sm:$0xff] }
 0x171   : > { %v4328_v3 = vpack.c.bf16 %v935_v2, %v931_v1  ;;  %v944_v5 = vld [vmem:[#allocation13 + $0x2a8] sm:$0xff]  ;;  %v943_v8 = vld [vmem:[#allocation13 + $0x2a0] sm:$0xff]  ;;  %v890_v51 = vld [vmem:[#allocation13 + $0xf8] sm:$0xff] }
 0x172   : > { %v4332_v9 = vpack.c.bf16 %v943_v8, %v939_v7  ;;  %v948_v10 = vld [vmem:[#allocation13 + $0x2c8] sm:$0xff]  ;;  %v951_v14 = vld [vmem:[#allocation13 + $0x2e0] sm:$0xff]  ;;  %v4366_v53 = vpack.c.bf16 %v890_v51, %v886_v50  ;;  %v885_v54 = vld [vmem:[#allocation13 + $0xd0] sm:$0xff] }
 0x173   : > { %4289 = vmatpush1.bf16.msra.mxu0 %v4288_v4  ;;  %v940_v4 = vld [vmem:[#allocation13 + $0x288] sm:$0xff]  ;;  %v959_v20 = vld [vmem:[#allocation13 + $0x320] sm:$0xff]  ;;  %v901_v2 = vld [vmem:[#allocation13 + $0x150] sm:$0xff] }
 0x174   : > { %4355 = vmatprep.subr.bf16.mxu0 %v4354_v12  ;;  %v4330_v6 = vpack.c.bf16 %v944_v5, %v940_v4  ;;  %v952_v11 = vld [vmem:[#allocation13 + $0x2e8] sm:$0xff]  ;;  %v967_v26 = vld [vmem:[#allocation13 + $0x360] sm:$0xff]  ;;  %v910_v4 = vld [vmem:[#allocation13 + $0x198] sm:$0xff] }
 0x175   : > { %v4334_v12 = vpack.c.bf16 %v952_v11, %v948_v10  ;;  %v960_v17 = vld [vmem:[#allocation13 + $0x328] sm:$0xff]  ;;  %v914_v5 = vld [vmem:[#allocation13 + $0x1b8] sm:$0xff]  ;;  %v909_v8 = vld [vmem:[#allocation13 + $0x190] sm:$0xff] }
 0x176   : > { %v968_v23 = vld [vmem:[#allocation13 + $0x368] sm:$0xff]  ;;  %v4378_v7 = vpack.c.bf16 %v914_v5, %v910_v4  ;;  %v918_v10 = vld [vmem:[#allocation13 + $0x1d8] sm:$0xff]  ;;  %v941_v32 = vld [vmem:[#allocation13 + $0x290] sm:$0xff] }
 0x177   : > { %v976_v29 = vld [vmem:[#allocation13 + $0x3a8] sm:$0xff]  ;;  %v922_v11 = vld [vmem:[#allocation13 + $0x1f8] sm:$0xff]  ;;  %v945_v33 = vld [vmem:[#allocation13 + $0x2b0] sm:$0xff] }
 0x178   : > { %v954_v35 = vld [vmem:[#allocation13 + $0x2f8] sm:$0xff]  ;;  %v4396_v36 = vpack.c.bf16 %v945_v33, %v941_v32  ;;  %v957_v44 = vld [vmem:[#allocation13 + $0x310] sm:$0xff]  ;;  %v983_v4 = vld [vmem:[#allocation13 + $0x3e0] sm:$0xff] }
 0x179   : > { %v961_v45 = vld [vmem:[#allocation13 + $0x330] sm:$0xff]  ;;  %v1198_v33 = vld [vmem:[%s6695_s20 + $0x158] sm:$0xff] }
 0x17a   : > { %v965_v50 = vld [vmem:[#allocation13 + $0x350] sm:$0xff] }
 0x17b   : > { %v969_v51 = vld [vmem:[#allocation13 + $0x370] sm:$0xff] }
 0x17c   : > { %v1216_v32 = vld [vmem:[%s6695_s20 + $0x1e8] sm:$0xff] }
 0x225   : > { %v647_v59 = vpop.f32.mrb[0].mxu1 }
 0x226   : > { %v648_v60 = vadd.f32 %v4202_v58, %v647_v59  ;;  %v4226_v61 = vpop.f32.mrb[1].mxu1  ;;  %v4322_v58 = vpack.c.bf16 %v928_v57, %v924_v56  ;;  %v923_v59 = vld [vmem:[#allocation13 + $0x200] sm:$0xff]  ;;  %v894_v56 = vld [vmem:[#allocation13 + $0x118] sm:$0xff] }
 0x227   : > { %v898_v57 = vld [vmem:[#allocation13 + $0x138] sm:$0xff] }
 0x228   : > { %v651_v62 = vmax.f32 %v648_v60, 0.0  ;;  %v927_v60 = vld [vmem:[#allocation13 + $0x220] sm:$0xff] }
 0x229   : > { %v4324_v61 = vpack.c.bf16 %v927_v60, %v923_v59  ;;  %v4370_v59 = vpack.c.bf16 %v898_v57, %v894_v56  ;;  %v893_v60 = vld [vmem:[#allocation13 + $0x110] sm:$0xff]  ;;  %v971_v56 = vld [vmem:[#allocation13 + $0x380] sm:$0xff] }
 0x22a   : > { %4244 = vmatmul.mubr.msk.f32.vlgmr.msra.gmra.mrb[2].mxu1 %vm667_vm3, %v651_v62  ;;  %v932_v62 = vld [vmem:[#allocation13 + $0x248] sm:$0xff]  ;;  %v975_v57 = vld [vmem:[#allocation13 + $0x3a0] sm:$0xff] }
 0x22b   : > { %4293 = vmatpush1.bf16.msra.mxu1 %v4292_v13  ;;  %v4326_v0 = vpack.c.bf16 %v936_v63, %v932_v62  ;;  %v947_v13 = vld [vmem:[#allocation13 + $0x2c0] sm:$0xff]  ;;  %v902_v62 = vld [vmem:[#allocation13 + $0x158] sm:$0xff] }
 0x22c   : > { %4295 = vmatprep.subr.bf16.mxu1 %v4294_v16  ;;  %v4336_v15 = vpack.c.bf16 %v951_v14, %v947_v13  ;;  %v956_v16 = vld [vmem:[#allocation13 + $0x308] sm:$0xff]  ;;  %v906_v63 = vld [vmem:[#allocation13 + $0x178] sm:$0xff]  ;;  %v4382_v13 = vpack.c.bf16 %v922_v11, %v918_v10  ;;  %v917_v14 = vld [vmem:[#allocation13 + $0x1d0] sm:$0xff] }
 0x22d   : > { %v4338_v18 = vpack.c.bf16 %v960_v17, %v956_v16  ;;  %v4374_v1 = vpack.c.bf16 %v906_v63, %v902_v62  ;;  %v926_v16 = vld [vmem:[#allocation13 + $0x218] sm:$0xff]  ;;  %v980_v62 = vld [vmem:[#allocation13 + $0x3c8] sm:$0xff] }
 0x22e   : > { %v930_v17 = vld [vmem:[#allocation13 + $0x238] sm:$0xff]  ;;  %v984_v63 = vld [vmem:[#allocation13 + $0x3e8] sm:$0xff] }
 0x22f   : > { %4297 = vmatpush1.bf16.msra.mxu1 %v4296_v19  ;;  %v955_v19 = vld [vmem:[#allocation13 + $0x300] sm:$0xff]  ;;  %v1156_v10 = vld [vmem:[%s6695_s20 + $0x8] sm:$0xff] }
 0x230   : > { %4299 = vmatprep.subr.bf16.mxu1 %v4298_v22  ;;  %v4340_v21 = vpack.c.bf16 %v959_v20, %v955_v19  ;;  %v964_v22 = vld [vmem:[#allocation13 + $0x348] sm:$0xff]  ;;  %v4386_v19 = vpack.c.bf16 %v930_v17, %v926_v16  ;;  %v925_v20 = vld [vmem:[#allocation13 + $0x210] sm:$0xff]  ;;  %v776_v16 = vlaneseq }
 0x231   : > { %v4342_v24 = vpack.c.bf16 %v968_v23, %v964_v22  ;;  %v934_v22 = vld [vmem:[#allocation13 + $0x258] sm:$0xff]  ;;  %v1176_v11 = vld [vmem:[%s6695_s20 + $0xa8] sm:$0xff] }
 0x232   : > { %v938_v23 = vld [vmem:[#allocation13 + $0x278] sm:$0xff]  ;;  %v6707_v17 = vshrl.u32 %v776_v16, 7 }
 0x233   : > { %4301 = vmatpush1.bf16.msra.mxu1 %v4300_v25  ;;  %v963_v25 = vld [vmem:[#allocation13 + $0x340] sm:$0xff]  ;;  %v1337_v16 = vld [vmem:[%s6695_s20 + $0x5b0] sm:$0xff] }
 0x234   : > { %4303 = vmatprep.subr.bf16.mxu1 %v4302_v28  ;;  %v4344_v27 = vpack.c.bf16 %v967_v26, %v963_v25  ;;  %v972_v28 = vld [vmem:[#allocation13 + $0x388] sm:$0xff]  ;;  %v4390_v25 = vpack.c.bf16 %v938_v23, %v934_v22  ;;  %v933_v26 = vld [vmem:[#allocation13 + $0x250] sm:$0xff] }
 0x235   : > { %v4346_v30 = vpack.c.bf16 %v976_v29, %v972_v28  ;;  %v942_v28 = vld [vmem:[#allocation13 + $0x298] sm:$0xff] }
 0x236   : > { %v946_v29 = vld [vmem:[#allocation13 + $0x2b8] sm:$0xff] }
 0x237   : > { %4305 = vmatpush1.bf16.msra.mxu1 %v4304_v31  ;;  %v4205_v31 = vld [vmem:[#allocation9] ss:$0 sm:$0xff] }
 0x238   : > { %4307 = vmatprep.subr.bf16.mxu1 %v4306_v34 }
 0x23b   : > { %4309 = vmatpush1.bf16.msra.mxu1 %v4308_v37 }
 0x23c   : > { %4311 = vmatprep.subr.bf16.mxu1 %v4310_v40 }
 0x23f   : > { %4313 = vmatpush1.bf16.msra.mxu1 %v4312_v43  ;;  %v873_v43 = vld [vmem:[#allocation13 + $0x70] sm:$0xff] }
 0x240   : > { %4315 = vmatprep.subr.bf16.mxu1 %v4314_v46  ;;  %v4360_v46 = vpack.c.bf16 %v873_v43, %v869_v42 }
 0x243   : > { %4317 = vmatpush1.bf16.msra.mxu1 %v4316_v49  ;;  %v881_v49 = vld [vmem:[#allocation13 + $0xb0] sm:$0xff] }
 0x244   : > { %4319 = vmatprep.subr.bf16.mxu1 %v4318_v52  ;;  %v4364_v52 = vpack.c.bf16 %v881_v49, %v877_v48  ;;  %v4404_v48 = vpack.c.bf16 %v961_v45, %v957_v44  ;;  %v1217_v44 = vld [vmem:[%s6695_s20 + $0x1f0] sm:$0xff]  ;;  %v1236_v45 = vld [vmem:[%s6695_s20 + $0x288] sm:$0xff] }
 0x247   : > { %4321 = vmatpush1.bf16.msra.mxu1 %v4320_v55  ;;  %v889_v55 = vld [vmem:[#allocation13 + $0xf0] sm:$0xff] }
 0x248   : > { %4323 = vmatprep.subr.bf16.mxu1 %v4322_v58  ;;  %v4368_v58 = vpack.c.bf16 %v889_v55, %v885_v54  ;;  %v4408_v54 = vpack.c.bf16 %v969_v51, %v965_v50  ;;  %v1235_v51 = vld [vmem:[%s6695_s20 + $0x280] sm:$0xff] }
 0x24b   : > { %4325 = vmatpush1.bf16.msra.mxu1 %v4324_v61  ;;  %v897_v61 = vld [vmem:[#allocation13 + $0x130] sm:$0xff] }
 0x24c   : > { %4327 = vmatprep.subr.bf16.mxu1 %v4326_v0  ;;  %v4372_v0 = vpack.c.bf16 %v897_v61, %v893_v60  ;;  %v977_v60 = vld [vmem:[#allocation13 + $0x3b0] sm:$0xff] }
 0x24f   : > { %4329 = vmatpush1.bf16.msra.mxu1 %v4328_v3  ;;  %v905_v3 = vld [vmem:[#allocation13 + $0x170] sm:$0xff] }
 0x250   : > { %4331 = vmatprep.subr.bf16.mxu1 %v4330_v6  ;;  %v4376_v6 = vpack.c.bf16 %v905_v3, %v901_v2  ;;  %v986_v2 = vld [vmem:[#allocation13 + $0x3f8] sm:$0xff]  ;;  %v979_v3 = vld [vmem:[#allocation13 + $0x3c0] sm:$0xff] }
 0x253   : > { %4333 = vmatpush1.bf16.msra.mxu1 %v4332_v9  ;;  %v913_v9 = vld [vmem:[#allocation13 + $0x1b0] sm:$0xff] }
 0x254   : > { %4335 = vmatprep.subr.bf16.mxu1 %v4334_v12  ;;  %v4380_v12 = vpack.c.bf16 %v913_v9, %v909_v8  ;;  %v985_v8 = vld [vmem:[#allocation13 + $0x3f0] sm:$0xff] }
 0x257   : > { %4337 = vmatpush1.bf16.msra.mxu1 %v4336_v15  ;;  %v921_v15 = vld [vmem:[#allocation13 + $0x1f0] sm:$0xff] }
 0x258   : > { %4339 = vmatprep.subr.bf16.mxu1 %v4338_v18  ;;  %v4384_v18 = vpack.c.bf16 %v921_v15, %v917_v14  ;;  %v1178_v14 = vld [vmem:[%s6695_s20 + $0xb8] sm:$0xff] }
 0x25b   : > { %4341 = vmatpush1.bf16.msra.mxu1 %v4340_v21  ;;  %v929_v21 = vld [vmem:[#allocation13 + $0x230] sm:$0xff] }
 0x25c   : > { %4343 = vmatprep.subr.bf16.mxu1 %v4342_v24  ;;  %v4388_v24 = vpack.c.bf16 %v929_v21, %v925_v20  ;;  %v6713_v20 = vsub.s32 1, %v6707_v17 }
 0x25f   : > { %4345 = vmatpush1.bf16.msra.mxu1 %v4344_v27  ;;  %v937_v27 = vld [vmem:[#allocation13 + $0x270] sm:$0xff] }
 0x260   : > { %4347 = vmatprep.subr.bf16.mxu1 %v4346_v30  ;;  %v4392_v30 = vpack.c.bf16 %v937_v27, %v933_v26 }
 0x2fd   : > { %v737_v34 = vpop.f32.mrb[2].mxu1 }
 0x2fe   : > { %v738_v37 = vadd.f32 %v4205_v31, %v737_v34  ;;  %v4245_v38 = vpop.f32.mrb[3].mxu1  ;;  %v4394_v31 = vpack.c.bf16 %v946_v29, %v942_v28  ;;  %v950_v34 = vld [vmem:[#allocation13 + $0x2d8] sm:$0xff] }
 0x2ff   : > { %v949_v38 = vld [vmem:[#allocation13 + $0x2d0] sm:$0xff] }
 0x300   : > { %v741_v40 = vmax.f32 %v738_v37, 0.0  ;;  %v4398_v37 = vpack.c.bf16 %v954_v35, %v950_v34  ;;  %v1157_v28 = vld [vmem:[%s6695_s20 + $0x10] sm:$0xff]  ;;  %v1218_v34 = vld [vmem:[%s6695_s20 + $0x1f8] sm:$0xff] }
 0x301   : > { %v1177_v29 = vld [vmem:[%s6695_s20 + $0xb0] sm:$0xff] }
 0x302   : > { %851 = vmatmul.mubr.f32.vlgmr.msra.gmra.mrb[0].mxu0 %v741_v40  ;;  %v958_v40 = vld [vmem:[#allocation13 + $0x318] sm:$0xff] }
 0x303   : > { %4357 = vmatpush1.bf16.msra.mxu0 %v4356_v39  ;;  %v953_v39 = vld [vmem:[#allocation13 + $0x2f0] sm:$0xff] }
 0x304   : > { %4359 = vmatprep.subr.bf16.mxu0 %v4358_v41  ;;  %v962_v41 = vld [vmem:[#allocation13 + $0x338] sm:$0xff]  ;;  %v4400_v42 = vpack.c.bf16 %v953_v39, %v949_v38  ;;  %v1195_v38 = vld [vmem:[%s6695_s20 + $0x140] sm:$0xff] }
 0x305   : > { %v4402_v43 = vpack.c.bf16 %v962_v41, %v958_v40  ;;  %v1215_v39 = vld [vmem:[%s6695_s20 + $0x1e0] sm:$0xff] }
 0x307   : > { %4361 = vmatpush1.bf16.msra.mxu0 %v4360_v46  ;;  %v966_v46 = vld [vmem:[#allocation13 + $0x358] sm:$0xff] }
 0x308   : > { %4363 = vmatprep.subr.bf16.mxu0 %v4362_v47  ;;  %v970_v47 = vld [vmem:[#allocation13 + $0x378] sm:$0xff] }
 0x309   : > { %v4406_v49 = vpack.c.bf16 %v970_v47, %v966_v46  ;;  %v1256_v46 = vld [vmem:[%s6695_s20 + $0x328] sm:$0xff]  ;;  %v1238_v47 = vld [vmem:[%s6695_s20 + $0x298] sm:$0xff] }
 0x30b   : > { %4365 = vmatpush1.bf16.msra.mxu0 %v4364_v52  ;;  %v974_v52 = vld [vmem:[#allocation13 + $0x398] sm:$0xff] }
 0x30c   : > { %4367 = vmatprep.subr.bf16.mxu0 %v4366_v53  ;;  %v978_v53 = vld [vmem:[#allocation13 + $0x3b8] sm:$0xff] }
 0x30d   : > { %v4410_v55 = vpack.c.bf16 %v978_v53, %v974_v52  ;;  %v1255_v52 = vld [vmem:[%s6695_s20 + $0x320] sm:$0xff]  ;;  %v4426_v53 = vpack.c.bf16 %v1256_v46, %v1236_v45  ;;  %v1456_v45 = vld [vmem:[%s6695_s20 + $0x968] sm:$0xff]  ;;  %v1438_v46 = vld [vmem:[%s6695_s20 + $0x8d8] sm:$0xff] }
 0x30f   : > { %4369 = vmatpush1.bf16.msra.mxu0 %v4368_v58  ;;  %v973_v58 = vld [vmem:[#allocation13 + $0x390] sm:$0xff] }
 0x310   : > { %4371 = vmatprep.subr.bf16.mxu0 %v4370_v59  ;;  %v4348_v59 = vpack.c.bf16 %v975_v57, %v971_v56  ;;  %v4412_v61 = vpack.c.bf16 %v977_v60, %v973_v58  ;;  %v1257_v56 = vld [vmem:[%s6695_s20 + $0x330] sm:$0xff]  ;;  %v1276_v57 = vld [vmem:[%s6695_s20 + $0x3c8] sm:$0xff]  ;;  %v1298_v60 = vld [vmem:[%s6695_s20 + $0x478] sm:$0xff] }
 0x311   : > { %v1296_v58 = vld [vmem:[%s6695_s20 + $0x468] sm:$0xff] }
 0x312   : > { %4349 = vmatpush1.bf16.msra.mxu1 %v4348_v59  ;;  %v1278_v59 = vld [vmem:[%s6695_s20 + $0x3d8] sm:$0xff] }
 0x313   : > { %4373 = vmatpush1.bf16.msra.mxu0 %v4372_v0  ;;  %v982_v0 = vld [vmem:[#allocation13 + $0x3d8] sm:$0xff] }
 0x314   : > { %4375 = vmatprep.subr.bf16.mxu0 %v4374_v1  ;;  %v4350_v1 = vpack.c.bf16 %v984_v63, %v980_v62  ;;  %v4414_v5 = vpack.c.bf16 %v986_v2, %v982_v0  ;;  %v1275_v63 = vld [vmem:[%s6695_s20 + $0x3c0] sm:$0xff]  ;;  %v4558_v2 = vpack.c.bf16 %v1298_v60, %v1278_v59  ;;  %v1498_v59 = vld [vmem:[%s6695_s20 + $0xab8] sm:$0xff] }
 0x315   : > { %v1295_v0 = vld [vmem:[%s6695_s20 + $0x460] sm:$0xff] }
 0x316   : > { %4351 = vmatprep.subr.bf16.mxu1 %v4350_v1  ;;  %v4430_v1 = vpack.c.bf16 %v1296_v58, %v1276_v57  ;;  %v1496_v57 = vld [vmem:[%s6695_s20 + $0xaa8] sm:$0xff]  ;;  %v1478_v58 = vld [vmem:[%s6695_s20 + $0xa18] sm:$0xff] }
 0x317   : > { %4377 = vmatpush1.bf16.msra.mxu0 %v4376_v6  ;;  %v4352_v6 = vpack.c.bf16 %v983_v4, %v979_v3  ;;  %v1277_v3 = vld [vmem:[%s6695_s20 + $0x3d0] sm:$0xff] }
 0x318   : > { %4379 = vmatprep.subr.bf16.mxu0 %v4378_v7  ;;  %v981_v7 = vld [vmem:[#allocation13 + $0x3d0] sm:$0xff] }
 0x319   : > { %v4416_v9 = vpack.c.bf16 %v985_v8, %v981_v7  ;;  %4353 = vmatpush1.bf16.msra.mxu1 %v4352_v6  ;;  %v1297_v4 = vld [vmem:[%s6695_s20 + $0x470] sm:$0xff]  ;;  %v1336_v6 = vld [vmem:[%s6695_s20 + $0x5a8] sm:$0xff]  ;;  %v1318_v7 = vld [vmem:[%s6695_s20 + $0x518] sm:$0xff] }
 0x31a   : > { %v1338_v8 = vld [vmem:[%s6695_s20 + $0x5b8] sm:$0xff] }
 0x31b   : > { %4381 = vmatpush1.bf16.msra.mxu0 %v4380_v12  ;;  %v1158_v12 = vld [vmem:[%s6695_s20 + $0x18] sm:$0xff] }
 0x31c   : > { %4383 = vmatprep.subr.bf16.mxu0 %v4382_v13  ;;  %v4418_v13 = vpack.c.bf16 %v1176_v11, %v1156_v10  ;;  %v4546_v15 = vpack.c.bf16 %v1178_v14, %v1158_v12  ;;  %v4560_v10 = vpack.c.bf16 %v1297_v4, %v1277_v3  ;;  %v1315_v11 = vld [vmem:[%s6695_s20 + $0x500] sm:$0xff]  ;;  %v4562_v14 = vpack.c.bf16 %v1338_v8, %v1318_v7  ;;  %v1497_v3 = vld [vmem:[%s6695_s20 + $0xab0] sm:$0xff]  ;;  %v1516_v4 = vld [vmem:[%s6695_s20 + $0xb48] sm:$0xff] }
 0x31d   : > { %v1335_v12 = vld [vmem:[%s6695_s20 + $0x5a0] sm:$0xff]  ;;  %v1538_v7 = vld [vmem:[%s6695_s20 + $0xbf8] sm:$0xff] }
 0x31e   : > { %4419 = vmatprep.subr.bf16.mxu1 %v4418_v13 }
 0x31f   : > { %4385 = vmatpush1.bf16.msra.mxu0 %v4384_v18  ;;  %v6710_v18 = vsub.s32 0, %v6707_v17 }
 0x320   : > { %4387 = vmatprep.subr.bf16.mxu0 %v4386_v19  ;;  %v774_v19 = vld [vmem:[#allocation12] sm:$0x3] }
 0x321   : > { %v779_v21 = vrot.slane %v774_v19, %v6710_v18  ;;  %v783_v22 = vrot.slane %v774_v19, %v6713_v20  ;;  %v1356_v19 = vld [vmem:[%s6695_s20 + $0x648] sm:$0xff] }
 0x323   : > { %4389 = vmatpush1.bf16.msra.mxu0 %v4388_v24  ;;  %v1155_v24 = vld [vmem:[%s6695_s20] sm:$0xff] }
 0x324   : > { %4391 = vmatprep.subr.bf16.mxu0 %v4390_v25  ;;  %v1175_v25 = vld [vmem:[%s6695_s20 + $0xa0] sm:$0xff] }
 0x327   : > { %4393 = vmatpush1.bf16.msra.mxu0 %v4392_v30  ;;  %v1196_v30 = vld [vmem:[%s6695_s20 + $0x148] sm:$0xff] }
 0x328   : > { %4395 = vmatprep.subr.bf16.mxu0 %v4394_v31  ;;  %v4422_v41 = vpack.c.bf16 %v1216_v32, %v1196_v30  ;;  %v1357_v30 = vld [vmem:[%s6695_s20 + $0x650] sm:$0xff]  ;;  %v1396_v32 = vld [vmem:[%s6695_s20 + $0x788] sm:$0xff] }
 0x32b   : > { %4397 = vmatpush1.bf16.msra.mxu0 %v4396_v36  ;;  %v4420_v36 = vpack.c.bf16 %v1175_v25, %v1155_v24  ;;  %v4436_v24 = vpack.c.bf16 %v1335_v12, %v1315_v11  ;;  %v1535_v11 = vld [vmem:[%s6695_s20 + $0xbe0] sm:$0xff] }
 0x32c   : > { %4399 = vmatprep.subr.bf16.mxu0 %v4398_v37  ;;  %v4548_v37 = vpack.c.bf16 %v1177_v29, %v1157_v28 }
 0x32f   : > { %4401 = vmatpush1.bf16.msra.mxu0 %v4400_v42  ;;  %v4550_v42 = vpack.c.bf16 %v1218_v34, %v1198_v33  ;;  %v1416_v33 = vld [vmem:[%s6695_s20 + $0x828] sm:$0xff]  ;;  %v1398_v34 = vld [vmem:[%s6695_s20 + $0x798] sm:$0xff] }
 0x330   : > { %4403 = vmatprep.subr.bf16.mxu0 %v4402_v43  ;;  %v1197_v43 = vld [vmem:[%s6695_s20 + $0x150] sm:$0xff] }
 0x331   : > { %v4552_v50 = vpack.c.bf16 %v1217_v44, %v1197_v43  ;;  %v1417_v43 = vld [vmem:[%s6695_s20 + $0x830] sm:$0xff]  ;;  %v1436_v44 = vld [vmem:[%s6695_s20 + $0x8c8] sm:$0xff] }
 0x333   : > { %4405 = vmatpush1.bf16.msra.mxu0 %v4404_v48  ;;  %v1258_v48 = vld [vmem:[%s6695_s20 + $0x338] sm:$0xff] }
 0x334   : > { %4407 = vmatprep.subr.bf16.mxu0 %v4406_v49  ;;  %v4424_v49 = vpack.c.bf16 %v1215_v39, %v1195_v38  ;;  %v1395_v38 = vld [vmem:[%s6695_s20 + $0x780] sm:$0xff] }
 0x335   : > { %v1415_v39 = vld [vmem:[%s6695_s20 + $0x820] sm:$0xff] }
 0x337   : > { %4409 = vmatpush1.bf16.msra.mxu0 %v4408_v54  ;;  %v4554_v54 = vpack.c.bf16 %v1258_v48, %v1238_v47  ;;  %v1458_v47 = vld [vmem:[%s6695_s20 + $0x978] sm:$0xff]  ;;  %v4444_v48 = vpack.c.bf16 %v1415_v39, %v1395_v38  ;;  %v1615_v38 = vld [vmem:[%s6695_s20 + $0xe60] sm:$0xff] }
 0x338   : > { %4411 = vmatprep.subr.bf16.mxu0 %v4410_v55  ;;  %v1237_v55 = vld [vmem:[%s6695_s20 + $0x290] sm:$0xff] }
 0x339   : > { %v4556_v62 = vpack.c.bf16 %v1257_v56, %v1237_v55  ;;  %v1457_v55 = vld [vmem:[%s6695_s20 + $0x970] sm:$0xff]  ;;  %v1476_v56 = vld [vmem:[%s6695_s20 + $0xa08] sm:$0xff] }
 0x33b   : > { %4413 = vmatpush1.bf16.msra.mxu0 %v4412_v61  ;;  %v4428_v61 = vpack.c.bf16 %v1255_v52, %v1235_v51  ;;  %v1455_v51 = vld [vmem:[%s6695_s20 + $0x960] sm:$0xff]  ;;  %v4446_v52 = vpack.c.bf16 %v1456_v45, %v1436_v44  ;;  %v1656_v44 = vld [vmem:[%s6695_s20 + $0xfa8] sm:$0xff]  ;;  %v1638_v45 = vld [vmem:[%s6695_s20 + $0xf18] sm:$0xff] }
 0x33c   : > { %4415 = vmatprep.subr.bf16.mxu0 %v4414_v5  ;;  %v1316_v5 = vld [vmem:[%s6695_s20 + $0x508] sm:$0xff] }
 0x33d   : > { %v4434_v13 = vpack.c.bf16 %v1336_v6, %v1316_v5  ;;  %v1536_v5 = vld [vmem:[%s6695_s20 + $0xbe8] sm:$0xff]  ;;  %v1518_v6 = vld [vmem:[%s6695_s20 + $0xb58] sm:$0xff] }
 0x33e   : > { %v4454_v12 = vpack.c.bf16 %v1536_v5, %v1516_v4  ;;  %v1736_v4 = vld [vmem:[%s6695_s20 + $0x1228] sm:$0xff]  ;;  %v1718_v5 = vld [vmem:[%s6695_s20 + $0x1198] sm:$0xff] }
 0x33f   : > { %4417 = vmatpush1.bf16.msra.mxu0 %v4416_v9  ;;  %v4432_v9 = vpack.c.bf16 %v1295_v0, %v1275_v63  ;;  %v1495_v63 = vld [vmem:[%s6695_s20 + $0xaa0] sm:$0xff]  ;;  %v4450_v0 = vpack.c.bf16 %v1496_v57, %v1476_v56  ;;  %v1696_v56 = vld [vmem:[%s6695_s20 + $0x10e8] sm:$0xff]  ;;  %v1678_v57 = vld [vmem:[%s6695_s20 + $0x1058] sm:$0xff] }
 0x340   : > { %4547 = vmatprep.subr.bf16.mxu0 %v4546_v15  ;;  %v1317_v15 = vld [vmem:[%s6695_s20 + $0x510] sm:$0xff] }
 0x341   : > { %v4564_v25 = vpack.c.bf16 %v1337_v16, %v1317_v15  ;;  %v1537_v15 = vld [vmem:[%s6695_s20 + $0xbf0] sm:$0xff]  ;;  %v1556_v16 = vld [vmem:[%s6695_s20 + $0xc88] sm:$0xff] }
 0x3d5   : > { %v852_v23 = vpop.f32.mrb[0].mxu0 }
 0x3d6   : > { %v853_v26 = vadd.f32 %v852_v23, %v779_v21  ;;  %v854_v27 = vpop.f32.mrb[1].mxu0  ;;  %v1376_v21 = vld [vmem:[%s6695_s20 + $0x6e8] sm:$0xff]  ;;  %v1378_v23 = vld [vmem:[%s6695_s20 + $0x6f8] sm:$0xff] }
 0x3d7   : > { %v855_v31 = vadd.f32 %v854_v27, %v783_v22  ;;  %v1358_v22 = vld [vmem:[%s6695_s20 + $0x658] sm:$0xff]  ;;  %v1375_v27 = vld [vmem:[%s6695_s20 + $0x6e0] sm:$0xff]  ;;  %v4438_v28 = vpack.c.bf16 %v1376_v21, %v1356_v19  ;;  %v1576_v19 = vld [vmem:[%s6695_s20 + $0xd28] sm:$0xff] }
 0x3d8   : > { %v857_v40 = vmax.f32 %v853_v26, 0.0  ;;  %v1355_v26 = vld [vmem:[%s6695_s20 + $0x640] sm:$0xff]  ;;  %v4566_v29 = vpack.c.bf16 %v1378_v23, %v1358_v22  ;;  %v1558_v21 = vld [vmem:[%s6695_s20 + $0xc98] sm:$0xff] }
 0x3d9   : > { %v858_v35 = vmax.f32 %v855_v31, 0.0  ;;  %v1377_v31 = vld [vmem:[%s6695_s20 + $0x6f0] sm:$0xff]  ;;  %v1578_v22 = vld [vmem:[%s6695_s20 + $0xd38] sm:$0xff] }
 0x3db   : > { %1073 = vmatprep.mubr.f32.mxu1 %v858_v35  ;;  %1144 = vmatprep.mubr.f32.mxu0 %v858_v35  ;;  %v1418_v35 = vld [vmem:[%s6695_s20 + $0x838] sm:$0xff] }
 0x3dc   : > { %1074 = vmatmul.mubr.f32.vlgmr.msra.gmra.mrb[4].mxu1 %v857_v40  ;;  %1145 = vmatmul.mubr.f32.vlgmr.msra.gmra.mrb[2].mxu0 %v857_v40  ;;  %v4442_v40 = vpack.c.bf16 %v1416_v33, %v1396_v32  ;;  %v1616_v32 = vld [vmem:[%s6695_s20 + $0xe68] sm:$0xff]  ;;  %v1598_v33 = vld [vmem:[%s6695_s20 + $0xdd8] sm:$0xff] }
 0x3dd   : > { %4421 = vmatpush1.bf16.msra.mxu1 %v4420_v36  ;;  %4549 = vmatpush1.bf16.msra.mxu0 %v4548_v37  ;;  %v4440_v36 = vpack.c.bf16 %v1375_v27, %v1355_v26  ;;  %v4568_v37 = vpack.c.bf16 %v1377_v31, %v1357_v30  ;;  %v1575_v26 = vld [vmem:[%s6695_s20 + $0xd20] sm:$0xff]  ;;  %v4458_v27 = vpack.c.bf16 %v1576_v19, %v1556_v16  ;;  %v1577_v30 = vld [vmem:[%s6695_s20 + $0xd30] sm:$0xff]  ;;  %v1596_v31 = vld [vmem:[%s6695_s20 + $0xdc8] sm:$0xff] }
 0x3de   : > { %4423 = vmatprep.subr.bf16.mxu1 %v4422_v41  ;;  %4551 = vmatprep.subr.bf16.mxu0 %v4550_v42  ;;  %v4570_v41 = vpack.c.bf16 %v1418_v35, %v1398_v34  ;;  %v1397_v42 = vld [vmem:[%s6695_s20 + $0x790] sm:$0xff]  ;;  %v1618_v34 = vld [vmem:[%s6695_s20 + $0xe78] sm:$0xff]  ;;  %v4462_v39 = vpack.c.bf16 %v1616_v32, %v1596_v31  ;;  %v1756_v19 = vld [vmem:[%s6695_s20 + $0x12c8] sm:$0xff] }
 0x3df   : > { %v1796_v32 = vld [vmem:[%s6695_s20 + $0x1408] sm:$0xff] }
 0x3e1   : > { %4425 = vmatpush1.bf16.msra.mxu1 %v4424_v49  ;;  %4553 = vmatpush1.bf16.msra.mxu0 %v4552_v50  ;;  %v4572_v49 = vpack.c.bf16 %v1417_v43, %v1397_v42  ;;  %v1435_v50 = vld [vmem:[%s6695_s20 + $0x8c0] sm:$0xff]  ;;  %v1617_v42 = vld [vmem:[%s6695_s20 + $0xe70] sm:$0xff]  ;;  %v1636_v43 = vld [vmem:[%s6695_s20 + $0xf08] sm:$0xff] }
 0x3e2   : > { %4427 = vmatprep.subr.bf16.mxu1 %v4426_v53  ;;  %4555 = vmatprep.subr.bf16.mxu0 %v4554_v54  ;;  %v4574_v53 = vpack.c.bf16 %v1458_v47, %v1438_v46  ;;  %v1437_v54 = vld [vmem:[%s6695_s20 + $0x8d0] sm:$0xff]  ;;  %v4448_v60 = vpack.c.bf16 %v1455_v51, %v1435_v50  ;;  %v1658_v46 = vld [vmem:[%s6695_s20 + $0xfb8] sm:$0xff]  ;;  %v1655_v50 = vld [vmem:[%s6695_s20 + $0xfa0] sm:$0xff]  ;;  %v4466_v51 = vpack.c.bf16 %v1656_v44, %v1636_v43 }
 0x3e5   : > { %4429 = vmatpush1.bf16.msra.mxu1 %v4428_v61  ;;  %4557 = vmatpush1.bf16.msra.mxu0 %v4556_v62  ;;  %v4576_v61 = vpack.c.bf16 %v1457_v55, %v1437_v54  ;;  %v1475_v62 = vld [vmem:[%s6695_s20 + $0xa00] sm:$0xff]  ;;  %v1657_v54 = vld [vmem:[%s6695_s20 + $0xfb0] sm:$0xff]  ;;  %v1676_v55 = vld [vmem:[%s6695_s20 + $0x1048] sm:$0xff] }
 0x3e6   : > { %4431 = vmatprep.subr.bf16.mxu1 %v4430_v1  ;;  %4559 = vmatprep.subr.bf16.mxu0 %v4558_v2  ;;  %v4578_v1 = vpack.c.bf16 %v1498_v59, %v1478_v58  ;;  %v1477_v2 = vld [vmem:[%s6695_s20 + $0xa10] sm:$0xff]  ;;  %v4452_v8 = vpack.c.bf16 %v1495_v63, %v1475_v62  ;;  %v1698_v58 = vld [vmem:[%s6695_s20 + $0x10f8] sm:$0xff]  ;;  %v1695_v62 = vld [vmem:[%s6695_s20 + $0x10e0] sm:$0xff]  ;;  %v4470_v63 = vpack.c.bf16 %v1696_v56, %v1676_v55 }
 0x3e7   : > { %v1856_v55 = vld [vmem:[%s6695_s20 + $0x15e8] sm:$0xff]  ;;  %v1838_v56 = vld [vmem:[%s6695_s20 + $0x1558] sm:$0xff] }
 0x3e9   : > { %4433 = vmatpush1.bf16.msra.mxu1 %v4432_v9  ;;  %4561 = vmatpush1.bf16.msra.mxu0 %v4560_v10  ;;  %v4580_v9 = vpack.c.bf16 %v1497_v3, %v1477_v2  ;;  %v1515_v10 = vld [vmem:[%s6695_s20 + $0xb40] sm:$0xff]  ;;  %v1697_v2 = vld [vmem:[%s6695_s20 + $0x10f0] sm:$0xff]  ;;  %v1716_v3 = vld [vmem:[%s6695_s20 + $0x1188] sm:$0xff] }
 0x3ea   : > { %4435 = vmatprep.subr.bf16.mxu1 %v4434_v13  ;;  %4563 = vmatprep.subr.bf16.mxu0 %v4562_v14  ;;  %v4582_v13 = vpack.c.bf16 %v1538_v7, %v1518_v6  ;;  %v1517_v14 = vld [vmem:[%s6695_s20 + $0xb50] sm:$0xff]  ;;  %v4456_v23 = vpack.c.bf16 %v1535_v11, %v1515_v10  ;;  %v1738_v6 = vld [vmem:[%s6695_s20 + $0x1238] sm:$0xff]  ;;  %v4474_v10 = vpack.c.bf16 %v1736_v4, %v1716_v3 }
 0x3eb   : > { %v4602_v11 = vpack.c.bf16 %v1738_v6, %v1718_v5  ;;  %v1896_v5 = vld [vmem:[%s6695_s20 + $0x1728] sm:$0xff]  ;;  %v1878_v6 = vld [vmem:[%s6695_s20 + $0x1698] sm:$0xff] }
 0x3ed   : > { %4437 = vmatpush1.bf16.msra.mxu1 %v4436_v24  ;;  %4565 = vmatpush1.bf16.msra.mxu0 %v4564_v25  ;;  %v4584_v24 = vpack.c.bf16 %v1537_v15, %v1517_v14  ;;  %v1555_v25 = vld [vmem:[%s6695_s20 + $0xc80] sm:$0xff]  ;;  %v1737_v14 = vld [vmem:[%s6695_s20 + $0x1230] sm:$0xff] }
 0x3ee   : > { %4439 = vmatprep.subr.bf16.mxu1 %v4438_v28  ;;  %4567 = vmatprep.subr.bf16.mxu0 %v4566_v29  ;;  %v4586_v28 = vpack.c.bf16 %v1578_v22, %v1558_v21  ;;  %v1557_v29 = vld [vmem:[%s6695_s20 + $0xc90] sm:$0xff]  ;;  %v4460_v35 = vpack.c.bf16 %v1575_v26, %v1555_v25  ;;  %v1776_v21 = vld [vmem:[%s6695_s20 + $0x1368] sm:$0xff]  ;;  %v1758_v22 = vld [vmem:[%s6695_s20 + $0x12d8] sm:$0xff] }
 0x3ef   : > { %v1755_v25 = vld [vmem:[%s6695_s20 + $0x12c0] sm:$0xff] }
 0x3f0   : > { %v1775_v26 = vld [vmem:[%s6695_s20 + $0x1360] sm:$0xff] }
 0x3f1   : > { %4441 = vmatpush1.bf16.msra.mxu1 %v4440_v36  ;;  %4569 = vmatpush1.bf16.msra.mxu0 %v4568_v37  ;;  %v4588_v36 = vpack.c.bf16 %v1577_v30, %v1557_v29  ;;  %v1595_v37 = vld [vmem:[%s6695_s20 + $0xdc0] sm:$0xff]  ;;  %v1757_v29 = vld [vmem:[%s6695_s20 + $0x12d0] sm:$0xff] }
 0x3f2   : > { %4443 = vmatprep.subr.bf16.mxu1 %v4442_v40  ;;  %4571 = vmatprep.subr.bf16.mxu0 %v4570_v41  ;;  %v4590_v40 = vpack.c.bf16 %v1618_v34, %v1598_v33  ;;  %v1597_v41 = vld [vmem:[%s6695_s20 + $0xdd0] sm:$0xff]  ;;  %v4464_v47 = vpack.c.bf16 %v1615_v38, %v1595_v37  ;;  %v1816_v33 = vld [vmem:[%s6695_s20 + $0x14a8] sm:$0xff]  ;;  %v1798_v34 = vld [vmem:[%s6695_s20 + $0x1418] sm:$0xff] }
 0x3f3   : > { %v1777_v30 = vld [vmem:[%s6695_s20 + $0x1370] sm:$0xff]  ;;  %v6845_v38 = vld [vmem:[#allocation15] sm:$0xf] }
 0x3f4   : > { %v4608_v31 = vpack.c.bf16 %v1777_v30, %v1757_v29  ;;  %v1917_v30 = vld [vmem:[%s6695_s20 + $0x17d0] sm:$0xff] }
 0x3f5   : > { %4445 = vmatpush1.bf16.msra.mxu1 %v4444_v48  ;;  %4573 = vmatpush1.bf16.msra.mxu0 %v4572_v49  ;;  %v4592_v48 = vpack.c.bf16 %v1617_v42, %v1597_v41  ;;  %v1635_v49 = vld [vmem:[%s6695_s20 + $0xf00] sm:$0xff]  ;;  %v996_v41 = vrot.slane %v6845_v38, %v6713_v20 }
 0x3f6   : > { %4447 = vmatprep.subr.bf16.mxu1 %v4446_v52  ;;  %4575 = vmatprep.subr.bf16.mxu0 %v4574_v53  ;;  %v4594_v52 = vpack.c.bf16 %v1658_v46, %v1638_v45  ;;  %v1637_v53 = vld [vmem:[%s6695_s20 + $0xf10] sm:$0xff]  ;;  %v4468_v59 = vpack.c.bf16 %v1655_v50, %v1635_v49  ;;  %v1795_v45 = vld [vmem:[%s6695_s20 + $0x1400] sm:$0xff] }
 0x3f7   : > { %v1815_v49 = vld [vmem:[%s6695_s20 + $0x14a0] sm:$0xff]  ;;  %v1797_v50 = vld [vmem:[%s6695_s20 + $0x1410] sm:$0xff] }
 0x3f9   : > { %4449 = vmatpush1.bf16.msra.mxu1 %v4448_v60  ;;  %4577 = vmatpush1.bf16.msra.mxu0 %v4576_v61  ;;  %v4596_v60 = vpack.c.bf16 %v1657_v54, %v1637_v53  ;;  %v1675_v61 = vld [vmem:[%s6695_s20 + $0x1040] sm:$0xff]  ;;  %v1836_v53 = vld [vmem:[%s6695_s20 + $0x1548] sm:$0xff] }
 0x3fa   : > { %4451 = vmatprep.subr.bf16.mxu1 %v4450_v0  ;;  %4579 = vmatprep.subr.bf16.mxu0 %v4578_v1  ;;  %v4598_v0 = vpack.c.bf16 %v1698_v58, %v1678_v57  ;;  %v1677_v1 = vld [vmem:[%s6695_s20 + $0x1050] sm:$0xff]  ;;  %v4472_v7 = vpack.c.bf16 %v1695_v62, %v1675_v61  ;;  %v1858_v57 = vld [vmem:[%s6695_s20 + $0x15f8] sm:$0xff]  ;;  %v1835_v61 = vld [vmem:[%s6695_s20 + $0x1540] sm:$0xff]  ;;  %v4486_v3 = vpack.c.bf16 %v1856_v55, %v1836_v53 }
 0x3fb   : > { %v1855_v62 = vld [vmem:[%s6695_s20 + $0x15e0] sm:$0xff]  ;;  %v4614_v4 = vpack.c.bf16 %v1858_v57, %v1838_v56  ;;  %v1997_v57 = vld [vmem:[%s6695_s20 + $0x1a50] sm:$0xff] }
 0x3fc   : > { %v1995_v53 = vld [vmem:[%s6695_s20 + $0x1a40] sm:$0xff] }
 0x3fd   : > { %4453 = vmatpush1.bf16.msra.mxu1 %v4452_v8  ;;  %4581 = vmatpush1.bf16.msra.mxu0 %v4580_v9  ;;  %v4600_v8 = vpack.c.bf16 %v1697_v2, %v1677_v1  ;;  %v1715_v9 = vld [vmem:[%s6695_s20 + $0x1180] sm:$0xff]  ;;  %v1857_v1 = vld [vmem:[%s6695_s20 + $0x15f0] sm:$0xff]  ;;  %v1876_v2 = vld [vmem:[%s6695_s20 + $0x1688] sm:$0xff] }
 0x3fe   : > { %4455 = vmatprep.subr.bf16.mxu1 %v4454_v12  ;;  %4583 = vmatprep.subr.bf16.mxu0 %v4582_v13  ;;  %v1735_v12 = vld [vmem:[%s6695_s20 + $0x1220] sm:$0xff]  ;;  %v1717_v13 = vld [vmem:[%s6695_s20 + $0x1190] sm:$0xff] }
 0x3ff   : > { %v4476_v15 = vpack.c.bf16 %v1735_v12, %v1715_v9  ;;  %v4604_v16 = vpack.c.bf16 %v1737_v14, %v1717_v13  ;;  %v4488_v9 = vpack.c.bf16 %v1855_v62, %v1835_v61  ;;  %v1895_v12 = vld [vmem:[%s6695_s20 + $0x1720] sm:$0xff]  ;;  %v4490_v13 = vpack.c.bf16 %v1896_v5, %v1876_v2  ;;  %v2056_v61 = vld [vmem:[%s6695_s20 + $0x1c28] sm:$0xff]  ;;  %v2038_v62 = vld [vmem:[%s6695_s20 + $0x1b98] sm:$0xff] }
 0x401   : > { %4457 = vmatpush1.bf16.msra.mxu1 %v4456_v23  ;;  %4585 = vmatpush1.bf16.msra.mxu0 %v4584_v24  ;;  %v4478_v23 = vpack.c.bf16 %v1776_v21, %v1756_v19  ;;  %v1778_v24 = vld [vmem:[%s6695_s20 + $0x1378] sm:$0xff]  ;;  %v1916_v19 = vld [vmem:[%s6695_s20 + $0x17c8] sm:$0xff] }
 0x402   : > { %4459 = vmatprep.subr.bf16.mxu1 %v4458_v27  ;;  %4587 = vmatprep.subr.bf16.mxu0 %v4586_v28  ;;  %v4606_v27 = vpack.c.bf16 %v1778_v24, %v1758_v22  ;;  %v4480_v28 = vpack.c.bf16 %v1775_v26, %v1755_v25  ;;  %v1936_v21 = vld [vmem:[%s6695_s20 + $0x1868] sm:$0xff]  ;;  %v1918_v22 = vld [vmem:[%s6695_s20 + $0x17d8] sm:$0xff]  ;;  %v1915_v26 = vld [vmem:[%s6695_s20 + $0x17c0] sm:$0xff] }
 0x405   : > { %4461 = vmatpush1.bf16.msra.mxu1 %v4460_v35  ;;  %4589 = vmatpush1.bf16.msra.mxu0 %v4588_v36  ;;  %v4482_v35 = vpack.c.bf16 %v1816_v33, %v1796_v32  ;;  %v1818_v36 = vld [vmem:[%s6695_s20 + $0x14b8] sm:$0xff]  ;;  %v1956_v32 = vld [vmem:[%s6695_s20 + $0x1908] sm:$0xff] }
 0x406   : > { %4463 = vmatprep.subr.bf16.mxu1 %v4462_v39  ;;  %4591 = vmatprep.subr.bf16.mxu0 %v4590_v40  ;;  %v4610_v37 = vpack.c.bf16 %v1818_v36, %v1798_v34  ;;  %v6848_v39 = vsub.s32 3, %v6707_v17  ;;  %v992_v40 = vrot.slane %v6845_v38, %v6710_v18  ;;  %v1976_v33 = vld [vmem:[%s6695_s20 + $0x19a8] sm:$0xff]  ;;  %v1958_v34 = vld [vmem:[%s6695_s20 + $0x1918] sm:$0xff] }
 0x408   : > { %v1004_v42 = vrot.slane %v6845_v38, %v6848_v39 }
 0x409   : > { %4465 = vmatpush1.bf16.msra.mxu1 %v4464_v47  ;;  %4593 = vmatpush1.bf16.msra.mxu0 %v4592_v48 }
 0x40a   : > { %4467 = vmatprep.subr.bf16.mxu1 %v4466_v51  ;;  %4595 = vmatprep.subr.bf16.mxu0 %v4594_v52  ;;  %v1817_v51 = vld [vmem:[%s6695_s20 + $0x14b0] sm:$0xff] }
 0x40d   : > { %4469 = vmatpush1.bf16.msra.mxu1 %v4468_v59  ;;  %4597 = vmatpush1.bf16.msra.mxu0 %v4596_v60  ;;  %v4484_v59 = vpack.c.bf16 %v1815_v49, %v1795_v45  ;;  %v4612_v60 = vpack.c.bf16 %v1817_v51, %v1797_v50  ;;  %v1957_v45 = vld [vmem:[%s6695_s20 + $0x1910] sm:$0xff]  ;;  %v1998_v49 = vld [vmem:[%s6695_s20 + $0x1a58] sm:$0xff] }
 0x40e   : > { %4471 = vmatprep.subr.bf16.mxu1 %v4470_v63  ;;  %4599 = vmatprep.subr.bf16.mxu0 %v4598_v0  ;;  %v1837_v0 = vld [vmem:[%s6695_s20 + $0x1550] sm:$0xff]  ;;  %v2018_v50 = vld [vmem:[%s6695_s20 + $0x1af8] sm:$0xff] }
 0x40f   : > { %v4630_v56 = vpack.c.bf16 %v2018_v50, %v1998_v49  ;;  %v2157_v50 = vld [vmem:[%s6695_s20 + $0x1f50] sm:$0xff] }
 0x411   : > { %4473 = vmatpush1.bf16.msra.mxu1 %v4472_v7  ;;  %4601 = vmatpush1.bf16.msra.mxu0 %v4600_v8  ;;  %v1898_v7 = vld [vmem:[%s6695_s20 + $0x1738] sm:$0xff] }
 0x412   : > { %4475 = vmatprep.subr.bf16.mxu1 %v4474_v10  ;;  %4603 = vmatprep.subr.bf16.mxu0 %v4602_v11  ;;  %v4616_v10 = vpack.c.bf16 %v1857_v1, %v1837_v0  ;;  %v1875_v11 = vld [vmem:[%s6695_s20 + $0x1680] sm:$0xff]  ;;  %v4618_v14 = vpack.c.bf16 %v1898_v7, %v1878_v6  ;;  %v2058_v0 = vld [vmem:[%s6695_s20 + $0x1c38] sm:$0xff]  ;;  %v2037_v7 = vld [vmem:[%s6695_s20 + $0x1b90] sm:$0xff] }
 0x413   : > { %v4492_v24 = vpack.c.bf16 %v1895_v12, %v1875_v11  ;;  %v4634_v6 = vpack.c.bf16 %v2058_v0, %v2038_v62  ;;  %v2096_v11 = vld [vmem:[%s6695_s20 + $0x1d68] sm:$0xff]  ;;  %v2078_v12 = vld [vmem:[%s6695_s20 + $0x1cd8] sm:$0xff]  ;;  %v2197_v0 = vld [vmem:[%s6695_s20 + $0x2090] sm:$0xff] }
 0x415   : > { %4477 = vmatpush1.bf16.msra.mxu1 %v4476_v15  ;;  %4605 = vmatpush1.bf16.msra.mxu0 %v4604_v16  ;;  %v1877_v15 = vld [vmem:[%s6695_s20 + $0x1690] sm:$0xff] }
 0x416   : > { %4479 = vmatprep.subr.bf16.mxu1 %v4478_v23  ;;  %4607 = vmatprep.subr.bf16.mxu0 %v4606_v27  ;;  %v1897_v16 = vld [vmem:[%s6695_s20 + $0x1730] sm:$0xff]  ;;  %v1938_v23 = vld [vmem:[%s6695_s20 + $0x1878] sm:$0xff]  ;;  %v1935_v27 = vld [vmem:[%s6695_s20 + $0x1860] sm:$0xff] }
 0x417   : > { %v4620_v25 = vpack.c.bf16 %v1897_v16, %v1877_v15  ;;  %v4622_v29 = vpack.c.bf16 %v1938_v23, %v1918_v22  ;;  %v4496_v36 = vpack.c.bf16 %v1935_v27, %v1915_v26  ;;  %v2075_v16 = vld [vmem:[%s6695_s20 + $0x1cc0] sm:$0xff]  ;;  %v2077_v23 = vld [vmem:[%s6695_s20 + $0x1cd0] sm:$0xff]  ;;  %v2136_v26 = vld [vmem:[%s6695_s20 + $0x1ea8] sm:$0xff] }
 0x418   : > { %v2118_v27 = vld [vmem:[%s6695_s20 + $0x1e18] sm:$0xff] }
 0x419   : > { %4481 = vmatpush1.bf16.msra.mxu1 %v4480_v28  ;;  %4609 = vmatpush1.bf16.msra.mxu0 %v4608_v31  ;;  %v4494_v28 = vpack.c.bf16 %v1936_v21, %v1916_v19  ;;  %v1937_v31 = vld [vmem:[%s6695_s20 + $0x1870] sm:$0xff]  ;;  %v2095_v19 = vld [vmem:[%s6695_s20 + $0x1d60] sm:$0xff] }
 0x41a   : > { %4483 = vmatprep.subr.bf16.mxu1 %v4482_v35  ;;  %4611 = vmatprep.subr.bf16.mxu0 %v4610_v37  ;;  %v1978_v35 = vld [vmem:[%s6695_s20 + $0x19b8] sm:$0xff]  ;;  %v4624_v37 = vpack.c.bf16 %v1937_v31, %v1917_v30  ;;  %v2115_v31 = vld [vmem:[%s6695_s20 + $0x1e00] sm:$0xff] }
 0x4af   : > { %v1075_v43 = vpop.f32.mrb[4].mxu1  ;;  %v6856_v44 = vpop.f32.mrb[2].mxu0 }
 0x4b0   : > { %v1076_v46 = vadd.f32 %v1075_v43, %v992_v40  ;;  %v1077_v47 = vpop.f32.mrb[5].mxu1  ;;  %v1148_v48 = vpop.f32.mrb[3].mxu0  ;;  %v1955_v40 = vld [vmem:[%s6695_s20 + $0x1900] sm:$0xff]  ;;  %v4626_v43 = vpack.c.bf16 %v1978_v35, %v1958_v34  ;;  %v2117_v35 = vld [vmem:[%s6695_s20 + $0x1e10] sm:$0xff] }
 0x4b1   : > { %v1078_v52 = vadd.f32 %v1077_v47, %v996_v41  ;;  %v1149_v54 = vadd.f32 %v1148_v48, %v1004_v42  ;;  %v1975_v41 = vld [vmem:[%s6695_s20 + $0x19a0] sm:$0xff]  ;;  %v4498_v42 = vpack.c.bf16 %v1976_v33, %v1956_v32  ;;  %v1996_v47 = vld [vmem:[%s6695_s20 + $0x1a48] sm:$0xff] }
 0x4b2   : > { %v6870_v63 = vmax.f32 %v1076_v46, 0.0  ;;  %v1977_v46 = vld [vmem:[%s6695_s20 + $0x19b0] sm:$0xff]  ;;  %v2016_v48 = vld [vmem:[%s6695_s20 + $0x1ae8] sm:$0xff]  ;;  %v4500_v51 = vpack.c.bf16 %v1975_v41, %v1955_v40  ;;  %v2135_v32 = vld [vmem:[%s6695_s20 + $0x1ea0] sm:$0xff] }
 0x4b3   : > { %v6866_v58 = vmax.f32 %v1078_v52, 0.0  ;;  %v6880_v8 = vmax.f32 %v1149_v54, 0.0  ;;  %v4628_v52 = vpack.c.bf16 %v1977_v46, %v1957_v45  ;;  %v2015_v54 = vld [vmem:[%s6695_s20 + $0x1ae0] sm:$0xff]  ;;  %v4502_v55 = vpack.c.bf16 %v2016_v48, %v1996_v47  ;;  %v2176_v40 = vld [vmem:[%s6695_s20 + $0x1fe8] sm:$0xff]  ;;  %v2158_v41 = vld [vmem:[%s6695_s20 + $0x1f58] sm:$0xff] }
 0x4b4   : > { %v4504_v1 = vpack.c.bf16 %v2015_v54, %v1995_v53  ;;  %v2155_v46 = vld [vmem:[%s6695_s20 + $0x1f40] sm:$0xff]  ;;  %v2216_v53 = vld [vmem:[%s6695_s20 + $0x2128] sm:$0xff]  ;;  %v2198_v54 = vld [vmem:[%s6695_s20 + $0x2098] sm:$0xff] }
 0x4b5   : > { %2605 = vmatprep.mubr.f32.mxu1 %v6866_v58  ;;  %2747 = vmatprep.mubr.f32.mxu0 %v6866_v58  ;;  %v2175_v47 = vld [vmem:[%s6695_s20 + $0x1fe0] sm:$0xff] }
 0x4b6   : > { %2606 = vmatmul.mubr.f32.vlgmr.msra.gmra.mrb[6].mxu1 %v6870_v63  ;;  %2748 = vmatmul.mubr.f32.vlgmr.msra.gmra.mrb[4].mxu0 %v6870_v63 }
 0x4b7   : > { %4485 = vmatpush1.bf16.msra.mxu1 %v4484_v59  ;;  %4613 = vmatpush1.bf16.msra.mxu0 %v4612_v60  ;;  %v2017_v59 = vld [vmem:[%s6695_s20 + $0x1af0] sm:$0xff]  ;;  %v2036_v60 = vld [vmem:[%s6695_s20 + $0x1b88] sm:$0xff] }
 0x4b8   : > { %2676 = vmatprep.mubr.f32.mxu1 %v6880_v8  ;;  %2818 = vmatprep.mubr.f32.mxu0 %v6880_v8  ;;  %v4632_v2 = vpack.c.bf16 %v2017_v59, %v1997_v57  ;;  %v4506_v5 = vpack.c.bf16 %v2056_v61, %v2036_v60  ;;  %v2195_v59 = vld [vmem:[%s6695_s20 + $0x2080] sm:$0xff] }
 0x4b9   : > { %4487 = vmatprep.subr.bf16.mxu1 %v4486_v3  ;;  %4615 = vmatprep.subr.bf16.mxu0 %v4614_v4  ;;  %v2035_v3 = vld [vmem:[%s6695_s20 + $0x1b80] sm:$0xff] }
 0x4ba   : > { %v2055_v4 = vld [vmem:[%s6695_s20 + $0x1c20] sm:$0xff] }
 0x4bb   : > { %4489 = vmatpush1.bf16.msra.mxu1 %v4488_v9  ;;  %4617 = vmatpush1.bf16.msra.mxu0 %v4616_v10  ;;  %v2057_v9 = vld [vmem:[%s6695_s20 + $0x1c30] sm:$0xff]  ;;  %v2076_v10 = vld [vmem:[%s6695_s20 + $0x1cc8] sm:$0xff]  ;;  %v2215_v60 = vld [vmem:[%s6695_s20 + $0x2120] sm:$0xff] }
 0x4bc   : > { %4491 = vmatprep.subr.bf16.mxu1 %v4490_v13  ;;  %4619 = vmatprep.subr.bf16.mxu0 %v4618_v14  ;;  %v2098_v13 = vld [vmem:[%s6695_s20 + $0x1d78] sm:$0xff]  ;;  %v4508_v14 = vpack.c.bf16 %v2055_v4, %v2035_v3  ;;  %v4636_v15 = vpack.c.bf16 %v2057_v9, %v2037_v7  ;;  %v4510_v21 = vpack.c.bf16 %v2096_v11, %v2076_v10  ;;  %v2256_v3 = vld [vmem:[%s6695_s20 + $0x2268] sm:$0xff]  ;;  %v2235_v9 = vld [vmem:[%s6695_s20 + $0x21c0] sm:$0xff] }
 0x4bd   : > { %v4638_v22 = vpack.c.bf16 %v2098_v13, %v2078_v12  ;;  %v2238_v4 = vld [vmem:[%s6695_s20 + $0x21d8] sm:$0xff]  ;;  %v2255_v10 = vld [vmem:[%s6695_s20 + $0x2260] sm:$0xff]  ;;  %v2237_v13 = vld [vmem:[%s6695_s20 + $0x21d0] sm:$0xff] }
 0x4bf   : > { %4493 = vmatpush1.bf16.msra.mxu1 %v4492_v24  ;;  %4621 = vmatpush1.bf16.msra.mxu0 %v4620_v25  ;;  %v2097_v24 = vld [vmem:[%s6695_s20 + $0x1d70] sm:$0xff]  ;;  %v2116_v25 = vld [vmem:[%s6695_s20 + $0x1e08] sm:$0xff] }
 0x4c0   : > { %4495 = vmatprep.subr.bf16.mxu1 %v4494_v28  ;;  %4623 = vmatprep.subr.bf16.mxu0 %v4622_v29  ;;  %v2138_v28 = vld [vmem:[%s6695_s20 + $0x1eb8] sm:$0xff]  ;;  %v4512_v29 = vpack.c.bf16 %v2095_v19, %v2075_v16  ;;  %v4640_v30 = vpack.c.bf16 %v2097_v24, %v2077_v23  ;;  %v4514_v33 = vpack.c.bf16 %v2136_v26, %v2116_v25  ;;  %v2296_v16 = vld [vmem:[%s6695_s20 + $0x23a8] sm:$0xff]  ;;  %v2275_v24 = vld [vmem:[%s6695_s20 + $0x2300] sm:$0xff] }
 0x4c1   : > { %v4642_v34 = vpack.c.bf16 %v2138_v28, %v2118_v27  ;;  %v2278_v19 = vld [vmem:[%s6695_s20 + $0x2318] sm:$0xff]  ;;  %v2295_v25 = vld [vmem:[%s6695_s20 + $0x23a0] sm:$0xff]  ;;  %v2277_v28 = vld [vmem:[%s6695_s20 + $0x2310] sm:$0xff] }
 0x4c3   : > { %4497 = vmatpush1.bf16.msra.mxu1 %v4496_v36  ;;  %4625 = vmatpush1.bf16.msra.mxu0 %v4624_v37  ;;  %v2137_v36 = vld [vmem:[%s6695_s20 + $0x1eb0] sm:$0xff]  ;;  %v2156_v37 = vld [vmem:[%s6695_s20 + $0x1f48] sm:$0xff] }
 0x4c4   : > { %4499 = vmatprep.subr.bf16.mxu1 %v4498_v42  ;;  %4627 = vmatprep.subr.bf16.mxu0 %v4626_v43  ;;  %v2178_v42 = vld [vmem:[%s6695_s20 + $0x1ff8] sm:$0xff]  ;;  %v4516_v43 = vpack.c.bf16 %v2135_v32, %v2115_v31  ;;  %v4644_v45 = vpack.c.bf16 %v2137_v36, %v2117_v35  ;;  %v4518_v48 = vpack.c.bf16 %v2176_v40, %v2156_v37  ;;  %v2336_v31 = vld [vmem:[%s6695_s20 + $0x24e8] sm:$0xff]  ;;  %v2315_v36 = vld [vmem:[%s6695_s20 + $0x2440] sm:$0xff] }
 0x4c5   : > { %v4646_v49 = vpack.c.bf16 %v2178_v42, %v2158_v41  ;;  %v2318_v32 = vld [vmem:[%s6695_s20 + $0x2458] sm:$0xff]  ;;  %v2335_v37 = vld [vmem:[%s6695_s20 + $0x24e0] sm:$0xff]  ;;  %v2317_v42 = vld [vmem:[%s6695_s20 + $0x2450] sm:$0xff] }
 0x4c7   : > { %4501 = vmatpush1.bf16.msra.mxu1 %v4500_v51  ;;  %4629 = vmatpush1.bf16.msra.mxu0 %v4628_v52  ;;  %v2177_v51 = vld [vmem:[%s6695_s20 + $0x1ff0] sm:$0xff]  ;;  %v2196_v52 = vld [vmem:[%s6695_s20 + $0x2088] sm:$0xff] }
 0x4c8   : > { %4503 = vmatprep.subr.bf16.mxu1 %v4502_v55  ;;  %4631 = vmatprep.subr.bf16.mxu0 %v4630_v56  ;;  %v2218_v55 = vld [vmem:[%s6695_s20 + $0x2138] sm:$0xff]  ;;  %v4520_v56 = vpack.c.bf16 %v2175_v47, %v2155_v46  ;;  %v4648_v57 = vpack.c.bf16 %v2177_v51, %v2157_v50  ;;  %v4522_v61 = vpack.c.bf16 %v2216_v53, %v2196_v52  ;;  %v2376_v46 = vld [vmem:[%s6695_s20 + $0x2628] sm:$0xff]  ;;  %v2355_v51 = vld [vmem:[%s6695_s20 + $0x2580] sm:$0xff]  ;;  %v6985_v53 = vsub.s32 2, %v6707_v17 }
 0x4c9   : > { %v4650_v62 = vpack.c.bf16 %v2218_v55, %v2198_v54  ;;  %v2358_v47 = vld [vmem:[%s6695_s20 + $0x2598] sm:$0xff]  ;;  %v2375_v52 = vld [vmem:[%s6695_s20 + $0x2620] sm:$0xff] }
 0x4cb   : > { %4505 = vmatpush1.bf16.msra.mxu1 %v4504_v1  ;;  %4633 = vmatpush1.bf16.msra.mxu0 %v4632_v2  ;;  %v2217_v1 = vld [vmem:[%s6695_s20 + $0x2130] sm:$0xff]  ;;  %v2236_v2 = vld [vmem:[%s6695_s20 + $0x21c8] sm:$0xff] }
 0x4cc   : > { %4507 = vmatprep.subr.bf16.mxu1 %v4506_v5  ;;  %4635 = vmatprep.subr.bf16.mxu0 %v4634_v6  ;;  %v2258_v5 = vld [vmem:[%s6695_s20 + $0x2278] sm:$0xff]  ;;  %v4524_v6 = vpack.c.bf16 %v2215_v60, %v2195_v59  ;;  %v4652_v7 = vpack.c.bf16 %v2217_v1, %v2197_v0  ;;  %v4526_v11 = vpack.c.bf16 %v2256_v3, %v2236_v2  ;;  %v2396_v59 = vld [vmem:[%s6695_s20 + $0x26c8] sm:$0xff]  ;;  %v2395_v2 = vld [vmem:[%s6695_s20 + $0x26c0] sm:$0xff] }
 0x4cd   : > { %v4654_v12 = vpack.c.bf16 %v2258_v5, %v2238_v4  ;;  %v2416_v60 = vld [vmem:[%s6695_s20 + $0x2768] sm:$0xff]  ;;  %v4540_v0 = vpack.c.bf16 %v2375_v52, %v2355_v51  ;;  %v2415_v3 = vld [vmem:[%s6695_s20 + $0x2760] sm:$0xff]  ;;  %v1000_v4 = vrot.slane %v6845_v38, %v6985_v53  ;;  %v1261_v51 = vld [vmem:[%s6695_s20 + $0x350] sm:$0xff] }
 0x4ce   : > { %v4542_v5 = vpack.c.bf16 %v2416_v60, %v2396_v59  ;;  %v4544_v38 = vpack.c.bf16 %v2415_v3, %v2395_v2  ;;  %v1280_v52 = vld [vmem:[%s6695_s20 + $0x3e8] sm:$0xff]  ;;  %v1301_v2 = vld [vmem:[%s6695_s20 + $0x490] sm:$0xff] }
 0x4cf   : > { %4509 = vmatpush1.bf16.msra.mxu1 %v4508_v14  ;;  %4637 = vmatpush1.bf16.msra.mxu0 %v4636_v15  ;;  %v2257_v14 = vld [vmem:[%s6695_s20 + $0x2270] sm:$0xff]  ;;  %v2276_v15 = vld [vmem:[%s6695_s20 + $0x2308] sm:$0xff] }
 0x4d0   : > { %4511 = vmatprep.subr.bf16.mxu1 %v4510_v21  ;;  %4639 = vmatprep.subr.bf16.mxu0 %v4638_v22  ;;  %v2298_v21 = vld [vmem:[%s6695_s20 + $0x23b8] sm:$0xff]  ;;  %v4528_v22 = vpack.c.bf16 %v2255_v10, %v2235_v9  ;;  %v4656_v23 = vpack.c.bf16 %v2257_v14, %v2237_v13  ;;  %v4530_v26 = vpack.c.bf16 %v2296_v16, %v2276_v15  ;;  %v2417_v9 = vld [vmem:[%s6695_s20 + $0x2770] sm:$0xff]  ;;  %v1160_v10 = vld [vmem:[%s6695_s20 + $0x28] sm:$0xff] }
 0x4d1   : > { %v4658_v27 = vpack.c.bf16 %v2298_v21, %v2278_v19  ;;  %v1182_v13 = vld [vmem:[%s6695_s20 + $0xd8] sm:$0xff]  ;;  %v1147_v15 = vadd.f32 %v6856_v44, %v1000_v4  ;;  %v1159_v21 = vld [vmem:[%s6695_s20 + $0x20] sm:$0xff]  ;;  %v1320_v3 = vld [vmem:[%s6695_s20 + $0x528] sm:$0xff] }
 0x4d2   : > { %v1340_v4 = vld [vmem:[%s6695_s20 + $0x5c8] sm:$0xff] }
 0x4d3   : > { %4513 = vmatpush1.bf16.msra.mxu1 %v4512_v29  ;;  %4641 = vmatpush1.bf16.msra.mxu0 %v4640_v30  ;;  %v2297_v29 = vld [vmem:[%s6695_s20 + $0x23b0] sm:$0xff]  ;;  %v2316_v30 = vld [vmem:[%s6695_s20 + $0x2448] sm:$0xff] }
 0x4d4   : > { %4515 = vmatprep.subr.bf16.mxu1 %v4514_v33  ;;  %4643 = vmatprep.subr.bf16.mxu0 %v4642_v34  ;;  %v2338_v33 = vld [vmem:[%s6695_s20 + $0x24f8] sm:$0xff]  ;;  %v4532_v34 = vpack.c.bf16 %v2295_v25, %v2275_v24  ;;  %v4660_v35 = vpack.c.bf16 %v2297_v29, %v2277_v28  ;;  %v4534_v40 = vpack.c.bf16 %v2336_v31, %v2316_v30  ;;  %v1181_v24 = vld [vmem:[%s6695_s20 + $0xd0] sm:$0xff]  ;;  %v1200_v25 = vld [vmem:[%s6695_s20 + $0x168] sm:$0xff]  ;;  %v7012_v29 = vmax.f32 %v1147_v15, 0.0 }
 0x4d5   : > { %v4662_v41 = vpack.c.bf16 %v2338_v33, %v2318_v32  ;;  %v1222_v28 = vld [vmem:[%s6695_s20 + $0x218] sm:$0xff]  ;;  %v1199_v31 = vld [vmem:[%s6695_s20 + $0x160] sm:$0xff]  ;;  %v1201_v33 = vld [vmem:[%s6695_s20 + $0x170] sm:$0xff] }
 0x4d6   : > { %v1219_v32 = vld [vmem:[%s6695_s20 + $0x200] sm:$0xff]  ;;  %v1360_v15 = vld [vmem:[%s6695_s20 + $0x668] sm:$0xff] }
 0x4d7   : > { %4517 = vmatpush1.bf16.msra.mxu1 %v4516_v43  ;;  %4645 = vmatpush1.bf16.msra.mxu0 %v4644_v45  ;;  %v2337_v43 = vld [vmem:[%s6695_s20 + $0x24f0] sm:$0xff]  ;;  %v2356_v45 = vld [vmem:[%s6695_s20 + $0x2588] sm:$0xff] }
 0x4d8   : > { %4519 = vmatprep.subr.bf16.mxu1 %v4518_v48  ;;  %4647 = vmatprep.subr.bf16.mxu0 %v4646_v49  ;;  %v2378_v48 = vld [vmem:[%s6695_s20 + $0x2638] sm:$0xff]  ;;  %v4536_v49 = vpack.c.bf16 %v2335_v37, %v2315_v36  ;;  %v4664_v50 = vpack.c.bf16 %v2337_v43, %v2317_v42  ;;  %v4538_v54 = vpack.c.bf16 %v2376_v46, %v2356_v45  ;;  %v1221_v36 = vld [vmem:[%s6695_s20 + $0x210] sm:$0xff]  ;;  %v1240_v37 = vld [vmem:[%s6695_s20 + $0x2a8] sm:$0xff] }
 0x4d9   : > { %v4666_v55 = vpack.c.bf16 %v2378_v48, %v2358_v47  ;;  %v1262_v42 = vld [vmem:[%s6695_s20 + $0x358] sm:$0xff]  ;;  %v4680_v43 = vpack.c.bf16 %v1219_v32, %v1199_v31  ;;  %v4808_v45 = vpack.c.bf16 %v1221_v36, %v1201_v33  ;;  %v1239_v47 = vld [vmem:[%s6695_s20 + $0x2a0] sm:$0xff]  ;;  %v1420_v31 = vld [vmem:[%s6695_s20 + $0x848] sm:$0xff] }
 0x4da   : > { %v1259_v48 = vld [vmem:[%s6695_s20 + $0x340] sm:$0xff]  ;;  %v1402_v32 = vld [vmem:[%s6695_s20 + $0x7b8] sm:$0xff] }
 0x4db   : > { %4521 = vmatpush1.bf16.msra.mxu1 %v4520_v56  ;;  %4649 = vmatpush1.bf16.msra.mxu0 %v4648_v57  ;;  %v2357_v56 = vld [vmem:[%s6695_s20 + $0x2590] sm:$0xff]  ;;  %v1422_v33 = vld [vmem:[%s6695_s20 + $0x858] sm:$0xff] }
 0x4dc   : > { %4523 = vmatprep.subr.bf16.mxu1 %v4522_v61  ;;  %4651 = vmatprep.subr.bf16.mxu0 %v4650_v62  ;;  %v2377_v57 = vld [vmem:[%s6695_s20 + $0x2630] sm:$0xff]  ;;  %v2398_v61 = vld [vmem:[%s6695_s20 + $0x26d8] sm:$0xff] }
 0x4dd   : > { %v2418_v62 = vld [vmem:[%s6695_s20 + $0x2778] sm:$0xff]  ;;  %v4668_v1 = vpack.c.bf16 %v2377_v57, %v2357_v56  ;;  %v4684_v57 = vpack.c.bf16 %v1259_v48, %v1239_v47 }
 0x4de   : > { %v1302_v56 = vld [vmem:[%s6695_s20 + $0x498] sm:$0xff] }
 0x4df   : > { %4525 = vmatpush1.bf16.msra.mxu1 %v4524_v6  ;;  %4653 = vmatpush1.bf16.msra.mxu0 %v4652_v7  ;;  %v4670_v6 = vpack.c.bf16 %v2418_v62, %v2398_v61  ;;  %v2397_v7 = vld [vmem:[%s6695_s20 + $0x26d0] sm:$0xff]  ;;  %v1279_v61 = vld [vmem:[%s6695_s20 + $0x3e0] sm:$0xff]  ;;  %v1442_v47 = vld [vmem:[%s6695_s20 + $0x8f8] sm:$0xff] }
 0x4e0   : > { %4527 = vmatprep.subr.bf16.mxu1 %v4526_v11  ;;  %4655 = vmatprep.subr.bf16.mxu0 %v4654_v12  ;;  %v1180_v11 = vld [vmem:[%s6695_s20 + $0xc8] sm:$0xff]  ;;  %v1162_v12 = vld [vmem:[%s6695_s20 + $0x38] sm:$0xff]  ;;  %v4672_v14 = vpack.c.bf16 %v2417_v9, %v2397_v7  ;;  %v1299_v62 = vld [vmem:[%s6695_s20 + $0x480] sm:$0xff] }
 0x4e1   : > { %v4674_v16 = vpack.c.bf16 %v1180_v11, %v1160_v10  ;;  %v4802_v19 = vpack.c.bf16 %v1182_v13, %v1162_v12  ;;  %v4688_v7 = vpack.c.bf16 %v1299_v62, %v1279_v61  ;;  %v4690_v10 = vpack.c.bf16 %v1340_v4, %v1320_v3  ;;  %v1319_v11 = vld [vmem:[%s6695_s20 + $0x520] sm:$0xff]  ;;  %v1321_v13 = vld [vmem:[%s6695_s20 + $0x530] sm:$0xff]  ;;  %v1462_v48 = vld [vmem:[%s6695_s20 + $0x998] sm:$0xff] }
 0x4e2   : > { %v1339_v12 = vld [vmem:[%s6695_s20 + $0x5c0] sm:$0xff]  ;;  %v1482_v61 = vld [vmem:[%s6695_s20 + $0xa38] sm:$0xff] }
 0x4e3   : > { %4529 = vmatpush1.bf16.msra.mxu1 %v4528_v22  ;;  %4657 = vmatpush1.bf16.msra.mxu0 %v4656_v23  ;;  %v1179_v22 = vld [vmem:[%s6695_s20 + $0xc0] sm:$0xff]  ;;  %v1161_v23 = vld [vmem:[%s6695_s20 + $0x30] sm:$0xff]  ;;  %v1502_v62 = vld [vmem:[%s6695_s20 + $0xad8] sm:$0xff] }
 0x4e4   : > { %4531 = vmatprep.subr.bf16.mxu1 %v4530_v26  ;;  %4659 = vmatprep.subr.bf16.mxu0 %v4658_v27  ;;  %v1220_v26 = vld [vmem:[%s6695_s20 + $0x208] sm:$0xff]  ;;  %v1202_v27 = vld [vmem:[%s6695_s20 + $0x178] sm:$0xff]  ;;  %v4676_v44 = vpack.c.bf16 %v1179_v22, %v1159_v21  ;;  %v4804_v30 = vpack.c.bf16 %v1181_v24, %v1161_v23  ;;  %v4692_v22 = vpack.c.bf16 %v1339_v12, %v1319_v11  ;;  %v1479_v3 = vld [vmem:[%s6695_s20 + $0xa20] sm:$0xff] }
 0x4e5   : > { %v1382_v21 = vld [vmem:[%s6695_s20 + $0x718] sm:$0xff]  ;;  %v1499_v4 = vld [vmem:[%s6695_s20 + $0xac0] sm:$0xff] }
 0x4e6   : > { %v1522_v11 = vld [vmem:[%s6695_s20 + $0xb78] sm:$0xff] }
 0x4e7   : > { %4533 = vmatpush1.bf16.msra.mxu1 %v4532_v34  ;;  %4661 = vmatpush1.bf16.msra.mxu0 %v4660_v35  ;;  %v4678_v34 = vpack.c.bf16 %v1220_v26, %v1200_v25  ;;  %v4806_v35 = vpack.c.bf16 %v1222_v28, %v1202_v27  ;;  %v1359_v25 = vld [vmem:[%s6695_s20 + $0x660] sm:$0xff]  ;;  %v1361_v27 = vld [vmem:[%s6695_s20 + $0x670] sm:$0xff]  ;;  %v1542_v12 = vld [vmem:[%s6695_s20 + $0xc18] sm:$0xff] }
 0x4e8   : > { %4535 = vmatprep.subr.bf16.mxu1 %v4534_v40  ;;  %4663 = vmatprep.subr.bf16.mxu0 %v4662_v41  ;;  %v1260_v40 = vld [vmem:[%s6695_s20 + $0x348] sm:$0xff]  ;;  %v1242_v41 = vld [vmem:[%s6695_s20 + $0x2b8] sm:$0xff]  ;;  %v1379_v26 = vld [vmem:[%s6695_s20 + $0x700] sm:$0xff] }
 0x4e9   : > { %v4682_v46 = vpack.c.bf16 %v1260_v40, %v1240_v37  ;;  %v1399_v37 = vld [vmem:[%s6695_s20 + $0x7a0] sm:$0xff] }
 0x4ea   : > { %v1419_v40 = vld [vmem:[%s6695_s20 + $0x840] sm:$0xff] }
 0x4eb   : > { %4537 = vmatpush1.bf16.msra.mxu1 %v4536_v49  ;;  %4665 = vmatpush1.bf16.msra.mxu0 %v4664_v50  ;;  %v1241_v49 = vld [vmem:[%s6695_s20 + $0x2b0] sm:$0xff]  ;;  %v4810_v50 = vpack.c.bf16 %v1262_v42, %v1242_v41  ;;  %v4826_v42 = vpack.c.bf16 %v1422_v33, %v1402_v32 }
 0x4ec   : > { %4539 = vmatprep.subr.bf16.mxu1 %v4538_v54  ;;  %4667 = vmatprep.subr.bf16.mxu0 %v4666_v55  ;;  %v1300_v54 = vld [vmem:[%s6695_s20 + $0x488] sm:$0xff]  ;;  %v1282_v55 = vld [vmem:[%s6695_s20 + $0x3f8] sm:$0xff]  ;;  %v4812_v59 = vpack.c.bf16 %v1261_v51, %v1241_v49  ;;  %v1401_v41 = vld [vmem:[%s6695_s20 + $0x7b0] sm:$0xff]  ;;  %v4700_v49 = vpack.c.bf16 %v1419_v40, %v1399_v37 }
 0x4ed   : > { %v4686_v60 = vpack.c.bf16 %v1300_v54, %v1280_v52  ;;  %v1439_v52 = vld [vmem:[%s6695_s20 + $0x8e0] sm:$0xff]  ;;  %v1561_v32 = vld [vmem:[%s6695_s20 + $0xcb0] sm:$0xff]  ;;  %v1602_v37 = vld [vmem:[%s6695_s20 + $0xdf8] sm:$0xff] }
 0x4ee   : > { %v1459_v54 = vld [vmem:[%s6695_s20 + $0x980] sm:$0xff]  ;;  %v1622_v40 = vld [vmem:[%s6695_s20 + $0xe98] sm:$0xff] }
 0x4ef   : > { %4541 = vmatpush1.bf16.msra.mxu1 %v4540_v0  ;;  %4669 = vmatpush1.bf16.msra.mxu0 %v4668_v1  ;;  %v1281_v0 = vld [vmem:[%s6695_s20 + $0x3f0] sm:$0xff]  ;;  %v4814_v1 = vpack.c.bf16 %v1302_v56, %v1282_v55  ;;  %v4830_v56 = vpack.c.bf16 %v1462_v48, %v1442_v47  ;;  %v4846_v48 = vpack.c.bf16 %v1622_v40, %v1602_v37 }
 0x4f0   : > { %4543 = vmatprep.subr.bf16.mxu1 %v4542_v5  ;;  %4671 = vmatprep.subr.bf16.mxu0 %v4670_v6  ;;  %v1322_v5 = vld [vmem:[%s6695_s20 + $0x538] sm:$0xff]  ;;  %v4816_v9 = vpack.c.bf16 %v1301_v2, %v1281_v0  ;;  %v1441_v55 = vld [vmem:[%s6695_s20 + $0x8f0] sm:$0xff]  ;;  %v4704_v0 = vpack.c.bf16 %v1459_v54, %v1439_v52 }
 0x4f1   : > { %v1342_v6 = vld [vmem:[%s6695_s20 + $0x5d8] sm:$0xff]  ;;  %v1601_v47 = vld [vmem:[%s6695_s20 + $0xdf0] sm:$0xff] }
 0x4f2   : > { %v1642_v52 = vld [vmem:[%s6695_s20 + $0xf38] sm:$0xff]  ;;  %v1761_v37 = vld [vmem:[%s6695_s20 + $0x12f0] sm:$0xff] }
 0x4f3   : > { %4545 = vmatpush1.bf16.msra.mxu1 %v4544_v38  ;;  %4673 = vmatpush1.bf16.msra.mxu0 %v4672_v14  ;;  %v4818_v38 = vpack.c.bf16 %v1342_v6, %v1322_v5  ;;  %v1341_v14 = vld [vmem:[%s6695_s20 + $0x5d0] sm:$0xff]  ;;  %v4834_v6 = vpack.c.bf16 %v1502_v62, %v1482_v61  ;;  %v1662_v54 = vld [vmem:[%s6695_s20 + $0xfd8] sm:$0xff] }
 0x4f4   : > { %4675 = vmatprep.subr.bf16.mxu1 %v4674_v16  ;;  %4803 = vmatprep.subr.bf16.mxu0 %v4802_v19  ;;  %v1380_v16 = vld [vmem:[%s6695_s20 + $0x708] sm:$0xff]  ;;  %v1362_v19 = vld [vmem:[%s6695_s20 + $0x678] sm:$0xff]  ;;  %v4820_v23 = vpack.c.bf16 %v1341_v14, %v1321_v13  ;;  %v1481_v5 = vld [vmem:[%s6695_s20 + $0xa30] sm:$0xff]  ;;  %v4708_v13 = vpack.c.bf16 %v1499_v4, %v1479_v3  ;;  %v4850_v62 = vpack.c.bf16 %v1662_v54, %v1642_v52 }
 0x4f5   : > { %v4694_v24 = vpack.c.bf16 %v1380_v16, %v1360_v15  ;;  %v4822_v28 = vpack.c.bf16 %v1382_v21, %v1362_v19  ;;  %v1519_v15 = vld [vmem:[%s6695_s20 + $0xb60] sm:$0xff]  ;;  %v1521_v19 = vld [vmem:[%s6695_s20 + $0xb70] sm:$0xff]  ;;  %v4838_v21 = vpack.c.bf16 %v1542_v12, %v1522_v11  ;;  %v1682_v3 = vld [vmem:[%s6695_s20 + $0x1078] sm:$0xff] }
 0x4f6   : > { %2677 = vmatmul.mubr.f32.vlgmr.msra.gmra.mrb[6].mxu1 %v7012_v29  ;;  %2819 = vmatmul.mubr.f32.vlgmr.msra.gmra.mrb[4].mxu0 %v7012_v29  ;;  %v1539_v16 = vld [vmem:[%s6695_s20 + $0xc00] sm:$0xff]  ;;  %v1641_v61 = vld [vmem:[%s6695_s20 + $0xf30] sm:$0xff]  ;;  %v1702_v4 = vld [vmem:[%s6695_s20 + $0x1118] sm:$0xff] }
 0x4f7   : > { %4677 = vmatpush1.bf16.msra.mxu1 %v4676_v44  ;;  %2889 = vmatprep.mubr.f32.mxu1 %v6866_v58  ;;  %v1381_v44 = vld [vmem:[%s6695_s20 + $0x710] sm:$0xff]  ;;  %v4854_v12 = vpack.c.bf16 %v1702_v4, %v1682_v3 }
 0x4f8   : > { %4805 = vmatpush1.bf16.msra.mxu0 %v4804_v30  ;;  %3031 = vmatprep.mubr.f32.mxu0 %v6866_v58  ;;  %v1400_v30 = vld [vmem:[%s6695_s20 + $0x7a8] sm:$0xff]  ;;  %v1681_v11 = vld [vmem:[%s6695_s20 + $0x1070] sm:$0xff] }
 0x4f9   : > { %4679 = vmatprep.subr.bf16.mxu1 %v4678_v34  ;;  %4807 = vmatprep.subr.bf16.mxu0 %v4806_v35  ;;  %v4696_v34 = vpack.c.bf16 %v1379_v26, %v1359_v25  ;;  %v4824_v35 = vpack.c.bf16 %v1381_v44, %v1361_v27  ;;  %v4698_v36 = vpack.c.bf16 %v1420_v31, %v1400_v30  ;;  %v1562_v25 = vld [vmem:[%s6695_s20 + $0xcb8] sm:$0xff]  ;;  %v1559_v30 = vld [vmem:[%s6695_s20 + $0xca0] sm:$0xff]  ;;  %v1801_v54 = vld [vmem:[%s6695_s20 + $0x1430] sm:$0xff] }
 0x4fa   : > { %v1582_v26 = vld [vmem:[%s6695_s20 + $0xd58] sm:$0xff]  ;;  %v4712_v27 = vpack.c.bf16 %v1539_v16, %v1519_v15  ;;  %v1579_v31 = vld [vmem:[%s6695_s20 + $0xd40] sm:$0xff]  ;;  %v1861_v4 = vld [vmem:[%s6695_s20 + $0x1610] sm:$0xff] }
 0x4fb   : > { %4681 = vmatpush1.bf16.msra.mxu1 %v4680_v43  ;;  %v1421_v43 = vld [vmem:[%s6695_s20 + $0x850] sm:$0xff]  ;;  %v4842_v33 = vpack.c.bf16 %v1582_v26, %v1562_v25  ;;  %v1722_v15 = vld [vmem:[%s6695_s20 + $0x11b8] sm:$0xff] }
 0x4fc   : > { %4809 = vmatpush1.bf16.msra.mxu0 %v4808_v45  ;;  %4683 = vmatprep.subr.bf16.mxu1 %v4682_v46  ;;  %v1440_v45 = vld [vmem:[%s6695_s20 + $0x8e8] sm:$0xff]  ;;  %v1742_v16 = vld [vmem:[%s6695_s20 + $0x1258] sm:$0xff]  ;;  %v1721_v25 = vld [vmem:[%s6695_s20 + $0x11b0] sm:$0xff] }
 0x4fd   : > { %4811 = vmatprep.subr.bf16.mxu0 %v4810_v50  ;;  %v1460_v46 = vld [vmem:[%s6695_s20 + $0x988] sm:$0xff]  ;;  %v4828_v50 = vpack.c.bf16 %v1421_v43, %v1401_v41  ;;  %v4716_v41 = vpack.c.bf16 %v1579_v31, %v1559_v30  ;;  %v4858_v26 = vpack.c.bf16 %v1742_v16, %v1722_v15  ;;  %v1762_v30 = vld [vmem:[%s6695_s20 + $0x12f8] sm:$0xff]  ;;  %v1881_v15 = vld [vmem:[%s6695_s20 + $0x16b0] sm:$0xff] }
 0x4fe   : > { %v4702_v51 = vpack.c.bf16 %v1460_v46, %v1440_v45  ;;  %v1599_v45 = vld [vmem:[%s6695_s20 + $0xde0] sm:$0xff]  ;;  %v1782_v31 = vld [vmem:[%s6695_s20 + $0x1398] sm:$0xff] }
 0x4ff   : > { %4685 = vmatpush1.bf16.msra.mxu1 %v4684_v57  ;;  %v1461_v57 = vld [vmem:[%s6695_s20 + $0x990] sm:$0xff]  ;;  %v1619_v46 = vld [vmem:[%s6695_s20 + $0xe80] sm:$0xff]  ;;  %v4862_v40 = vpack.c.bf16 %v1782_v31, %v1762_v30 }
 0x500   : > { %4813 = vmatpush1.bf16.msra.mxu0 %v4812_v59  ;;  %4687 = vmatprep.subr.bf16.mxu1 %v4686_v60  ;;  %v1480_v59 = vld [vmem:[%s6695_s20 + $0xa28] sm:$0xff]  ;;  %v1921_v30 = vld [vmem:[%s6695_s20 + $0x17f0] sm:$0xff] }
 0x501   : > { %4815 = vmatprep.subr.bf16.mxu0 %v4814_v1  ;;  %v1500_v60 = vld [vmem:[%s6695_s20 + $0xac8] sm:$0xff]  ;;  %v4832_v1 = vpack.c.bf16 %v1461_v57, %v1441_v55  ;;  %v4720_v55 = vpack.c.bf16 %v1619_v46, %v1599_v45  ;;  %v1802_v45 = vld [vmem:[%s6695_s20 + $0x1438] sm:$0xff] }
 0x502   : > { %v4706_v2 = vpack.c.bf16 %v1500_v60, %v1480_v59  ;;  %v1639_v59 = vld [vmem:[%s6695_s20 + $0xf20] sm:$0xff]  ;;  %v1822_v46 = vld [vmem:[%s6695_s20 + $0x14d8] sm:$0xff] }
 0x503   : > { %4689 = vmatpush1.bf16.msra.mxu1 %v4688_v7  ;;  %v1501_v7 = vld [vmem:[%s6695_s20 + $0xad0] sm:$0xff]  ;;  %v1659_v60 = vld [vmem:[%s6695_s20 + $0xfc0] sm:$0xff]  ;;  %v4866_v52 = vpack.c.bf16 %v1822_v46, %v1802_v45 }
 0x504   : > { %4817 = vmatpush1.bf16.msra.mxu0 %v4816_v9  ;;  %4691 = vmatprep.subr.bf16.mxu1 %v4690_v10  ;;  %v1520_v9 = vld [vmem:[%s6695_s20 + $0xb68] sm:$0xff]  ;;  %v1961_v45 = vld [vmem:[%s6695_s20 + $0x1930] sm:$0xff] }
 0x505   : > { %4819 = vmatprep.subr.bf16.mxu0 %v4818_v38  ;;  %v1540_v10 = vld [vmem:[%s6695_s20 + $0xc08] sm:$0xff]  ;;  %v4836_v38 = vpack.c.bf16 %v1501_v7, %v1481_v5  ;;  %v4724_v5 = vpack.c.bf16 %v1659_v60, %v1639_v59  ;;  %v1842_v60 = vld [vmem:[%s6695_s20 + $0x1578] sm:$0xff] }
 0x506   : > { %v4710_v14 = vpack.c.bf16 %v1540_v10, %v1520_v9  ;;  %v1679_v9 = vld [vmem:[%s6695_s20 + $0x1060] sm:$0xff] }
 0x507   : > { %4693 = vmatpush1.bf16.msra.mxu1 %v4692_v22  ;;  %v1541_v22 = vld [vmem:[%s6695_s20 + $0xc10] sm:$0xff]  ;;  %v1699_v10 = vld [vmem:[%s6695_s20 + $0x1100] sm:$0xff] }
 0x508   : > { %4821 = vmatpush1.bf16.msra.mxu0 %v4820_v23  ;;  %4695 = vmatprep.subr.bf16.mxu1 %v4694_v24  ;;  %v1560_v23 = vld [vmem:[%s6695_s20 + $0xca8] sm:$0xff] }
 0x509   : > { %4823 = vmatprep.subr.bf16.mxu0 %v4822_v28  ;;  %v1580_v24 = vld [vmem:[%s6695_s20 + $0xd48] sm:$0xff]  ;;  %v4840_v28 = vpack.c.bf16 %v1541_v22, %v1521_v19  ;;  %v4728_v19 = vpack.c.bf16 %v1699_v10, %v1679_v9  ;;  %v1882_v9 = vld [vmem:[%s6695_s20 + $0x16b8] sm:$0xff] }
 0x50a   : > { %v4714_v44 = vpack.c.bf16 %v1580_v24, %v1560_v23  ;;  %v1719_v23 = vld [vmem:[%s6695_s20 + $0x11a0] sm:$0xff]  ;;  %v1902_v10 = vld [vmem:[%s6695_s20 + $0x1758] sm:$0xff] }
 0x50b   : > { %4697 = vmatpush1.bf16.msra.mxu1 %v4696_v34  ;;  %v1581_v34 = vld [vmem:[%s6695_s20 + $0xd50] sm:$0xff]  ;;  %v1739_v24 = vld [vmem:[%s6695_s20 + $0x1240] sm:$0xff]  ;;  %v4874_v16 = vpack.c.bf16 %v1902_v10, %v1882_v9 }
 0x50c   : > { %4825 = vmatpush1.bf16.msra.mxu0 %v4824_v35  ;;  %4699 = vmatprep.subr.bf16.mxu1 %v4698_v36  ;;  %v1600_v35 = vld [vmem:[%s6695_s20 + $0xde8] sm:$0xff]  ;;  %v2041_v9 = vld [vmem:[%s6695_s20 + $0x1bb0] sm:$0xff] }
 0x50d   : > { %4827 = vmatprep.subr.bf16.mxu0 %v4826_v42  ;;  %v1620_v36 = vld [vmem:[%s6695_s20 + $0xe88] sm:$0xff]  ;;  %v4844_v42 = vpack.c.bf16 %v1581_v34, %v1561_v32  ;;  %v4732_v32 = vpack.c.bf16 %v1739_v24, %v1719_v23  ;;  %v1922_v23 = vld [vmem:[%s6695_s20 + $0x17f8] sm:$0xff] }
 0x50e   : > { %v4718_v43 = vpack.c.bf16 %v1620_v36, %v1600_v35  ;;  %v1759_v35 = vld [vmem:[%s6695_s20 + $0x12e0] sm:$0xff]  ;;  %v1942_v24 = vld [vmem:[%s6695_s20 + $0x1898] sm:$0xff] }
 0x50f   : > { %4701 = vmatpush1.bf16.msra.mxu1 %v4700_v49  ;;  %v1621_v49 = vld [vmem:[%s6695_s20 + $0xe90] sm:$0xff]  ;;  %v1779_v36 = vld [vmem:[%s6695_s20 + $0x1380] sm:$0xff]  ;;  %v4878_v31 = vpack.c.bf16 %v1942_v24, %v1922_v23 }
 0x510   : > { %4829 = vmatpush1.bf16.msra.mxu0 %v4828_v50  ;;  %4703 = vmatprep.subr.bf16.mxu1 %v4702_v51  ;;  %v1640_v50 = vld [vmem:[%s6695_s20 + $0xf28] sm:$0xff]  ;;  %v2081_v23 = vld [vmem:[%s6695_s20 + $0x1cf0] sm:$0xff] }
 0x511   : > { %4831 = vmatprep.subr.bf16.mxu0 %v4830_v56  ;;  %v1660_v51 = vld [vmem:[%s6695_s20 + $0xfc8] sm:$0xff]  ;;  %v4848_v56 = vpack.c.bf16 %v1621_v49, %v1601_v47  ;;  %v4736_v47 = vpack.c.bf16 %v1779_v36, %v1759_v35  ;;  %v1962_v35 = vld [vmem:[%s6695_s20 + $0x1938] sm:$0xff] }
 0x512   : > { %v4722_v57 = vpack.c.bf16 %v1660_v51, %v1640_v50  ;;  %v1799_v50 = vld [vmem:[%s6695_s20 + $0x1420] sm:$0xff]  ;;  %v1982_v36 = vld [vmem:[%s6695_s20 + $0x19d8] sm:$0xff] }
 0x513   : > { %4705 = vmatpush1.bf16.msra.mxu1 %v4704_v0  ;;  %v1661_v0 = vld [vmem:[%s6695_s20 + $0xfd0] sm:$0xff]  ;;  %v1819_v51 = vld [vmem:[%s6695_s20 + $0x14c0] sm:$0xff]  ;;  %v4882_v46 = vpack.c.bf16 %v1982_v36, %v1962_v35 }
 0x514   : > { %4833 = vmatpush1.bf16.msra.mxu0 %v4832_v1  ;;  %4707 = vmatprep.subr.bf16.mxu1 %v4706_v2  ;;  %v1680_v1 = vld [vmem:[%s6695_s20 + $0x1068] sm:$0xff]  ;;  %v4740_v59 = vpack.c.bf16 %v1819_v51, %v1799_v50  ;;  %v2002_v50 = vld [vmem:[%s6695_s20 + $0x1a78] sm:$0xff]  ;;  %v2121_v35 = vld [vmem:[%s6695_s20 + $0x1e30] sm:$0xff] }
 0x515   : > { %4835 = vmatprep.subr.bf16.mxu0 %v4834_v6  ;;  %v1700_v2 = vld [vmem:[%s6695_s20 + $0x1108] sm:$0xff]  ;;  %v4852_v6 = vpack.c.bf16 %v1661_v0, %v1641_v61  ;;  %v1862_v61 = vld [vmem:[%s6695_s20 + $0x1618] sm:$0xff]  ;;  %v1839_v0 = vld [vmem:[%s6695_s20 + $0x1560] sm:$0xff] }
 0x516   : > { %v4726_v7 = vpack.c.bf16 %v1700_v2, %v1680_v1  ;;  %v1859_v1 = vld [vmem:[%s6695_s20 + $0x1600] sm:$0xff]  ;;  %v1841_v2 = vld [vmem:[%s6695_s20 + $0x1570] sm:$0xff]  ;;  %v2022_v51 = vld [vmem:[%s6695_s20 + $0x1b18] sm:$0xff] }
 0x517   : > { %4709 = vmatpush1.bf16.msra.mxu1 %v4708_v13  ;;  %v1701_v13 = vld [vmem:[%s6695_s20 + $0x1110] sm:$0xff] }
 0x518   : > { %4837 = vmatpush1.bf16.msra.mxu0 %v4836_v38  ;;  %4711 = vmatprep.subr.bf16.mxu1 %v4710_v14  ;;  %v1720_v38 = vld [vmem:[%s6695_s20 + $0x11a8] sm:$0xff] }
 0x519   : > { %4839 = vmatprep.subr.bf16.mxu0 %v4838_v21  ;;  %v1740_v14 = vld [vmem:[%s6695_s20 + $0x1248] sm:$0xff]  ;;  %v4856_v21 = vpack.c.bf16 %v1701_v13, %v1681_v11  ;;  %v4744_v11 = vpack.c.bf16 %v1859_v1, %v1839_v0  ;;  %v2042_v1 = vld [vmem:[%s6695_s20 + $0x1bb8] sm:$0xff] }
 0x51a   : > { %v4730_v22 = vpack.c.bf16 %v1740_v14, %v1720_v38  ;;  %v1879_v38 = vld [vmem:[%s6695_s20 + $0x16a0] sm:$0xff]  ;;  %v2060_v0 = vld [vmem:[%s6695_s20 + $0x1c48] sm:$0xff] }
 0x51b   : > { %4713 = vmatpush1.bf16.msra.mxu1 %v4712_v27  ;;  %v1741_v27 = vld [vmem:[%s6695_s20 + $0x1250] sm:$0xff]  ;;  %v1899_v14 = vld [vmem:[%s6695_s20 + $0x1740] sm:$0xff] }
 0x51c   : > { %4841 = vmatpush1.bf16.msra.mxu0 %v4840_v28  ;;  %4715 = vmatprep.subr.bf16.mxu1 %v4714_v44  ;;  %v1760_v28 = vld [vmem:[%s6695_s20 + $0x12e8] sm:$0xff] }
 0x51d   : > { %4843 = vmatprep.subr.bf16.mxu0 %v4842_v33  ;;  %v1780_v44 = vld [vmem:[%s6695_s20 + $0x1388] sm:$0xff]  ;;  %v4860_v33 = vpack.c.bf16 %v1741_v27, %v1721_v25  ;;  %v4748_v25 = vpack.c.bf16 %v1899_v14, %v1879_v38  ;;  %v2082_v38 = vld [vmem:[%s6695_s20 + $0x1cf8] sm:$0xff] }
 0x51e   : > { %v4734_v34 = vpack.c.bf16 %v1780_v44, %v1760_v28  ;;  %v1919_v28 = vld [vmem:[%s6695_s20 + $0x17e0] sm:$0xff]  ;;  %v2102_v14 = vld [vmem:[%s6695_s20 + $0x1d98] sm:$0xff] }
 0x51f   : > { %4717 = vmatpush1.bf16.msra.mxu1 %v4716_v41  ;;  %v1781_v41 = vld [vmem:[%s6695_s20 + $0x1390] sm:$0xff]  ;;  %v1939_v44 = vld [vmem:[%s6695_s20 + $0x1880] sm:$0xff]  ;;  %v4894_v24 = vpack.c.bf16 %v2102_v14, %v2082_v38 }
 0x520   : > { %4845 = vmatpush1.bf16.msra.mxu0 %v4844_v42  ;;  %4719 = vmatprep.subr.bf16.mxu1 %v4718_v43  ;;  %v1800_v42 = vld [vmem:[%s6695_s20 + $0x1428] sm:$0xff]  ;;  %v2241_v38 = vld [vmem:[%s6695_s20 + $0x21f0] sm:$0xff] }
 0x521   : > { %4847 = vmatprep.subr.bf16.mxu0 %v4846_v48  ;;  %v1820_v43 = vld [vmem:[%s6695_s20 + $0x14c8] sm:$0xff]  ;;  %v4864_v48 = vpack.c.bf16 %v1781_v41, %v1761_v37  ;;  %v4752_v37 = vpack.c.bf16 %v1939_v44, %v1919_v28  ;;  %v2122_v28 = vld [vmem:[%s6695_s20 + $0x1e38] sm:$0xff] }
 0x522   : > { %v4738_v49 = vpack.c.bf16 %v1820_v43, %v1800_v42  ;;  %v1959_v42 = vld [vmem:[%s6695_s20 + $0x1920] sm:$0xff]  ;;  %v2142_v44 = vld [vmem:[%s6695_s20 + $0x1ed8] sm:$0xff] }
 0x523   : > { %4721 = vmatpush1.bf16.msra.mxu1 %v4720_v55  ;;  %v1821_v55 = vld [vmem:[%s6695_s20 + $0x14d0] sm:$0xff]  ;;  %v1979_v43 = vld [vmem:[%s6695_s20 + $0x19c0] sm:$0xff]  ;;  %v4898_v36 = vpack.c.bf16 %v2142_v44, %v2122_v28 }
 0x524   : > { %4849 = vmatpush1.bf16.msra.mxu0 %v4848_v56  ;;  %4723 = vmatprep.subr.bf16.mxu1 %v4722_v57  ;;  %v1840_v56 = vld [vmem:[%s6695_s20 + $0x1568] sm:$0xff]  ;;  %v2281_v28 = vld [vmem:[%s6695_s20 + $0x2330] sm:$0xff] }
 0x525   : > { %4851 = vmatprep.subr.bf16.mxu0 %v4850_v62  ;;  %v1860_v57 = vld [vmem:[%s6695_s20 + $0x1608] sm:$0xff]  ;;  %v4868_v62 = vpack.c.bf16 %v1821_v55, %v1801_v54 }
 0x526   : > { %v4742_v3 = vpack.c.bf16 %v1860_v57, %v1840_v56  ;;  %v1999_v56 = vld [vmem:[%s6695_s20 + $0x1a60] sm:$0xff] }
 0x527   : > { %4725 = vmatpush1.bf16.msra.mxu1 %v4724_v5  ;;  %v1880_v5 = vld [vmem:[%s6695_s20 + $0x16a8] sm:$0xff]  ;;  %v2019_v57 = vld [vmem:[%s6695_s20 + $0x1b00] sm:$0xff] }
 0x528   : > { %4853 = vmatpush1.bf16.msra.mxu0 %v4852_v6  ;;  %4727 = vmatprep.subr.bf16.mxu1 %v4726_v7  ;;  %v1900_v6 = vld [vmem:[%s6695_s20 + $0x1748] sm:$0xff]  ;;  %v4870_v7 = vpack.c.bf16 %v1862_v61, %v1842_v60  ;;  %v4886_v60 = vpack.c.bf16 %v2022_v51, %v2002_v50  ;;  %v2021_v61 = vld [vmem:[%s6695_s20 + $0x1b10] sm:$0xff] }
 0x529   : > { %4855 = vmatprep.subr.bf16.mxu0 %v4854_v12  ;;  %v4872_v12 = vpack.c.bf16 %v1861_v4, %v1841_v2  ;;  %v4746_v13 = vpack.c.bf16 %v1900_v6, %v1880_v5  ;;  %v2062_v2 = vld [vmem:[%s6695_s20 + $0x1c58] sm:$0xff]  ;;  %v2039_v6 = vld [vmem:[%s6695_s20 + $0x1ba0] sm:$0xff]  ;;  %v2161_v50 = vld [vmem:[%s6695_s20 + $0x1f70] sm:$0xff] }
 0x52a   : > { %v4890_v10 = vpack.c.bf16 %v2062_v2, %v2042_v1  ;;  %v2201_v1 = vld [vmem:[%s6695_s20 + $0x20b0] sm:$0xff] }
 0x52b   : > { %4729 = vmatpush1.bf16.msra.mxu1 %v4728_v19  ;;  %v1901_v19 = vld [vmem:[%s6695_s20 + $0x1750] sm:$0xff] }
 0x52c   : > { %4857 = vmatpush1.bf16.msra.mxu0 %v4856_v21  ;;  %4731 = vmatprep.subr.bf16.mxu1 %v4730_v22  ;;  %v1920_v21 = vld [vmem:[%s6695_s20 + $0x17e8] sm:$0xff] }
 0x52d   : > { %4859 = vmatprep.subr.bf16.mxu0 %v4858_v26  ;;  %v1940_v22 = vld [vmem:[%s6695_s20 + $0x1888] sm:$0xff]  ;;  %v4876_v26 = vpack.c.bf16 %v1901_v19, %v1881_v15 }
 0x52e   : > { %v4750_v27 = vpack.c.bf16 %v1940_v22, %v1920_v21  ;;  %v2079_v21 = vld [vmem:[%s6695_s20 + $0x1ce0] sm:$0xff] }
 0x52f   : > { %4733 = vmatpush1.bf16.msra.mxu1 %v4732_v32  ;;  %v1941_v32 = vld [vmem:[%s6695_s20 + $0x1890] sm:$0xff]  ;;  %v2099_v22 = vld [vmem:[%s6695_s20 + $0x1d80] sm:$0xff] }
 0x530   : > { %4861 = vmatpush1.bf16.msra.mxu0 %v4860_v33  ;;  %4735 = vmatprep.subr.bf16.mxu1 %v4734_v34  ;;  %v1960_v33 = vld [vmem:[%s6695_s20 + $0x1928] sm:$0xff] }
 0x531   : > { %4863 = vmatprep.subr.bf16.mxu0 %v4862_v40  ;;  %v1980_v34 = vld [vmem:[%s6695_s20 + $0x19c8] sm:$0xff]  ;;  %v4880_v40 = vpack.c.bf16 %v1941_v32, %v1921_v30  ;;  %v4768_v30 = vpack.c.bf16 %v2099_v22, %v2079_v21  ;;  %v2282_v21 = vld [vmem:[%s6695_s20 + $0x2338] sm:$0xff] }
 0x532   : > { %v4754_v41 = vpack.c.bf16 %v1980_v34, %v1960_v33  ;;  %v2119_v33 = vld [vmem:[%s6695_s20 + $0x1e20] sm:$0xff]  ;;  %v2302_v22 = vld [vmem:[%s6695_s20 + $0x23d8] sm:$0xff] }
 0x533   : > { %4737 = vmatpush1.bf16.msra.mxu1 %v4736_v47  ;;  %v1981_v47 = vld [vmem:[%s6695_s20 + $0x19d0] sm:$0xff]  ;;  %v2139_v34 = vld [vmem:[%s6695_s20 + $0x1ec0] sm:$0xff]  ;;  %v4914_v44 = vpack.c.bf16 %v2302_v22, %v2282_v21 }
 0x534   : > { %4865 = vmatpush1.bf16.msra.mxu0 %v4864_v48  ;;  %4739 = vmatprep.subr.bf16.mxu1 %v4738_v49  ;;  %v2000_v48 = vld [vmem:[%s6695_s20 + $0x1a68] sm:$0xff]  ;;  %v4884_v54 = vpack.c.bf16 %v1981_v47, %v1961_v45  ;;  %v4772_v45 = vpack.c.bf16 %v2139_v34, %v2119_v33  ;;  %v2322_v33 = vld [vmem:[%s6695_s20 + $0x2478] sm:$0xff]  ;;  %v1165_v22 = vld [vmem:[%s6695_s20 + $0x50] sm:$0xff] }
 0x535   : > { %4867 = vmatprep.subr.bf16.mxu0 %v4866_v52  ;;  %v2020_v49 = vld [vmem:[%s6695_s20 + $0x1b08] sm:$0xff]  ;;  %v4756_v52 = vpack.c.bf16 %v1979_v43, %v1959_v42  ;;  %v2162_v42 = vld [vmem:[%s6695_s20 + $0x1f78] sm:$0xff] }
 0x536   : > { %2890 = vmatmul.mubr.f32.vlgmr.msra.gmra.mrb[8].mxu1 %v6870_v63  ;;  %v4758_v55 = vpack.c.bf16 %v2020_v49, %v2000_v48  ;;  %v2182_v43 = vld [vmem:[%s6695_s20 + $0x2018] sm:$0xff]  ;;  %v2159_v48 = vld [vmem:[%s6695_s20 + $0x1f60] sm:$0xff] }
 0x537   : > { %3032 = vmatmul.mubr.f32.vlgmr.msra.gmra.mrb[6].mxu0 %v6870_v63  ;;  %4741 = vmatpush1.bf16.msra.mxu1 %v4740_v59  ;;  %v2001_v59 = vld [vmem:[%s6695_s20 + $0x1a70] sm:$0xff]  ;;  %v2179_v49 = vld [vmem:[%s6695_s20 + $0x2000] sm:$0xff]  ;;  %v4902_v51 = vpack.c.bf16 %v2182_v43, %v2162_v42  ;;  %v2342_v34 = vld [vmem:[%s6695_s20 + $0x2518] sm:$0xff] }
 0x538   : > { %2960 = vmatprep.mubr.f32.mxu1 %v6880_v8  ;;  %4869 = vmatpush1.bf16.msra.mxu0 %v4868_v62  ;;  %v2040_v62 = vld [vmem:[%s6695_s20 + $0x1ba8] sm:$0xff]  ;;  %v4888_v4 = vpack.c.bf16 %v2021_v61, %v2001_v59  ;;  %v4776_v59 = vpack.c.bf16 %v2179_v49, %v2159_v48  ;;  %v2321_v42 = vld [vmem:[%s6695_s20 + $0x2470] sm:$0xff]  ;;  %v4918_v43 = vpack.c.bf16 %v2342_v34, %v2322_v33  ;;  %v2362_v48 = vld [vmem:[%s6695_s20 + $0x25b8] sm:$0xff] }
 0x539   : > { %3102 = vmatprep.mubr.f32.mxu0 %v6880_v8  ;;  %4743 = vmatprep.subr.bf16.mxu1 %v4742_v3  ;;  %v4760_v3 = vpack.c.bf16 %v2019_v57, %v1999_v56  ;;  %v4762_v5 = vpack.c.bf16 %v2060_v0, %v2040_v62  ;;  %v2202_v56 = vld [vmem:[%s6695_s20 + $0x20b8] sm:$0xff]  ;;  %v2199_v62 = vld [vmem:[%s6695_s20 + $0x20a0] sm:$0xff]  ;;  %v1225_v34 = vld [vmem:[%s6695_s20 + $0x230] sm:$0xff] }
 0x53a   : > { %4871 = vmatprep.subr.bf16.mxu0 %v4870_v7  ;;  %v2059_v7 = vld [vmem:[%s6695_s20 + $0x1c40] sm:$0xff]  ;;  %v2222_v57 = vld [vmem:[%s6695_s20 + $0x2158] sm:$0xff] }
 0x53b   : > { %4745 = vmatpush1.bf16.msra.mxu1 %v4744_v11  ;;  %v2061_v11 = vld [vmem:[%s6695_s20 + $0x1c50] sm:$0xff]  ;;  %v4764_v15 = vpack.c.bf16 %v2059_v7, %v2039_v6  ;;  %v2219_v0 = vld [vmem:[%s6695_s20 + $0x2140] sm:$0xff]  ;;  %v4906_v2 = vpack.c.bf16 %v2222_v57, %v2202_v56  ;;  %v2242_v6 = vld [vmem:[%s6695_s20 + $0x21f8] sm:$0xff] }
 0x53c   : > { %4873 = vmatpush1.bf16.msra.mxu0 %v4872_v12  ;;  %4747 = vmatprep.subr.bf16.mxu1 %v4746_v13  ;;  %v2080_v12 = vld [vmem:[%s6695_s20 + $0x1ce8] sm:$0xff]  ;;  %v2262_v7 = vld [vmem:[%s6695_s20 + $0x2298] sm:$0xff]  ;;  %v2361_v56 = vld [vmem:[%s6695_s20 + $0x25b0] sm:$0xff] }
 0x53d   : > { %4875 = vmatprep.subr.bf16.mxu0 %v4874_v16  ;;  %v2100_v13 = vld [vmem:[%s6695_s20 + $0x1d88] sm:$0xff]  ;;  %v4892_v16 = vpack.c.bf16 %v2061_v11, %v2041_v9  ;;  %v4780_v9 = vpack.c.bf16 %v2219_v0, %v2199_v62  ;;  %v4910_v14 = vpack.c.bf16 %v2262_v7, %v2242_v6  ;;  %v2382_v49 = vld [vmem:[%s6695_s20 + $0x2658] sm:$0xff]  ;;  %v2401_v6 = vld [vmem:[%s6695_s20 + $0x26f0] sm:$0xff] }
 0x53e   : > { %v4766_v19 = vpack.c.bf16 %v2100_v13, %v2080_v12  ;;  %v2239_v12 = vld [vmem:[%s6695_s20 + $0x21e0] sm:$0xff]  ;;  %v4922_v57 = vpack.c.bf16 %v2382_v49, %v2362_v48  ;;  %v2402_v62 = vld [vmem:[%s6695_s20 + $0x26f8] sm:$0xff]  ;;  %v1245_v48 = vld [vmem:[%s6695_s20 + $0x2d0] sm:$0xff] }
 0x53f   : > { %4749 = vmatpush1.bf16.msra.mxu1 %v4748_v25  ;;  %v2101_v25 = vld [vmem:[%s6695_s20 + $0x1d90] sm:$0xff]  ;;  %v2259_v13 = vld [vmem:[%s6695_s20 + $0x2280] sm:$0xff]  ;;  %v2422_v0 = vld [vmem:[%s6695_s20 + $0x2798] sm:$0xff] }
 0x540   : > { %4877 = vmatpush1.bf16.msra.mxu0 %v4876_v26  ;;  %4751 = vmatprep.subr.bf16.mxu1 %v4750_v27  ;;  %v2120_v26 = vld [vmem:[%s6695_s20 + $0x1e28] sm:$0xff]  ;;  %v4926_v7 = vpack.c.bf16 %v2422_v0, %v2402_v62  ;;  %v1285_v62 = vld [vmem:[%s6695_s20 + $0x410] sm:$0xff] }
 0x541   : > { %4879 = vmatprep.subr.bf16.mxu0 %v4878_v31  ;;  %v2140_v27 = vld [vmem:[%s6695_s20 + $0x1ec8] sm:$0xff]  ;;  %v4896_v31 = vpack.c.bf16 %v2101_v25, %v2081_v23  ;;  %v4784_v23 = vpack.c.bf16 %v2259_v13, %v2239_v12  ;;  %v1166_v12 = vld [vmem:[%s6695_s20 + $0x58] sm:$0xff] }
 0x542   : > { %v4770_v32 = vpack.c.bf16 %v2140_v27, %v2120_v26  ;;  %v2279_v26 = vld [vmem:[%s6695_s20 + $0x2320] sm:$0xff]  ;;  %v1186_v13 = vld [vmem:[%s6695_s20 + $0xf8] sm:$0xff] }
 0x543   : > { %4753 = vmatpush1.bf16.msra.mxu1 %v4752_v37  ;;  %v2141_v37 = vld [vmem:[%s6695_s20 + $0x1ed0] sm:$0xff]  ;;  %v2299_v27 = vld [vmem:[%s6695_s20 + $0x23c0] sm:$0xff]  ;;  %v5058_v21 = vpack.c.bf16 %v1186_v13, %v1166_v12 }
 0x544   : > { %4881 = vmatpush1.bf16.msra.mxu0 %v4880_v40  ;;  %4755 = vmatprep.subr.bf16.mxu1 %v4754_v41  ;;  %v2160_v40 = vld [vmem:[%s6695_s20 + $0x1f68] sm:$0xff]  ;;  %v1325_v12 = vld [vmem:[%s6695_s20 + $0x550] sm:$0xff] }
 0x545   : > { %4883 = vmatprep.subr.bf16.mxu0 %v4882_v46  ;;  %v2180_v41 = vld [vmem:[%s6695_s20 + $0x2008] sm:$0xff]  ;;  %v4900_v46 = vpack.c.bf16 %v2141_v37, %v2121_v35  ;;  %v4788_v35 = vpack.c.bf16 %v2299_v27, %v2279_v26  ;;  %v1206_v27 = vld [vmem:[%s6695_s20 + $0x198] sm:$0xff] }
 0x546   : > { %v4774_v47 = vpack.c.bf16 %v2180_v41, %v2160_v40  ;;  %v2319_v40 = vld [vmem:[%s6695_s20 + $0x2460] sm:$0xff] }
 0x547   : > { %4757 = vmatpush1.bf16.msra.mxu1 %v4756_v52  ;;  %v2181_v52 = vld [vmem:[%s6695_s20 + $0x2010] sm:$0xff]  ;;  %v2339_v41 = vld [vmem:[%s6695_s20 + $0x2500] sm:$0xff] }
 0x548   : > { %4885 = vmatpush1.bf16.msra.mxu0 %v4884_v54  ;;  %4759 = vmatprep.subr.bf16.mxu1 %v4758_v55  ;;  %v2200_v54 = vld [vmem:[%s6695_s20 + $0x20a8] sm:$0xff] }
 0x549   : > { %4887 = vmatprep.subr.bf16.mxu0 %v4886_v60  ;;  %v2220_v55 = vld [vmem:[%s6695_s20 + $0x2148] sm:$0xff]  ;;  %v4904_v60 = vpack.c.bf16 %v2181_v52, %v2161_v50  ;;  %v4792_v50 = vpack.c.bf16 %v2339_v41, %v2319_v40  ;;  %v1246_v40 = vld [vmem:[%s6695_s20 + $0x2d8] sm:$0xff] }
 0x54a   : > { %v4778_v61 = vpack.c.bf16 %v2220_v55, %v2200_v54  ;;  %v2359_v54 = vld [vmem:[%s6695_s20 + $0x25a0] sm:$0xff]  ;;  %v1266_v41 = vld [vmem:[%s6695_s20 + $0x378] sm:$0xff] }
 0x54b   : > { %4761 = vmatpush1.bf16.msra.mxu1 %v4760_v3  ;;  %v2221_v3 = vld [vmem:[%s6695_s20 + $0x2150] sm:$0xff]  ;;  %v2379_v55 = vld [vmem:[%s6695_s20 + $0x2640] sm:$0xff]  ;;  %v5066_v49 = vpack.c.bf16 %v1266_v41, %v1246_v40 }
 0x54c   : > { %4889 = vmatpush1.bf16.msra.mxu0 %v4888_v4  ;;  %4763 = vmatprep.subr.bf16.mxu1 %v4762_v5  ;;  %v2240_v4 = vld [vmem:[%s6695_s20 + $0x21e8] sm:$0xff]  ;;  %v1405_v40 = vld [vmem:[%s6695_s20 + $0x7d0] sm:$0xff] }
 0x54d   : > { %4891 = vmatprep.subr.bf16.mxu0 %v4890_v10  ;;  %v2260_v5 = vld [vmem:[%s6695_s20 + $0x2288] sm:$0xff]  ;;  %v4908_v10 = vpack.c.bf16 %v2221_v3, %v2201_v1  ;;  %v4796_v1 = vpack.c.bf16 %v2379_v55, %v2359_v54  ;;  %v1286_v54 = vld [vmem:[%s6695_s20 + $0x418] sm:$0xff] }
 0x54e   : > { %v4782_v11 = vpack.c.bf16 %v2260_v5, %v2240_v4  ;;  %v2399_v4 = vld [vmem:[%s6695_s20 + $0x26e0] sm:$0xff]  ;;  %v1306_v55 = vld [vmem:[%s6695_s20 + $0x4b8] sm:$0xff] }
 0x54f   : > { %4765 = vmatpush1.bf16.msra.mxu1 %v4764_v15  ;;  %v2261_v15 = vld [vmem:[%s6695_s20 + $0x2290] sm:$0xff]  ;;  %v2419_v5 = vld [vmem:[%s6695_s20 + $0x2780] sm:$0xff]  ;;  %v5070_v0 = vpack.c.bf16 %v1306_v55, %v1286_v54 }
 0x550   : > { %4893 = vmatpush1.bf16.msra.mxu0 %v4892_v16  ;;  %4767 = vmatprep.subr.bf16.mxu1 %v4766_v19  ;;  %v2280_v16 = vld [vmem:[%s6695_s20 + $0x2328] sm:$0xff]  ;;  %v1445_v54 = vld [vmem:[%s6695_s20 + $0x910] sm:$0xff] }
 0x551   : > { %4895 = vmatprep.subr.bf16.mxu0 %v4894_v24  ;;  %v2300_v19 = vld [vmem:[%s6695_s20 + $0x23c8] sm:$0xff]  ;;  %v4912_v24 = vpack.c.bf16 %v2261_v15, %v2241_v38  ;;  %v4800_v38 = vpack.c.bf16 %v2419_v5, %v2399_v4  ;;  %v1326_v4 = vld [vmem:[%s6695_s20 + $0x558] sm:$0xff] }
 0x552   : > { %v4786_v25 = vpack.c.bf16 %v2300_v19, %v2280_v16  ;;  %v1163_v16 = vld [vmem:[%s6695_s20 + $0x40] sm:$0xff]  ;;  %v1346_v5 = vld [vmem:[%s6695_s20 + $0x5f8] sm:$0xff] }
 0x553   : > { %4769 = vmatpush1.bf16.msra.mxu1 %v4768_v30  ;;  %v2301_v30 = vld [vmem:[%s6695_s20 + $0x23d0] sm:$0xff]  ;;  %v1183_v19 = vld [vmem:[%s6695_s20 + $0xe0] sm:$0xff]  ;;  %v5074_v13 = vpack.c.bf16 %v1346_v5, %v1326_v4 }
 0x554   : > { %4897 = vmatpush1.bf16.msra.mxu0 %v4896_v31  ;;  %4771 = vmatprep.subr.bf16.mxu1 %v4770_v32  ;;  %v2320_v31 = vld [vmem:[%s6695_s20 + $0x2468] sm:$0xff]  ;;  %v4932_v26 = vpack.c.bf16 %v1183_v19, %v1163_v16  ;;  %v1366_v16 = vld [vmem:[%s6695_s20 + $0x698] sm:$0xff]  ;;  %v1485_v4 = vld [vmem:[%s6695_s20 + $0xa50] sm:$0xff] }
 0x555   : > { %4899 = vmatprep.subr.bf16.mxu0 %v4898_v36  ;;  %v2340_v32 = vld [vmem:[%s6695_s20 + $0x2508] sm:$0xff]  ;;  %v4916_v36 = vpack.c.bf16 %v2301_v30, %v2281_v28  ;;  %v1226_v28 = vld [vmem:[%s6695_s20 + $0x238] sm:$0xff]  ;;  %v1203_v30 = vld [vmem:[%s6695_s20 + $0x180] sm:$0xff] }
 0x556   : > { %v4790_v37 = vpack.c.bf16 %v2340_v32, %v2320_v31  ;;  %v1223_v31 = vld [vmem:[%s6695_s20 + $0x220] sm:$0xff]  ;;  %v1205_v32 = vld [vmem:[%s6695_s20 + $0x190] sm:$0xff]  ;;  %v1386_v19 = vld [vmem:[%s6695_s20 + $0x738] sm:$0xff] }
 0x557   : > { %4773 = vmatpush1.bf16.msra.mxu1 %v4772_v45  ;;  %v2341_v45 = vld [vmem:[%s6695_s20 + $0x2510] sm:$0xff] }
 0x558   : > { %4901 = vmatpush1.bf16.msra.mxu0 %v4900_v46  ;;  %4775 = vmatprep.subr.bf16.mxu1 %v4774_v47  ;;  %v2360_v46 = vld [vmem:[%s6695_s20 + $0x25a8] sm:$0xff] }
 0x559   : > { %4903 = vmatprep.subr.bf16.mxu0 %v4902_v51  ;;  %v2380_v47 = vld [vmem:[%s6695_s20 + $0x2648] sm:$0xff]  ;;  %v4920_v51 = vpack.c.bf16 %v2341_v45, %v2321_v42  ;;  %v4936_v42 = vpack.c.bf16 %v1223_v31, %v1203_v30  ;;  %v1406_v31 = vld [vmem:[%s6695_s20 + $0x7d8] sm:$0xff] }
 0x55a   : > { %v4794_v52 = vpack.c.bf16 %v2380_v47, %v2360_v46  ;;  %v1243_v46 = vld [vmem:[%s6695_s20 + $0x2c0] sm:$0xff]  ;;  %v1424_v30 = vld [vmem:[%s6695_s20 + $0x868] sm:$0xff] }
 0x55b   : > { %4777 = vmatpush1.bf16.msra.mxu1 %v4776_v59  ;;  %v2381_v59 = vld [vmem:[%s6695_s20 + $0x2650] sm:$0xff]  ;;  %v1263_v47 = vld [vmem:[%s6695_s20 + $0x360] sm:$0xff] }
 0x55c   : > { %4905 = vmatpush1.bf16.msra.mxu0 %v4904_v60  ;;  %4779 = vmatprep.subr.bf16.mxu1 %v4778_v61  ;;  %v2400_v60 = vld [vmem:[%s6695_s20 + $0x26e8] sm:$0xff] }
 0x55d   : > { %4907 = vmatprep.subr.bf16.mxu0 %v4906_v2  ;;  %v2420_v61 = vld [vmem:[%s6695_s20 + $0x2788] sm:$0xff]  ;;  %v4924_v2 = vpack.c.bf16 %v2381_v59, %v2361_v56  ;;  %v4940_v56 = vpack.c.bf16 %v1263_v47, %v1243_v46  ;;  %v1446_v46 = vld [vmem:[%s6695_s20 + $0x918] sm:$0xff] }
 0x55e   : > { %v4798_v3 = vpack.c.bf16 %v2420_v61, %v2400_v60  ;;  %v1283_v60 = vld [vmem:[%s6695_s20 + $0x400] sm:$0xff]  ;;  %v1466_v47 = vld [vmem:[%s6695_s20 + $0x9b8] sm:$0xff] }
 0x55f   : > { %4781 = vmatpush1.bf16.msra.mxu1 %v4780_v9  ;;  %v2421_v9 = vld [vmem:[%s6695_s20 + $0x2790] sm:$0xff]  ;;  %v1303_v61 = vld [vmem:[%s6695_s20 + $0x4a0] sm:$0xff]  ;;  %v5086_v55 = vpack.c.bf16 %v1466_v47, %v1446_v46 }
 0x560   : > { %4909 = vmatpush1.bf16.msra.mxu0 %v4908_v10  ;;  %4783 = vmatprep.subr.bf16.mxu1 %v4782_v11  ;;  %v1164_v10 = vld [vmem:[%s6695_s20 + $0x48] sm:$0xff]  ;;  %v1605_v46 = vld [vmem:[%s6695_s20 + $0xe10] sm:$0xff] }
 0x561   : > { %4911 = vmatprep.subr.bf16.mxu0 %v4910_v14  ;;  %v1184_v11 = vld [vmem:[%s6695_s20 + $0xe8] sm:$0xff]  ;;  %v4928_v14 = vpack.c.bf16 %v2421_v9, %v2401_v6  ;;  %v4944_v6 = vpack.c.bf16 %v1303_v61, %v1283_v60  ;;  %v1486_v60 = vld [vmem:[%s6695_s20 + $0xa58] sm:$0xff] }
 0x562   : > { %v4930_v15 = vpack.c.bf16 %v1184_v11, %v1164_v10  ;;  %v1323_v10 = vld [vmem:[%s6695_s20 + $0x540] sm:$0xff]  ;;  %v1506_v61 = vld [vmem:[%s6695_s20 + $0xaf8] sm:$0xff] }
 0x563   : > { %4785 = vmatpush1.bf16.msra.mxu1 %v4784_v23  ;;  %v1185_v23 = vld [vmem:[%s6695_s20 + $0xf0] sm:$0xff]  ;;  %v1343_v11 = vld [vmem:[%s6695_s20 + $0x5e0] sm:$0xff]  ;;  %v5090_v5 = vpack.c.bf16 %v1506_v61, %v1486_v60 }
 0x564   : > { %4913 = vmatpush1.bf16.msra.mxu0 %v4912_v24  ;;  %4787 = vmatprep.subr.bf16.mxu1 %v4786_v25  ;;  %v1204_v24 = vld [vmem:[%s6695_s20 + $0x188] sm:$0xff]  ;;  %v1645_v60 = vld [vmem:[%s6695_s20 + $0xf50] sm:$0xff] }
 0x565   : > { %4915 = vmatprep.subr.bf16.mxu0 %v4914_v44  ;;  %v1224_v25 = vld [vmem:[%s6695_s20 + $0x228] sm:$0xff]  ;;  %v5060_v44 = vpack.c.bf16 %v1185_v23, %v1165_v22 }
 0x566   : > { %v4934_v33 = vpack.c.bf16 %v1224_v25, %v1204_v24  ;;  %v1363_v24 = vld [vmem:[%s6695_s20 + $0x680] sm:$0xff] }
 0x567   : > { %4789 = vmatpush1.bf16.msra.mxu1 %v4788_v35  ;;  %v1244_v35 = vld [vmem:[%s6695_s20 + $0x2c8] sm:$0xff]  ;;  %v1383_v25 = vld [vmem:[%s6695_s20 + $0x720] sm:$0xff] }
 0x568   : > { %4917 = vmatpush1.bf16.msra.mxu0 %v4916_v36  ;;  %4791 = vmatprep.subr.bf16.mxu1 %v4790_v37  ;;  %v1264_v36 = vld [vmem:[%s6695_s20 + $0x368] sm:$0xff]  ;;  %v5062_v37 = vpack.c.bf16 %v1226_v28, %v1206_v27  ;;  %v5078_v27 = vpack.c.bf16 %v1386_v19, %v1366_v16  ;;  %v1385_v28 = vld [vmem:[%s6695_s20 + $0x730] sm:$0xff] }
 0x569   : > { %4919 = vmatprep.subr.bf16.mxu0 %v4918_v43  ;;  %v5064_v43 = vpack.c.bf16 %v1225_v34, %v1205_v32  ;;  %v4938_v45 = vpack.c.bf16 %v1264_v36, %v1244_v35  ;;  %v1426_v32 = vld [vmem:[%s6695_s20 + $0x878] sm:$0xff]  ;;  %v1403_v36 = vld [vmem:[%s6695_s20 + $0x7c0] sm:$0xff]  ;;  %v1525_v16 = vld [vmem:[%s6695_s20 + $0xb90] sm:$0xff] }
 0x56a   : > { %v5082_v41 = vpack.c.bf16 %v1426_v32, %v1406_v31  ;;  %v1565_v31 = vld [vmem:[%s6695_s20 + $0xcd0] sm:$0xff] }
 0x56b   : > { %4793 = vmatpush1.bf16.msra.mxu1 %v4792_v50  ;;  %v1265_v50 = vld [vmem:[%s6695_s20 + $0x370] sm:$0xff] }
 0x56c   : > { %4921 = vmatpush1.bf16.msra.mxu0 %v4920_v51  ;;  %4795 = vmatprep.subr.bf16.mxu1 %v4794_v52  ;;  %v1284_v51 = vld [vmem:[%s6695_s20 + $0x408] sm:$0xff] }
 0x56d   : > { %4923 = vmatprep.subr.bf16.mxu0 %v4922_v57  ;;  %v1304_v52 = vld [vmem:[%s6695_s20 + $0x4a8] sm:$0xff]  ;;  %v5068_v57 = vpack.c.bf16 %v1265_v50, %v1245_v48 }
 0x56e   : > { %v4942_v59 = vpack.c.bf16 %v1304_v52, %v1284_v51  ;;  %v1443_v51 = vld [vmem:[%s6695_s20 + $0x900] sm:$0xff] }
 0x56f   : > { %4797 = vmatpush1.bf16.msra.mxu1 %v4796_v1  ;;  %v1305_v1 = vld [vmem:[%s6695_s20 + $0x4b0] sm:$0xff]  ;;  %v1463_v52 = vld [vmem:[%s6695_s20 + $0x9a0] sm:$0xff] }
 0x570   : > { %4925 = vmatpush1.bf16.msra.mxu0 %v4924_v2  ;;  %4799 = vmatprep.subr.bf16.mxu1 %v4798_v3  ;;  %v1324_v2 = vld [vmem:[%s6695_s20 + $0x548] sm:$0xff] }
 0x571   : > { %4927 = vmatprep.subr.bf16.mxu0 %v4926_v7  ;;  %v1344_v3 = vld [vmem:[%s6695_s20 + $0x5e8] sm:$0xff]  ;;  %v5072_v7 = vpack.c.bf16 %v1305_v1, %v1285_v62  ;;  %v4960_v62 = vpack.c.bf16 %v1463_v52, %v1443_v51  ;;  %v1646_v51 = vld [vmem:[%s6695_s20 + $0xf58] sm:$0xff] }
 0x572   : > { %v4946_v9 = vpack.c.bf16 %v1344_v3, %v1324_v2  ;;  %v1483_v2 = vld [vmem:[%s6695_s20 + $0xa40] sm:$0xff]  ;;  %v1666_v52 = vld [vmem:[%s6695_s20 + $0xff8] sm:$0xff] }
 0x573   : > { %4801 = vmatpush1.bf16.msra.mxu1 %v4800_v38  ;;  %v1345_v38 = vld [vmem:[%s6695_s20 + $0x5f0] sm:$0xff]  ;;  %v1503_v3 = vld [vmem:[%s6695_s20 + $0xae0] sm:$0xff]  ;;  %v5106_v61 = vpack.c.bf16 %v1666_v52, %v1646_v51 }
 0x574   : > { %4929 = vmatpush1.bf16.msra.mxu0 %v4928_v14  ;;  %4931 = vmatprep.subr.bf16.mxu1 %v4930_v15  ;;  %v1364_v14 = vld [vmem:[%s6695_s20 + $0x688] sm:$0xff]  ;;  %v5076_v22 = vpack.c.bf16 %v1345_v38, %v1325_v12  ;;  %v4964_v12 = vpack.c.bf16 %v1503_v3, %v1483_v2  ;;  %v1686_v2 = vld [vmem:[%s6695_s20 + $0x1098] sm:$0xff]  ;;  %v1805_v52 = vld [vmem:[%s6695_s20 + $0x1450] sm:$0xff] }
 0x575   : > { %5059 = vmatprep.subr.bf16.mxu0 %v5058_v21  ;;  %v1384_v15 = vld [vmem:[%s6695_s20 + $0x728] sm:$0xff]  ;;  %v4948_v21 = vpack.c.bf16 %v1343_v11, %v1323_v10  ;;  %v1526_v10 = vld [vmem:[%s6695_s20 + $0xb98] sm:$0xff] }
 0x576   : > { %2961 = vmatmul.mubr.f32.vlgmr.msra.gmra.mrb[8].mxu1 %v7012_v29  ;;  %v4950_v23 = vpack.c.bf16 %v1384_v15, %v1364_v14  ;;  %v1546_v11 = vld [vmem:[%s6695_s20 + $0xc38] sm:$0xff]  ;;  %v1523_v14 = vld [vmem:[%s6695_s20 + $0xb80] sm:$0xff] }
 0x577   : > { %3103 = vmatmul.mubr.f32.vlgmr.msra.gmra.mrb[6].mxu0 %v7012_v29  ;;  %4933 = vmatpush1.bf16.msra.mxu1 %v4932_v26  ;;  %v1365_v26 = vld [vmem:[%s6695_s20 + $0x690] sm:$0xff]  ;;  %v1543_v15 = vld [vmem:[%s6695_s20 + $0xc20] sm:$0xff]  ;;  %v5094_v19 = vpack.c.bf16 %v1546_v11, %v1526_v10  ;;  %v1706_v3 = vld [vmem:[%s6695_s20 + $0x1138] sm:$0xff] }
 0x578   : > { %3173 = vmatprep.mubr.f32.mxu1 %v6866_v58  ;;  %5061 = vmatpush1.bf16.msra.mxu0 %v5060_v44  ;;  %v1404_v44 = vld [vmem:[%s6695_s20 + $0x7c8] sm:$0xff]  ;;  %v5080_v34 = vpack.c.bf16 %v1385_v28, %v1365_v26  ;;  %v4968_v26 = vpack.c.bf16 %v1543_v15, %v1523_v14  ;;  %v1685_v10 = vld [vmem:[%s6695_s20 + $0x1090] sm:$0xff]  ;;  %v5110_v11 = vpack.c.bf16 %v1706_v3, %v1686_v2  ;;  %v1726_v14 = vld [vmem:[%s6695_s20 + $0x11d8] sm:$0xff] }
 0x579   : > { %3315 = vmatprep.mubr.f32.mxu0 %v6866_v58  ;;  %4935 = vmatprep.subr.bf16.mxu1 %v4934_v33  ;;  %v4952_v33 = vpack.c.bf16 %v1383_v25, %v1363_v24  ;;  %v4954_v35 = vpack.c.bf16 %v1424_v30, %v1404_v44  ;;  %v1566_v24 = vld [vmem:[%s6695_s20 + $0xcd8] sm:$0xff]  ;;  %v1563_v44 = vld [vmem:[%s6695_s20 + $0xcc0] sm:$0xff]  ;;  %v1865_v3 = vld [vmem:[%s6695_s20 + $0x1630] sm:$0xff] }
 0x57a   : > { %5063 = vmatprep.subr.bf16.mxu0 %v5062_v37  ;;  %v1423_v37 = vld [vmem:[%s6695_s20 + $0x860] sm:$0xff]  ;;  %v1586_v25 = vld [vmem:[%s6695_s20 + $0xd78] sm:$0xff] }
 0x57b   : > { %4937 = vmatpush1.bf16.msra.mxu1 %v4936_v42  ;;  %v1425_v42 = vld [vmem:[%s6695_s20 + $0x870] sm:$0xff]  ;;  %v4956_v48 = vpack.c.bf16 %v1423_v37, %v1403_v36  ;;  %v1583_v30 = vld [vmem:[%s6695_s20 + $0xd60] sm:$0xff]  ;;  %v5098_v32 = vpack.c.bf16 %v1586_v25, %v1566_v24  ;;  %v1606_v36 = vld [vmem:[%s6695_s20 + $0xe18] sm:$0xff] }
 0x57c   : > { %5065 = vmatpush1.bf16.msra.mxu0 %v5064_v43  ;;  %4939 = vmatprep.subr.bf16.mxu1 %v4938_v45  ;;  %v1444_v43 = vld [vmem:[%s6695_s20 + $0x908] sm:$0xff]  ;;  %v1626_v37 = vld [vmem:[%s6695_s20 + $0xeb8] sm:$0xff]  ;;  %v1725_v24 = vld [vmem:[%s6695_s20 + $0x11d0] sm:$0xff] }
 0x57d   : > { %5067 = vmatprep.subr.bf16.mxu0 %v5066_v49  ;;  %v1464_v45 = vld [vmem:[%s6695_s20 + $0x9a8] sm:$0xff]  ;;  %v5084_v49 = vpack.c.bf16 %v1425_v42, %v1405_v40  ;;  %v4972_v40 = vpack.c.bf16 %v1583_v30, %v1563_v44  ;;  %v5102_v47 = vpack.c.bf16 %v1626_v37, %v1606_v36  ;;  %v1746_v15 = vld [vmem:[%s6695_s20 + $0x1278] sm:$0xff]  ;;  %v1765_v36 = vld [vmem:[%s6695_s20 + $0x1310] sm:$0xff] }
 0x57e   : > { %v4958_v50 = vpack.c.bf16 %v1464_v45, %v1444_v43  ;;  %v1603_v43 = vld [vmem:[%s6695_s20 + $0xe00] sm:$0xff]  ;;  %v5114_v25 = vpack.c.bf16 %v1746_v15, %v1726_v14  ;;  %v1766_v44 = vld [vmem:[%s6695_s20 + $0x1318] sm:$0xff]  ;;  %v1885_v14 = vld [vmem:[%s6695_s20 + $0x16d0] sm:$0xff] }
 0x57f   : > { %4941 = vmatpush1.bf16.msra.mxu1 %v4940_v56  ;;  %v1465_v56 = vld [vmem:[%s6695_s20 + $0x9b0] sm:$0xff]  ;;  %v1623_v45 = vld [vmem:[%s6695_s20 + $0xea0] sm:$0xff]  ;;  %v1786_v30 = vld [vmem:[%s6695_s20 + $0x13b8] sm:$0xff] }
 0x580   : > { %5069 = vmatpush1.bf16.msra.mxu0 %v5068_v57  ;;  %4943 = vmatprep.subr.bf16.mxu1 %v4942_v59  ;;  %v1484_v57 = vld [vmem:[%s6695_s20 + $0xa48] sm:$0xff]  ;;  %v5118_v37 = vpack.c.bf16 %v1786_v30, %v1766_v44  ;;  %v1925_v44 = vld [vmem:[%s6695_s20 + $0x1810] sm:$0xff] }
 0x581   : > { %5071 = vmatprep.subr.bf16.mxu0 %v5070_v0  ;;  %v1504_v59 = vld [vmem:[%s6695_s20 + $0xae8] sm:$0xff]  ;;  %v5088_v0 = vpack.c.bf16 %v1465_v56, %v1445_v54  ;;  %v4976_v54 = vpack.c.bf16 %v1623_v45, %v1603_v43  ;;  %v1806_v43 = vld [vmem:[%s6695_s20 + $0x1458] sm:$0xff] }
 0x582   : > { %v4962_v1 = vpack.c.bf16 %v1504_v59, %v1484_v57  ;;  %v1643_v57 = vld [vmem:[%s6695_s20 + $0xf40] sm:$0xff]  ;;  %v1826_v45 = vld [vmem:[%s6695_s20 + $0x14f8] sm:$0xff] }
 0x583   : > { %4945 = vmatpush1.bf16.msra.mxu1 %v4944_v6  ;;  %v1505_v6 = vld [vmem:[%s6695_s20 + $0xaf0] sm:$0xff]  ;;  %v1663_v59 = vld [vmem:[%s6695_s20 + $0xfe0] sm:$0xff]  ;;  %v5122_v51 = vpack.c.bf16 %v1826_v45, %v1806_v43 }
 0x584   : > { %5073 = vmatpush1.bf16.msra.mxu0 %v5072_v7  ;;  %4947 = vmatprep.subr.bf16.mxu1 %v4946_v9  ;;  %v1524_v7 = vld [vmem:[%s6695_s20 + $0xb88] sm:$0xff]  ;;  %v1965_v43 = vld [vmem:[%s6695_s20 + $0x1950] sm:$0xff] }
 0x585   : > { %5075 = vmatprep.subr.bf16.mxu0 %v5074_v13  ;;  %v1544_v9 = vld [vmem:[%s6695_s20 + $0xc28] sm:$0xff]  ;;  %v5092_v13 = vpack.c.bf16 %v1505_v6, %v1485_v4  ;;  %v4980_v4 = vpack.c.bf16 %v1663_v59, %v1643_v57  ;;  %v1846_v59 = vld [vmem:[%s6695_s20 + $0x1598] sm:$0xff] }
 0x586   : > { %v4966_v38 = vpack.c.bf16 %v1544_v9, %v1524_v7  ;;  %v1683_v7 = vld [vmem:[%s6695_s20 + $0x1080] sm:$0xff] }
 0x587   : > { %4949 = vmatpush1.bf16.msra.mxu1 %v4948_v21  ;;  %v1545_v21 = vld [vmem:[%s6695_s20 + $0xc30] sm:$0xff]  ;;  %v1703_v9 = vld [vmem:[%s6695_s20 + $0x1120] sm:$0xff] }
 0x588   : > { %5077 = vmatpush1.bf16.msra.mxu0 %v5076_v22  ;;  %4951 = vmatprep.subr.bf16.mxu1 %v4950_v23  ;;  %v1564_v22 = vld [vmem:[%s6695_s20 + $0xcc8] sm:$0xff] }
 0x589   : > { %5079 = vmatprep.subr.bf16.mxu0 %v5078_v27  ;;  %v1584_v23 = vld [vmem:[%s6695_s20 + $0xd68] sm:$0xff]  ;;  %v5096_v27 = vpack.c.bf16 %v1545_v21, %v1525_v16  ;;  %v4984_v16 = vpack.c.bf16 %v1703_v9, %v1683_v7  ;;  %v1886_v7 = vld [vmem:[%s6695_s20 + $0x16d8] sm:$0xff] }
 0x58a   : > { %v4970_v28 = vpack.c.bf16 %v1584_v23, %v1564_v22  ;;  %v1723_v22 = vld [vmem:[%s6695_s20 + $0x11c0] sm:$0xff]  ;;  %v1906_v9 = vld [vmem:[%s6695_s20 + $0x1778] sm:$0xff] }
 0x58b   : > { %4953 = vmatpush1.bf16.msra.mxu1 %v4952_v33  ;;  %v1585_v33 = vld [vmem:[%s6695_s20 + $0xd70] sm:$0xff]  ;;  %v1743_v23 = vld [vmem:[%s6695_s20 + $0x1260] sm:$0xff]  ;;  %v5130_v15 = vpack.c.bf16 %v1906_v9, %v1886_v7 }
 0x58c   : > { %5081 = vmatpush1.bf16.msra.mxu0 %v5080_v34  ;;  %4955 = vmatprep.subr.bf16.mxu1 %v4954_v35  ;;  %v1604_v34 = vld [vmem:[%s6695_s20 + $0xe08] sm:$0xff] }
 0x58d   : > { %5083 = vmatprep.subr.bf16.mxu0 %v5082_v41  ;;  %v1624_v35 = vld [vmem:[%s6695_s20 + $0xea8] sm:$0xff]  ;;  %v5100_v41 = vpack.c.bf16 %v1585_v33, %v1565_v31  ;;  %v4988_v31 = vpack.c.bf16 %v1743_v23, %v1723_v22  ;;  %v1926_v22 = vld [vmem:[%s6695_s20 + $0x1818] sm:$0xff] }
 0x58e   : > { %v4974_v42 = vpack.c.bf16 %v1624_v35, %v1604_v34  ;;  %v1763_v34 = vld [vmem:[%s6695_s20 + $0x1300] sm:$0xff]  ;;  %v1946_v23 = vld [vmem:[%s6695_s20 + $0x18b8] sm:$0xff] }
 0x58f   : > { %4957 = vmatpush1.bf16.msra.mxu1 %v4956_v48  ;;  %v1625_v48 = vld [vmem:[%s6695_s20 + $0xeb0] sm:$0xff]  ;;  %v1783_v35 = vld [vmem:[%s6695_s20 + $0x13a0] sm:$0xff]  ;;  %v5134_v30 = vpack.c.bf16 %v1946_v23, %v1926_v22 }
 0x590   : > { %5085 = vmatpush1.bf16.msra.mxu0 %v5084_v49  ;;  %4959 = vmatprep.subr.bf16.mxu1 %v4958_v50  ;;  %v1644_v49 = vld [vmem:[%s6695_s20 + $0xf48] sm:$0xff] }
 0x591   : > { %5087 = vmatprep.subr.bf16.mxu0 %v5086_v55  ;;  %v1664_v50 = vld [vmem:[%s6695_s20 + $0xfe8] sm:$0xff]  ;;  %v5104_v55 = vpack.c.bf16 %v1625_v48, %v1605_v46  ;;  %v4992_v46 = vpack.c.bf16 %v1783_v35, %v1763_v34  ;;  %v1966_v34 = vld [vmem:[%s6695_s20 + $0x1958] sm:$0xff] }
 0x592   : > { %v4978_v56 = vpack.c.bf16 %v1664_v50, %v1644_v49  ;;  %v1803_v49 = vld [vmem:[%s6695_s20 + $0x1440] sm:$0xff]  ;;  %v1986_v35 = vld [vmem:[%s6695_s20 + $0x19f8] sm:$0xff] }
 0x593   : > { %4961 = vmatpush1.bf16.msra.mxu1 %v4960_v62  ;;  %v1665_v62 = vld [vmem:[%s6695_s20 + $0xff0] sm:$0xff]  ;;  %v1823_v50 = vld [vmem:[%s6695_s20 + $0x14e0] sm:$0xff]  ;;  %v5138_v45 = vpack.c.bf16 %v1986_v35, %v1966_v34 }
 0x594   : > { %5089 = vmatpush1.bf16.msra.mxu0 %v5088_v0  ;;  %4963 = vmatprep.subr.bf16.mxu1 %v4962_v1  ;;  %v1684_v0 = vld [vmem:[%s6695_s20 + $0x1088] sm:$0xff]  ;;  %v4996_v57 = vpack.c.bf16 %v1823_v50, %v1803_v49  ;;  %v2006_v49 = vld [vmem:[%s6695_s20 + $0x1a98] sm:$0xff]  ;;  %v2083_v35 = vld [vmem:[%s6695_s20 + $0x1d00] sm:$0xff] }
 0x595   : > { %5091 = vmatprep.subr.bf16.mxu0 %v5090_v5  ;;  %v1704_v1 = vld [vmem:[%s6695_s20 + $0x1128] sm:$0xff]  ;;  %v5108_v5 = vpack.c.bf16 %v1665_v62, %v1645_v60  ;;  %v1866_v60 = vld [vmem:[%s6695_s20 + $0x1638] sm:$0xff]  ;;  %v1843_v62 = vld [vmem:[%s6695_s20 + $0x1580] sm:$0xff] }
 0x596   : > { %v4982_v6 = vpack.c.bf16 %v1704_v1, %v1684_v0  ;;  %v1863_v0 = vld [vmem:[%s6695_s20 + $0x1620] sm:$0xff]  ;;  %v1845_v1 = vld [vmem:[%s6695_s20 + $0x1590] sm:$0xff]  ;;  %v2026_v50 = vld [vmem:[%s6695_s20 + $0x1b38] sm:$0xff] }
 0x597   : > { %4965 = vmatpush1.bf16.msra.mxu1 %v4964_v12  ;;  %v1705_v12 = vld [vmem:[%s6695_s20 + $0x1130] sm:$0xff] }
 0x598   : > { %5093 = vmatpush1.bf16.msra.mxu0 %v5092_v13  ;;  %4967 = vmatprep.subr.bf16.mxu1 %v4966_v38  ;;  %v1724_v13 = vld [vmem:[%s6695_s20 + $0x11c8] sm:$0xff] }
 0x599   : > { %5095 = vmatprep.subr.bf16.mxu0 %v5094_v19  ;;  %v1744_v38 = vld [vmem:[%s6695_s20 + $0x1268] sm:$0xff]  ;;  %v5112_v19 = vpack.c.bf16 %v1705_v12, %v1685_v10  ;;  %v5000_v10 = vpack.c.bf16 %v1863_v0, %v1843_v62 }
 0x59a   : > { %v4986_v21 = vpack.c.bf16 %v1744_v38, %v1724_v13  ;;  %v1883_v13 = vld [vmem:[%s6695_s20 + $0x16c0] sm:$0xff]  ;;  %v2044_v62 = vld [vmem:[%s6695_s20 + $0x1bc8] sm:$0xff] }
 0x59b   : > { %4969 = vmatpush1.bf16.msra.mxu1 %v4968_v26  ;;  %v1745_v26 = vld [vmem:[%s6695_s20 + $0x1270] sm:$0xff]  ;;  %v1903_v38 = vld [vmem:[%s6695_s20 + $0x1760] sm:$0xff]  ;;  %v2064_v0 = vld [vmem:[%s6695_s20 + $0x1c68] sm:$0xff] }
 0x59c   : > { %5097 = vmatpush1.bf16.msra.mxu0 %v5096_v27  ;;  %4971 = vmatprep.subr.bf16.mxu1 %v4970_v28  ;;  %v1764_v27 = vld [vmem:[%s6695_s20 + $0x1308] sm:$0xff] }
 0x59d   : > { %5099 = vmatprep.subr.bf16.mxu0 %v5098_v32  ;;  %v1784_v28 = vld [vmem:[%s6695_s20 + $0x13a8] sm:$0xff]  ;;  %v5116_v32 = vpack.c.bf16 %v1745_v26, %v1725_v24  ;;  %v5004_v24 = vpack.c.bf16 %v1903_v38, %v1883_v13  ;;  %v2045_v13 = vld [vmem:[%s6695_s20 + $0x1bd0] sm:$0xff] }
 0x59e   : > { %v4990_v33 = vpack.c.bf16 %v1784_v28, %v1764_v27  ;;  %v1923_v27 = vld [vmem:[%s6695_s20 + $0x1800] sm:$0xff] }
 0x59f   : > { %4973 = vmatpush1.bf16.msra.mxu1 %v4972_v40  ;;  %v1785_v40 = vld [vmem:[%s6695_s20 + $0x13b0] sm:$0xff]  ;;  %v1943_v28 = vld [vmem:[%s6695_s20 + $0x18a0] sm:$0xff] }
 0x5a0   : > { %5101 = vmatpush1.bf16.msra.mxu0 %v5100_v41  ;;  %4975 = vmatprep.subr.bf16.mxu1 %v4974_v42  ;;  %v1804_v41 = vld [vmem:[%s6695_s20 + $0x1448] sm:$0xff] }
 0x5a1   : > { %5103 = vmatprep.subr.bf16.mxu0 %v5102_v47  ;;  %v1824_v42 = vld [vmem:[%s6695_s20 + $0x14e8] sm:$0xff]  ;;  %v5120_v47 = vpack.c.bf16 %v1785_v40, %v1765_v36  ;;  %v5008_v36 = vpack.c.bf16 %v1943_v28, %v1923_v27  ;;  %v2106_v27 = vld [vmem:[%s6695_s20 + $0x1db8] sm:$0xff] }
 0x5a2   : > { %v4994_v48 = vpack.c.bf16 %v1824_v42, %v1804_v41  ;;  %v1963_v41 = vld [vmem:[%s6695_s20 + $0x1940] sm:$0xff] }
 0x5a3   : > { %4977 = vmatpush1.bf16.msra.mxu1 %v4976_v54  ;;  %v1825_v54 = vld [vmem:[%s6695_s20 + $0x14f0] sm:$0xff]  ;;  %v1983_v42 = vld [vmem:[%s6695_s20 + $0x19e0] sm:$0xff] }
 0x5a4   : > { %5105 = vmatpush1.bf16.msra.mxu0 %v5104_v55  ;;  %4979 = vmatprep.subr.bf16.mxu1 %v4978_v56  ;;  %v1844_v55 = vld [vmem:[%s6695_s20 + $0x1588] sm:$0xff] }
 0x5a5   : > { %5107 = vmatprep.subr.bf16.mxu0 %v5106_v61  ;;  %v1864_v56 = vld [vmem:[%s6695_s20 + $0x1628] sm:$0xff]  ;;  %v5124_v61 = vpack.c.bf16 %v1825_v54, %v1805_v52  ;;  %v2435_v52 = vld [vmem:[%s7458_s17] sm:$0xff] }
 0x5a6   : > { %v4998_v2 = vpack.c.bf16 %v1864_v56, %v1844_v55  ;;  %v2003_v56 = vld [vmem:[%s6695_s20 + $0x1a80] sm:$0xff] }
 0x5a7   : > { %4981 = vmatpush1.bf16.msra.mxu1 %v4980_v4  ;;  %v1884_v4 = vld [vmem:[%s6695_s20 + $0x16c8] sm:$0xff] }
 0x5a8   : > { %5109 = vmatpush1.bf16.msra.mxu0 %v5108_v5  ;;  %4983 = vmatprep.subr.bf16.mxu1 %v4982_v6  ;;  %v1904_v5 = vld [vmem:[%s6695_s20 + $0x1768] sm:$0xff]  ;;  %v5126_v6 = vpack.c.bf16 %v1866_v60, %v1846_v59  ;;  %v2005_v59 = vld [vmem:[%s6695_s20 + $0x1a90] sm:$0xff]  ;;  %v5142_v60 = vpack.c.bf16 %v2026_v50, %v2006_v49 }
 0x5a9   : > { %5111 = vmatprep.subr.bf16.mxu0 %v5110_v11  ;;  %v5128_v11 = vpack.c.bf16 %v1865_v3, %v1845_v1  ;;  %v5002_v12 = vpack.c.bf16 %v1904_v5, %v1884_v4  ;;  %v2444_v1 = vrot.slane %v2435_v52, %v6710_v18  ;;  %v2046_v3 = vld [vmem:[%s6695_s20 + $0x1bd8] sm:$0xff]  ;;  %v2448_v5 = vrot.slane %v2435_v52, %v6713_v20 }
 0x5aa   : > { %v2066_v4 = vld [vmem:[%s6695_s20 + $0x1c78] sm:$0xff] }
 0x5ab   : > { %4985 = vmatpush1.bf16.msra.mxu1 %v4984_v16  ;;  %v1905_v16 = vld [vmem:[%s6695_s20 + $0x1770] sm:$0xff] }
 0x5ac   : > { %5113 = vmatpush1.bf16.msra.mxu0 %v5112_v19  ;;  %4987 = vmatprep.subr.bf16.mxu1 %v4986_v21  ;;  %v1924_v19 = vld [vmem:[%s6695_s20 + $0x1808] sm:$0xff] }
 0x5ad   : > { %5115 = vmatprep.subr.bf16.mxu0 %v5114_v25  ;;  %v1944_v21 = vld [vmem:[%s6695_s20 + $0x18a8] sm:$0xff]  ;;  %v5132_v25 = vpack.c.bf16 %v1905_v16, %v1885_v14  ;;  %v2065_v16 = vld [vmem:[%s6695_s20 + $0x1c70] sm:$0xff] }
 0x5ae   : > { %v5006_v26 = vpack.c.bf16 %v1944_v21, %v1924_v19  ;;  %v2084_v19 = vld [vmem:[%s6695_s20 + $0x1d08] sm:$0xff] }
 0x5af   : > { %4989 = vmatpush1.bf16.msra.mxu1 %v4988_v31  ;;  %v1945_v31 = vld [vmem:[%s6695_s20 + $0x18b0] sm:$0xff]  ;;  %v2104_v21 = vld [vmem:[%s6695_s20 + $0x1da8] sm:$0xff] }
 0x5b0   : > { %5117 = vmatpush1.bf16.msra.mxu0 %v5116_v32  ;;  %4991 = vmatprep.subr.bf16.mxu1 %v4990_v33  ;;  %v1964_v32 = vld [vmem:[%s6695_s20 + $0x1948] sm:$0xff]  ;;  %v5022_v34 = vpack.c.bf16 %v2104_v21, %v2084_v19  ;;  %v2205_v19 = vld [vmem:[%s6695_s20 + $0x20d0] sm:$0xff] }
 0x5b1   : > { %5119 = vmatprep.subr.bf16.mxu0 %v5118_v37  ;;  %v1984_v33 = vld [vmem:[%s6695_s20 + $0x19e8] sm:$0xff]  ;;  %v5136_v37 = vpack.c.bf16 %v1945_v31, %v1925_v44 }
 0x5b2   : > { %v5010_v40 = vpack.c.bf16 %v1984_v33, %v1964_v32  ;;  %v5148_v33 = vpack.c.bf16 %v2065_v16, %v2045_v13  ;;  %v2223_v16 = vld [vmem:[%s6695_s20 + $0x2160] sm:$0xff] }
 0x5b3   : > { %4993 = vmatpush1.bf16.msra.mxu1 %v4992_v46  ;;  %v1985_v46 = vld [vmem:[%s6695_s20 + $0x19f0] sm:$0xff] }
 0x5b4   : > { %5121 = vmatpush1.bf16.msra.mxu0 %v5120_v47  ;;  %4995 = vmatprep.subr.bf16.mxu1 %v4994_v48  ;;  %v2004_v47 = vld [vmem:[%s6695_s20 + $0x1a88] sm:$0xff]  ;;  %v5140_v54 = vpack.c.bf16 %v1985_v46, %v1965_v43  ;;  %v2105_v43 = vld [vmem:[%s6695_s20 + $0x1db0] sm:$0xff] }
 0x5b5   : > { %5123 = vmatprep.subr.bf16.mxu0 %v5122_v51  ;;  %v2024_v48 = vld [vmem:[%s6695_s20 + $0x1b28] sm:$0xff]  ;;  %v5012_v51 = vpack.c.bf16 %v1983_v42, %v1963_v41 }
 0x5b6   : > { %3174 = vmatmul.mubr.f32.vlgmr.msra.gmra.mrb[10].mxu1 %v6870_v63  ;;  %v5014_v55 = vpack.c.bf16 %v2024_v48, %v2004_v47  ;;  %v2144_v46 = vld [vmem:[%s6695_s20 + $0x1ee8] sm:$0xff]  ;;  %v2126_v47 = vld [vmem:[%s6695_s20 + $0x1e58] sm:$0xff] }
 0x5b7   : > { %3316 = vmatmul.mubr.f32.vlgmr.msra.gmra.mrb[8].mxu0 %v6870_v63  ;;  %4997 = vmatpush1.bf16.msra.mxu1 %v4996_v57  ;;  %v2023_v57 = vld [vmem:[%s6695_s20 + $0x1b20] sm:$0xff]  ;;  %v2146_v48 = vld [vmem:[%s6695_s20 + $0x1ef8] sm:$0xff] }
 0x5b8   : > { %3244 = vmatprep.mubr.f32.mxu1 %v6880_v8  ;;  %5125 = vmatpush1.bf16.msra.mxu0 %v5124_v61  ;;  %v2025_v61 = vld [vmem:[%s6695_s20 + $0x1b30] sm:$0xff]  ;;  %v5016_v7 = vpack.c.bf16 %v2023_v57, %v2003_v56  ;;  %v5154_v56 = vpack.c.bf16 %v2146_v48, %v2126_v47 }
 0x5b9   : > { %3386 = vmatprep.mubr.f32.mxu0 %v6880_v8  ;;  %4999 = vmatprep.subr.bf16.mxu1 %v4998_v2  ;;  %v2452_v2 = vrot.slane %v2435_v52, %v6985_v53  ;;  %v5144_v9 = vpack.c.bf16 %v2025_v61, %v2005_v59  ;;  %v2145_v57 = vld [vmem:[%s6695_s20 + $0x1ef0] sm:$0xff]  ;;  %v2164_v59 = vld [vmem:[%s6695_s20 + $0x1f88] sm:$0xff]  ;;  %v2166_v61 = vld [vmem:[%s6695_s20 + $0x1f98] sm:$0xff] }
 0x5ba   : > { %5127 = vmatprep.subr.bf16.mxu0 %v5126_v6  ;;  %v2456_v6 = vrot.slane %v2435_v52, %v6848_v39  ;;  %v2123_v52 = vld [vmem:[%s6695_s20 + $0x1e40] sm:$0xff]  ;;  %v2285_v47 = vld [vmem:[%s6695_s20 + $0x2350] sm:$0xff] }
 0x5bb   : > { %5001 = vmatpush1.bf16.msra.mxu1 %v5000_v10  ;;  %v5018_v10 = vpack.c.bf16 %v2064_v0, %v2044_v62  ;;  %v2186_v62 = vld [vmem:[%s6695_s20 + $0x2038] sm:$0xff] }
 0x5bc   : > { %5129 = vmatpush1.bf16.msra.mxu0 %v5128_v11  ;;  %5003 = vmatprep.subr.bf16.mxu1 %v5002_v12  ;;  %v2043_v11 = vld [vmem:[%s6695_s20 + $0x1bc0] sm:$0xff] }
 0x5bd   : > { %5131 = vmatprep.subr.bf16.mxu0 %v5130_v15  ;;  %v2063_v12 = vld [vmem:[%s6695_s20 + $0x1c60] sm:$0xff]  ;;  %v5146_v15 = vpack.c.bf16 %v2066_v4, %v2046_v3 }
 0x5be   : > { %v2163_v3 = vld [vmem:[%s6695_s20 + $0x1f80] sm:$0xff] }
 0x5bf   : > { %5005 = vmatpush1.bf16.msra.mxu1 %v5004_v24  ;;  %v2183_v4 = vld [vmem:[%s6695_s20 + $0x2020] sm:$0xff] }
 0x5c0   : > { %5133 = vmatpush1.bf16.msra.mxu0 %v5132_v25  ;;  %5007 = vmatprep.subr.bf16.mxu1 %v5006_v26  ;;  %v2086_v26 = vld [vmem:[%s6695_s20 + $0x1d18] sm:$0xff]  ;;  %v5032_v13 = vpack.c.bf16 %v2183_v4, %v2163_v3 }
 0x5c1   : > { %5135 = vmatprep.subr.bf16.mxu0 %v5134_v30  ;;  %v5020_v30 = vpack.c.bf16 %v2063_v12, %v2043_v11  ;;  %v5150_v42 = vpack.c.bf16 %v2106_v27, %v2086_v26  ;;  %v2206_v11 = vld [vmem:[%s6695_s20 + $0x20d8] sm:$0xff] }
 0x5c2   : > { %v2226_v12 = vld [vmem:[%s6695_s20 + $0x2178] sm:$0xff] }
 0x5c3   : > { %5009 = vmatpush1.bf16.msra.mxu1 %v5008_v36  ;;  %v2103_v36 = vld [vmem:[%s6695_s20 + $0x1da0] sm:$0xff]  ;;  %v5162_v21 = vpack.c.bf16 %v2226_v12, %v2206_v11  ;;  %v2266_v26 = vld [vmem:[%s6695_s20 + $0x22b8] sm:$0xff]  ;;  %v2365_v11 = vld [vmem:[%s6695_s20 + $0x25d0] sm:$0xff] }
 0x5c4   : > { %5137 = vmatpush1.bf16.msra.mxu0 %v5136_v37  ;;  %5011 = vmatprep.subr.bf16.mxu1 %v5010_v40  ;;  %v2085_v37 = vld [vmem:[%s6695_s20 + $0x1d10] sm:$0xff]  ;;  %v5024_v49 = vpack.c.bf16 %v2103_v36, %v2083_v35  ;;  %v2284_v35 = vld [vmem:[%s6695_s20 + $0x2348] sm:$0xff]  ;;  %v2366_v3 = vld [vmem:[%s6695_s20 + $0x25d8] sm:$0xff] }
 0x5c5   : > { %5139 = vmatprep.subr.bf16.mxu0 %v5138_v45  ;;  %v2124_v45 = vld [vmem:[%s6695_s20 + $0x1e48] sm:$0xff]  ;;  %v5152_v50 = vpack.c.bf16 %v2105_v43, %v2085_v37  ;;  %v2286_v37 = vld [vmem:[%s6695_s20 + $0x2358] sm:$0xff] }
 0x5c6   : > { %v2304_v36 = vld [vmem:[%s6695_s20 + $0x23e8] sm:$0xff]  ;;  %v2386_v4 = vld [vmem:[%s6695_s20 + $0x2678] sm:$0xff] }
 0x5c7   : > { %5013 = vmatpush1.bf16.msra.mxu1 %v5012_v51  ;;  %v5026_v51 = vpack.c.bf16 %v2144_v46, %v2124_v45  ;;  %v5042_v43 = vpack.c.bf16 %v2304_v36, %v2284_v35  ;;  %v2283_v45 = vld [vmem:[%s6695_s20 + $0x2340] sm:$0xff]  ;;  %v5178_v12 = vpack.c.bf16 %v2386_v4, %v2366_v3  ;;  %v1249_v3 = vld [vmem:[%s6695_s20 + $0x2f0] sm:$0xff] }
 0x5c8   : > { %5141 = vmatpush1.bf16.msra.mxu0 %v5140_v54  ;;  %5015 = vmatprep.subr.bf16.mxu1 %v5014_v55  ;;  %v2143_v54 = vld [vmem:[%s6695_s20 + $0x1ee0] sm:$0xff]  ;;  %v2125_v55 = vld [vmem:[%s6695_s20 + $0x1e50] sm:$0xff] }
 0x5c9   : > { %v2678_v38 = vpop.f32.mrb[6].mxu1  ;;  %v2820_v14 = vpop.f32.mrb[4].mxu0  ;;  %5143 = vmatprep.subr.bf16.mxu0 %v5142_v60  ;;  %v2184_v60 = vld [vmem:[%s6695_s20 + $0x2028] sm:$0xff]  ;;  %v5028_v0 = vpack.c.bf16 %v2143_v54, %v2123_v52  ;;  %v2303_v46 = vld [vmem:[%s6695_s20 + $0x23e0] sm:$0xff]  ;;  %v2326_v52 = vld [vmem:[%s6695_s20 + $0x2498] sm:$0xff] }
 0x5ca   : > { %v5698_v22 = vadd.f32 %v2678_v38, %v2444_v1  ;;  %v5700_v23 = vadd.f32 %v2820_v14, %v2452_v2  ;;  %v2680_v24 = vpop.f32.mrb[7].mxu1  ;;  %v2822_v25 = vpop.f32.mrb[5].mxu0  ;;  %v5156_v1 = vpack.c.bf16 %v2145_v57, %v2125_v55  ;;  %v5030_v2 = vpack.c.bf16 %v2184_v60, %v2164_v59  ;;  %v2346_v54 = vld [vmem:[%s6695_s20 + $0x2538] sm:$0xff]  ;;  %v2323_v59 = vld [vmem:[%s6695_s20 + $0x2480] sm:$0xff] }
 0x5cb   : > { %v5699_v28 = vadd.f32 %v2680_v24, %v2448_v5  ;;  %v5701_v44 = vadd.f32 %v2822_v25, %v2456_v6  ;;  %5017 = vmatpush1.bf16.msra.mxu1 %v5016_v7  ;;  %v2165_v5 = vld [vmem:[%s6695_s20 + $0x1f90] sm:$0xff]  ;;  %v5158_v6 = vpack.c.bf16 %v2186_v62, %v2166_v61  ;;  %v2264_v24 = vld [vmem:[%s6695_s20 + $0x22a8] sm:$0xff]  ;;  %v2246_v25 = vld [vmem:[%s6695_s20 + $0x2218] sm:$0xff]  ;;  %v5044_v55 = vpack.c.bf16 %v2303_v46, %v2283_v45 }
 0x5cc   : > { %v3961_v31 = vmax.f32 %v5698_v22, 0.0  ;;  %v3963_v32 = vmax.f32 %v5700_v23, 0.0  ;;  %5145 = vmatpush1.bf16.msra.mxu0 %v5144_v9  ;;  %5019 = vmatprep.subr.bf16.mxu1 %v5018_v10  ;;  %v2185_v7 = vld [vmem:[%s6695_s20 + $0x2030] sm:$0xff]  ;;  %v2204_v9 = vld [vmem:[%s6695_s20 + $0x20c8] sm:$0xff]  ;;  %v2343_v60 = vld [vmem:[%s6695_s20 + $0x2520] sm:$0xff]  ;;  %v5174_v62 = vpack.c.bf16 %v2346_v54, %v2326_v52 }
 0x5cd   : > { %v3962_v40 = vmax.f32 %v5699_v28, 0.0  ;;  %v3964_v41 = vmax.f32 %v5701_v44, 0.0  ;;  %5147 = vmatprep.subr.bf16.mxu0 %v5146_v15  ;;  %v2224_v10 = vld [vmem:[%s6695_s20 + $0x2168] sm:$0xff]  ;;  %v5160_v38 = vpack.c.bf16 %v2185_v7, %v2165_v5  ;;  %v2203_v15 = vld [vmem:[%s6695_s20 + $0x20c0] sm:$0xff]  ;;  %v2225_v22 = vld [vmem:[%s6695_s20 + $0x2170] sm:$0xff]  ;;  %v5048_v5 = vpack.c.bf16 %v2343_v60, %v2323_v59 }
 0x5ce   : > { %3981 = vst [vmem:[%s7491_s14] sm:$0xff] %v3961_v31  ;;  %3983 = vst [vmem:[%s7491_s14 + $0x10] sm:$0xff] %v3963_v32  ;;  %v5034_v14 = vpack.c.bf16 %v2224_v10, %v2204_v9  ;;  %v2244_v23 = vld [vmem:[%s6695_s20 + $0x2208] sm:$0xff]  ;;  %v5036_v27 = vpack.c.bf16 %v2223_v16, %v2203_v15  ;;  %v5164_v28 = vpack.c.bf16 %v2225_v22, %v2205_v19  ;;  %v2263_v31 = vld [vmem:[%s6695_s20 + $0x22a0] sm:$0xff] }
 0x5cf   : > { %3982 = vst [vmem:[%s7491_s14 + $0x8] sm:$0xff] %v3962_v40  ;;  %3984 = vst [vmem:[%s7491_s14 + $0x18] sm:$0xff] %v3964_v41  ;;  %5021 = vmatpush1.bf16.msra.mxu1 %v5020_v30  ;;  %v5038_v44 = vpack.c.bf16 %v2264_v24, %v2244_v23  ;;  %v2243_v30 = vld [vmem:[%s6695_s20 + $0x2200] sm:$0xff]  ;;  %v2245_v32 = vld [vmem:[%s6695_s20 + $0x2210] sm:$0xff] }
 0x5d0   : > { %5149 = vmatpush1.bf16.msra.mxu0 %v5148_v33  ;;  %5023 = vmatprep.subr.bf16.mxu1 %v5022_v34  ;;  %v5166_v33 = vpack.c.bf16 %v2266_v26, %v2246_v25  ;;  %v2265_v34 = vld [vmem:[%s6695_s20 + $0x22b0] sm:$0xff]  ;;  %v2306_v40 = vld [vmem:[%s6695_s20 + $0x23f8] sm:$0xff]  ;;  %v5040_v41 = vpack.c.bf16 %v2263_v31, %v2243_v30  ;;  %v2363_v9 = vld [vmem:[%s6695_s20 + $0x25c0] sm:$0xff] }
 0x5d1   : > { %5151 = vmatprep.subr.bf16.mxu0 %v5150_v42  ;;  %v5168_v42 = vpack.c.bf16 %v2265_v34, %v2245_v32  ;;  %v5170_v48 = vpack.c.bf16 %v2306_v40, %v2286_v37  ;;  %v2325_v61 = vld [vmem:[%s6695_s20 + $0x2490] sm:$0xff]  ;;  %v2383_v10 = vld [vmem:[%s6695_s20 + $0x2660] sm:$0xff]  ;;  %v2406_v15 = vld [vmem:[%s6695_s20 + $0x2718] sm:$0xff] }
 0x5d2   : > { %v2426_v16 = vld [vmem:[%s6695_s20 + $0x27b8] sm:$0xff]  ;;  %v5052_v19 = vpack.c.bf16 %v2383_v10, %v2363_v9  ;;  %v2403_v23 = vld [vmem:[%s6695_s20 + $0x2700] sm:$0xff]  ;;  %v2405_v25 = vld [vmem:[%s6695_s20 + $0x2710] sm:$0xff] }
 0x5d3   : > { %5025 = vmatpush1.bf16.msra.mxu1 %v5024_v49  ;;  %v2305_v49 = vld [vmem:[%s6695_s20 + $0x23f0] sm:$0xff]  ;;  %v2423_v24 = vld [vmem:[%s6695_s20 + $0x27a0] sm:$0xff]  ;;  %v5182_v26 = vpack.c.bf16 %v2426_v16, %v2406_v15  ;;  %v1170_v30 = vld [vmem:[%s6695_s20 + $0x78] sm:$0xff] }
 0x5d4   : > { %5153 = vmatpush1.bf16.msra.mxu0 %v5152_v50  ;;  %5027 = vmatprep.subr.bf16.mxu1 %v5026_v51  ;;  %v2324_v50 = vld [vmem:[%s6695_s20 + $0x2488] sm:$0xff]  ;;  %v1190_v31 = vld [vmem:[%s6695_s20 + $0x118] sm:$0xff]  ;;  %v5056_v32 = vpack.c.bf16 %v2423_v24, %v2403_v23  ;;  %v1167_v35 = vld [vmem:[%s6695_s20 + $0x60] sm:$0xff] }
 0x5d5   : > { %5155 = vmatprep.subr.bf16.mxu0 %v5154_v56  ;;  %v2344_v51 = vld [vmem:[%s6695_s20 + $0x2528] sm:$0xff]  ;;  %v5172_v56 = vpack.c.bf16 %v2305_v49, %v2285_v47  ;;  %v1187_v36 = vld [vmem:[%s6695_s20 + $0x100] sm:$0xff]  ;;  %v5314_v37 = vpack.c.bf16 %v1190_v31, %v1170_v30  ;;  %v1169_v40 = vld [vmem:[%s6695_s20 + $0x70] sm:$0xff] }
 0x5d6   : > { %v5046_v57 = vpack.c.bf16 %v2344_v51, %v2324_v50  ;;  %v5188_v45 = vpack.c.bf16 %v1187_v36, %v1167_v35  ;;  %v1210_v46 = vld [vmem:[%s6695_s20 + $0x1b8] sm:$0xff]  ;;  %v1207_v49 = vld [vmem:[%s6695_s20 + $0x1a0] sm:$0xff]  ;;  %v1209_v51 = vld [vmem:[%s6695_s20 + $0x1b0] sm:$0xff] }
 0x5d7   : > { %5029 = vmatpush1.bf16.msra.mxu1 %v5028_v0  ;;  %v2345_v0 = vld [vmem:[%s6695_s20 + $0x2530] sm:$0xff]  ;;  %v1230_v47 = vld [vmem:[%s6695_s20 + $0x258] sm:$0xff]  ;;  %v1227_v50 = vld [vmem:[%s6695_s20 + $0x240] sm:$0xff] }
 0x5d8   : > { %5157 = vmatpush1.bf16.msra.mxu0 %v5156_v1  ;;  %5031 = vmatprep.subr.bf16.mxu1 %v5030_v2  ;;  %v2364_v1 = vld [vmem:[%s6695_s20 + $0x25c8] sm:$0xff]  ;;  %v1229_v54 = vld [vmem:[%s6695_s20 + $0x250] sm:$0xff]  ;;  %v1250_v59 = vld [vmem:[%s6695_s20 + $0x2f8] sm:$0xff] }
 0x5d9   : > { %5159 = vmatprep.subr.bf16.mxu0 %v5158_v6  ;;  %v2384_v2 = vld [vmem:[%s6695_s20 + $0x2668] sm:$0xff]  ;;  %v5176_v6 = vpack.c.bf16 %v2345_v0, %v2325_v61  ;;  %v1270_v60 = vld [vmem:[%s6695_s20 + $0x398] sm:$0xff]  ;;  %v5192_v61 = vpack.c.bf16 %v1227_v50, %v1207_v49  ;;  %v1289_v15 = vld [vmem:[%s6695_s20 + $0x430] sm:$0xff] }
 0x5da   : > { %v5050_v7 = vpack.c.bf16 %v2384_v2, %v2364_v1  ;;  %v1247_v1 = vld [vmem:[%s6695_s20 + $0x2e0] sm:$0xff]  ;;  %v5322_v4 = vpack.c.bf16 %v1270_v60, %v1250_v59  ;;  %v1290_v9 = vld [vmem:[%s6695_s20 + $0x438] sm:$0xff]  ;;  %v1329_v30 = vld [vmem:[%s6695_s20 + $0x570] sm:$0xff] }
 0x5db   : > { %5033 = vmatpush1.bf16.msra.mxu1 %v5032_v13  ;;  %v2385_v13 = vld [vmem:[%s6695_s20 + $0x2670] sm:$0xff]  ;;  %v1267_v2 = vld [vmem:[%s6695_s20 + $0x380] sm:$0xff]  ;;  %v1310_v10 = vld [vmem:[%s6695_s20 + $0x4d8] sm:$0xff] }
 0x5dc   : > { %5161 = vmatpush1.bf16.msra.mxu0 %v5160_v38  ;;  %5035 = vmatprep.subr.bf16.mxu1 %v5034_v14  ;;  %v2404_v38 = vld [vmem:[%s6695_s20 + $0x2708] sm:$0xff]  ;;  %v5326_v16 = vpack.c.bf16 %v1310_v10, %v1290_v9  ;;  %v1330_v23 = vld [vmem:[%s6695_s20 + $0x578] sm:$0xff]  ;;  %v1409_v59 = vld [vmem:[%s6695_s20 + $0x7f0] sm:$0xff] }
 0x5dd   : > { %5163 = vmatprep.subr.bf16.mxu0 %v5162_v21  ;;  %v2424_v14 = vld [vmem:[%s6695_s20 + $0x27a8] sm:$0xff]  ;;  %v5180_v21 = vpack.c.bf16 %v2385_v13, %v2365_v11  ;;  %v5196_v11 = vpack.c.bf16 %v1267_v2, %v1247_v1  ;;  %v1350_v24 = vld [vmem:[%s6695_s20 + $0x618] sm:$0xff]  ;;  %v1449_v9 = vld [vmem:[%s6695_s20 + $0x930] sm:$0xff] }
 0x5de   : > { %v5054_v22 = vpack.c.bf16 %v2424_v14, %v2404_v38  ;;  %v1287_v38 = vld [vmem:[%s6695_s20 + $0x420] sm:$0xff]  ;;  %v5330_v31 = vpack.c.bf16 %v1350_v24, %v1330_v23  ;;  %v1370_v35 = vld [vmem:[%s6695_s20 + $0x6b8] sm:$0xff]  ;;  %v1428_v49 = vld [vmem:[%s6695_s20 + $0x888] sm:$0xff] }
 0x5df   : > { %5037 = vmatpush1.bf16.msra.mxu1 %v5036_v27  ;;  %v2425_v27 = vld [vmem:[%s6695_s20 + $0x27b0] sm:$0xff]  ;;  %v1307_v14 = vld [vmem:[%s6695_s20 + $0x4c0] sm:$0xff]  ;;  %v1390_v36 = vld [vmem:[%s6695_s20 + $0x758] sm:$0xff] }
 0x5e0   : > { %5165 = vmatpush1.bf16.msra.mxu0 %v5164_v28  ;;  %5039 = vmatprep.subr.bf16.mxu1 %v5038_v44  ;;  %v1168_v28 = vld [vmem:[%s6695_s20 + $0x68] sm:$0xff]  ;;  %v1410_v50 = vld [vmem:[%s6695_s20 + $0x7f8] sm:$0xff]  ;;  %v1489_v23 = vld [vmem:[%s6695_s20 + $0xa70] sm:$0xff] }
 0x5e1   : > { %5167 = vmatprep.subr.bf16.mxu0 %v5166_v33  ;;  %v1188_v44 = vld [vmem:[%s6695_s20 + $0x108] sm:$0xff]  ;;  %v5184_v33 = vpack.c.bf16 %v2425_v27, %v2405_v25  ;;  %v5200_v25 = vpack.c.bf16 %v1307_v14, %v1287_v38  ;;  %v1450_v1 = vld [vmem:[%s6695_s20 + $0x938] sm:$0xff] }
 0x5e2   : > { %v5186_v34 = vpack.c.bf16 %v1188_v44, %v1168_v28  ;;  %v1327_v28 = vld [vmem:[%s6695_s20 + $0x560] sm:$0xff]  ;;  %v1470_v2 = vld [vmem:[%s6695_s20 + $0x9d8] sm:$0xff] }
 0x5e3   : > { %5041 = vmatpush1.bf16.msra.mxu1 %v5040_v41  ;;  %v1189_v41 = vld [vmem:[%s6695_s20 + $0x110] sm:$0xff]  ;;  %v1347_v44 = vld [vmem:[%s6695_s20 + $0x600] sm:$0xff]  ;;  %v5342_v10 = vpack.c.bf16 %v1470_v2, %v1450_v1  ;;  %v1490_v38 = vld [vmem:[%s6695_s20 + $0xa78] sm:$0xff] }
 0x5e4   : > { %5169 = vmatpush1.bf16.msra.mxu0 %v5168_v42  ;;  %5043 = vmatprep.subr.bf16.mxu1 %v5042_v43  ;;  %v1208_v42 = vld [vmem:[%s6695_s20 + $0x1a8] sm:$0xff]  ;;  %v1510_v14 = vld [vmem:[%s6695_s20 + $0xb18] sm:$0xff]  ;;  %v1609_v1 = vld [vmem:[%s6695_s20 + $0xe30] sm:$0xff] }
 0x5e5   : > { %5171 = vmatprep.subr.bf16.mxu0 %v5170_v48  ;;  %v1228_v43 = vld [vmem:[%s6695_s20 + $0x248] sm:$0xff]  ;;  %v5316_v48 = vpack.c.bf16 %v1189_v41, %v1169_v40  ;;  %v5346_v24 = vpack.c.bf16 %v1510_v14, %v1490_v38  ;;  %v1649_v38 = vld [vmem:[%s6695_s20 + $0xf70] sm:$0xff] }
 0x5e6   : > { %v5190_v52 = vpack.c.bf16 %v1228_v43, %v1208_v42  ;;  %v1367_v42 = vld [vmem:[%s6695_s20 + $0x6a0] sm:$0xff] }
 0x5e7   : > { %5045 = vmatpush1.bf16.msra.mxu1 %v5044_v55  ;;  %v1248_v55 = vld [vmem:[%s6695_s20 + $0x2e8] sm:$0xff]  ;;  %v1387_v43 = vld [vmem:[%s6695_s20 + $0x740] sm:$0xff] }
 0x5e8   : > { %5173 = vmatpush1.bf16.msra.mxu0 %v5172_v56  ;;  %5047 = vmatprep.subr.bf16.mxu1 %v5046_v57  ;;  %v1268_v56 = vld [vmem:[%s6695_s20 + $0x388] sm:$0xff]  ;;  %v5318_v57 = vpack.c.bf16 %v1230_v47, %v1210_v46  ;;  %v5334_v46 = vpack.c.bf16 %v1390_v36, %v1370_v35  ;;  %v1389_v47 = vld [vmem:[%s6695_s20 + $0x750] sm:$0xff] }
 0x5e9   : > { %5175 = vmatprep.subr.bf16.mxu0 %v5174_v62  ;;  %v5320_v62 = vpack.c.bf16 %v1229_v54, %v1209_v51  ;;  %v5194_v0 = vpack.c.bf16 %v1268_v56, %v1248_v55  ;;  %v1430_v51 = vld [vmem:[%s6695_s20 + $0x898] sm:$0xff]  ;;  %v1407_v56 = vld [vmem:[%s6695_s20 + $0x7e0] sm:$0xff]  ;;  %v1529_v35 = vld [vmem:[%s6695_s20 + $0xbb0] sm:$0xff] }
 0x5ea   : > { %v5338_v60 = vpack.c.bf16 %v1430_v51, %v1410_v50  ;;  %v1569_v50 = vld [vmem:[%s6695_s20 + $0xcf0] sm:$0xff] }
 0x5eb   : > { %5049 = vmatpush1.bf16.msra.mxu1 %v5048_v5  ;;  %v1269_v5 = vld [vmem:[%s6695_s20 + $0x390] sm:$0xff] }
 0x5ec   : > { %5177 = vmatpush1.bf16.msra.mxu0 %v5176_v6  ;;  %5051 = vmatprep.subr.bf16.mxu1 %v5050_v7  ;;  %v1288_v6 = vld [vmem:[%s6695_s20 + $0x428] sm:$0xff] }
 0x5ed   : > { %5179 = vmatprep.subr.bf16.mxu0 %v5178_v12  ;;  %v1308_v7 = vld [vmem:[%s6695_s20 + $0x4c8] sm:$0xff]  ;;  %v5324_v12 = vpack.c.bf16 %v1269_v5, %v1249_v3 }
 0x5ee   : > { %v5198_v13 = vpack.c.bf16 %v1308_v7, %v1288_v6  ;;  %v1447_v6 = vld [vmem:[%s6695_s20 + $0x920] sm:$0xff] }
 0x5ef   : > { %5053 = vmatpush1.bf16.msra.mxu1 %v5052_v19  ;;  %v1309_v19 = vld [vmem:[%s6695_s20 + $0x4d0] sm:$0xff]  ;;  %v1467_v7 = vld [vmem:[%s6695_s20 + $0x9c0] sm:$0xff] }
 0x5f0   : > { %5181 = vmatpush1.bf16.msra.mxu0 %v5180_v21  ;;  %5055 = vmatprep.subr.bf16.mxu1 %v5054_v22  ;;  %v1328_v21 = vld [vmem:[%s6695_s20 + $0x568] sm:$0xff] }
 0x5f1   : > { %5183 = vmatprep.subr.bf16.mxu0 %v5182_v26  ;;  %v1348_v22 = vld [vmem:[%s6695_s20 + $0x608] sm:$0xff]  ;;  %v5328_v26 = vpack.c.bf16 %v1309_v19, %v1289_v15  ;;  %v5216_v15 = vpack.c.bf16 %v1467_v7, %v1447_v6  ;;  %v1650_v6 = vld [vmem:[%s6695_s20 + $0xf78] sm:$0xff] }
 0x5f2   : > { %v5202_v27 = vpack.c.bf16 %v1348_v22, %v1328_v21  ;;  %v1487_v21 = vld [vmem:[%s6695_s20 + $0xa60] sm:$0xff]  ;;  %v1670_v7 = vld [vmem:[%s6695_s20 + $0x1018] sm:$0xff] }
 0x5f3   : > { %5057 = vmatpush1.bf16.msra.mxu1 %v5056_v32  ;;  %v1349_v32 = vld [vmem:[%s6695_s20 + $0x610] sm:$0xff]  ;;  %v1507_v22 = vld [vmem:[%s6695_s20 + $0xb00] sm:$0xff]  ;;  %v5362_v14 = vpack.c.bf16 %v1670_v7, %v1650_v6 }
 0x5f4   : > { %5185 = vmatpush1.bf16.msra.mxu0 %v5184_v33  ;;  %5187 = vmatprep.subr.bf16.mxu1 %v5186_v34  ;;  %v1368_v33 = vld [vmem:[%s6695_s20 + $0x6a8] sm:$0xff]  ;;  %v5332_v40 = vpack.c.bf16 %v1349_v32, %v1329_v30  ;;  %v5220_v30 = vpack.c.bf16 %v1507_v22, %v1487_v21  ;;  %v1690_v21 = vld [vmem:[%s6695_s20 + $0x10b8] sm:$0xff]  ;;  %v1809_v7 = vld [vmem:[%s6695_s20 + $0x1470] sm:$0xff] }
 0x5f5   : > { %5315 = vmatprep.subr.bf16.mxu0 %v5314_v37  ;;  %v1388_v34 = vld [vmem:[%s6695_s20 + $0x748] sm:$0xff]  ;;  %v5204_v37 = vpack.c.bf16 %v1347_v44, %v1327_v28  ;;  %v1530_v28 = vld [vmem:[%s6695_s20 + $0xbb8] sm:$0xff] }
 0x5f6   : > { %3245 = vmatmul.mubr.f32.vlgmr.msra.gmra.mrb[10].mxu1 %v7012_v29  ;;  %v5206_v41 = vpack.c.bf16 %v1388_v34, %v1368_v33  ;;  %v1550_v44 = vld [vmem:[%s6695_s20 + $0xc58] sm:$0xff]  ;;  %v1527_v33 = vld [vmem:[%s6695_s20 + $0xba0] sm:$0xff] }
 0x5f7   : > { %3387 = vmatmul.mubr.f32.vlgmr.msra.gmra.mrb[8].mxu0 %v7012_v29  ;;  %5189 = vmatpush1.bf16.msra.mxu1 %v5188_v45  ;;  %v1369_v45 = vld [vmem:[%s6695_s20 + $0x6b0] sm:$0xff]  ;;  %v1547_v34 = vld [vmem:[%s6695_s20 + $0xc40] sm:$0xff]  ;;  %v5350_v36 = vpack.c.bf16 %v1550_v44, %v1530_v28  ;;  %v1710_v22 = vld [vmem:[%s6695_s20 + $0x1158] sm:$0xff] }
 0x5f8   : > { %3457 = vmatprep.mubr.f32.mxu1 %v6866_v58  ;;  %5317 = vmatpush1.bf16.msra.mxu0 %v5316_v48  ;;  %v1408_v48 = vld [vmem:[%s6695_s20 + $0x7e8] sm:$0xff]  ;;  %v5336_v54 = vpack.c.bf16 %v1389_v47, %v1369_v45  ;;  %v5224_v45 = vpack.c.bf16 %v1547_v34, %v1527_v33  ;;  %v1689_v28 = vld [vmem:[%s6695_s20 + $0x10b0] sm:$0xff]  ;;  %v5366_v44 = vpack.c.bf16 %v1710_v22, %v1690_v21  ;;  %v1730_v33 = vld [vmem:[%s6695_s20 + $0x11f8] sm:$0xff] }
 0x5f9   : > { %3599 = vmatprep.mubr.f32.mxu0 %v6866_v58  ;;  %5191 = vmatprep.subr.bf16.mxu1 %v5190_v52  ;;  %v5208_v52 = vpack.c.bf16 %v1387_v43, %v1367_v42  ;;  %v5210_v55 = vpack.c.bf16 %v1428_v49, %v1408_v48  ;;  %v1570_v42 = vld [vmem:[%s6695_s20 + $0xcf8] sm:$0xff]  ;;  %v1567_v48 = vld [vmem:[%s6695_s20 + $0xce0] sm:$0xff]  ;;  %v1869_v22 = vld [vmem:[%s6695_s20 + $0x1650] sm:$0xff] }
 0x5fa   : > { %5319 = vmatprep.subr.bf16.mxu0 %v5318_v57  ;;  %v1427_v57 = vld [vmem:[%s6695_s20 + $0x880] sm:$0xff]  ;;  %v1590_v43 = vld [vmem:[%s6695_s20 + $0xd98] sm:$0xff] }
 0x5fb   : > { %5193 = vmatpush1.bf16.msra.mxu1 %v5192_v61  ;;  %v1429_v61 = vld [vmem:[%s6695_s20 + $0x890] sm:$0xff]  ;;  %v5212_v3 = vpack.c.bf16 %v1427_v57, %v1407_v56  ;;  %v1587_v49 = vld [vmem:[%s6695_s20 + $0xd80] sm:$0xff]  ;;  %v5354_v51 = vpack.c.bf16 %v1590_v43, %v1570_v42  ;;  %v1610_v56 = vld [vmem:[%s6695_s20 + $0xe38] sm:$0xff] }
 0x5fc   : > { %5321 = vmatpush1.bf16.msra.mxu0 %v5320_v62  ;;  %5195 = vmatprep.subr.bf16.mxu1 %v5194_v0  ;;  %v1448_v62 = vld [vmem:[%s6695_s20 + $0x928] sm:$0xff]  ;;  %v1630_v57 = vld [vmem:[%s6695_s20 + $0xed8] sm:$0xff]  ;;  %v1729_v42 = vld [vmem:[%s6695_s20 + $0x11f0] sm:$0xff] }
 0x5fd   : > { %5323 = vmatprep.subr.bf16.mxu0 %v5322_v4  ;;  %v1468_v0 = vld [vmem:[%s6695_s20 + $0x9c8] sm:$0xff]  ;;  %v5340_v4 = vpack.c.bf16 %v1429_v61, %v1409_v59  ;;  %v5228_v59 = vpack.c.bf16 %v1587_v49, %v1567_v48  ;;  %v5358_v2 = vpack.c.bf16 %v1630_v57, %v1610_v56  ;;  %v1750_v34 = vld [vmem:[%s6695_s20 + $0x1298] sm:$0xff]  ;;  %v1769_v56 = vld [vmem:[%s6695_s20 + $0x1330] sm:$0xff] }
 0x5fe   : > { %v5214_v5 = vpack.c.bf16 %v1468_v0, %v1448_v62  ;;  %v1607_v62 = vld [vmem:[%s6695_s20 + $0xe20] sm:$0xff]  ;;  %v5370_v43 = vpack.c.bf16 %v1750_v34, %v1730_v33  ;;  %v1770_v48 = vld [vmem:[%s6695_s20 + $0x1338] sm:$0xff]  ;;  %v1889_v33 = vld [vmem:[%s6695_s20 + $0x16f0] sm:$0xff] }
 0x5ff   : > { %5197 = vmatpush1.bf16.msra.mxu1 %v5196_v11  ;;  %v1469_v11 = vld [vmem:[%s6695_s20 + $0x9d0] sm:$0xff]  ;;  %v1627_v0 = vld [vmem:[%s6695_s20 + $0xec0] sm:$0xff]  ;;  %v1790_v49 = vld [vmem:[%s6695_s20 + $0x13d8] sm:$0xff] }
 0x600   : > { %5325 = vmatpush1.bf16.msra.mxu0 %v5324_v12  ;;  %5199 = vmatprep.subr.bf16.mxu1 %v5198_v13  ;;  %v1488_v12 = vld [vmem:[%s6695_s20 + $0xa68] sm:$0xff]  ;;  %v5374_v57 = vpack.c.bf16 %v1790_v49, %v1770_v48  ;;  %v1929_v48 = vld [vmem:[%s6695_s20 + $0x1830] sm:$0xff] }
 0x601   : > { %5327 = vmatprep.subr.bf16.mxu0 %v5326_v16  ;;  %v1508_v13 = vld [vmem:[%s6695_s20 + $0xb08] sm:$0xff]  ;;  %v5344_v16 = vpack.c.bf16 %v1469_v11, %v1449_v9  ;;  %v5232_v9 = vpack.c.bf16 %v1627_v0, %v1607_v62  ;;  %v1810_v62 = vld [vmem:[%s6695_s20 + $0x1478] sm:$0xff] }
 0x602   : > { %v5218_v19 = vpack.c.bf16 %v1508_v13, %v1488_v12  ;;  %v1647_v12 = vld [vmem:[%s6695_s20 + $0xf60] sm:$0xff]  ;;  %v1830_v0 = vld [vmem:[%s6695_s20 + $0x1518] sm:$0xff] }
 0x603   : > { %5201 = vmatpush1.bf16.msra.mxu1 %v5200_v25  ;;  %v1509_v25 = vld [vmem:[%s6695_s20 + $0xb10] sm:$0xff]  ;;  %v1667_v13 = vld [vmem:[%s6695_s20 + $0x1000] sm:$0xff]  ;;  %v5378_v6 = vpack.c.bf16 %v1830_v0, %v1810_v62 }
 0x604   : > { %5329 = vmatpush1.bf16.msra.mxu0 %v5328_v26  ;;  %5203 = vmatprep.subr.bf16.mxu1 %v5202_v27  ;;  %v1528_v26 = vld [vmem:[%s6695_s20 + $0xba8] sm:$0xff]  ;;  %v1969_v62 = vld [vmem:[%s6695_s20 + $0x1970] sm:$0xff] }
 0x605   : > { %5331 = vmatprep.subr.bf16.mxu0 %v5330_v31  ;;  %v1548_v27 = vld [vmem:[%s6695_s20 + $0xc48] sm:$0xff]  ;;  %v5348_v31 = vpack.c.bf16 %v1509_v25, %v1489_v23  ;;  %v5236_v23 = vpack.c.bf16 %v1667_v13, %v1647_v12  ;;  %v1850_v13 = vld [vmem:[%s6695_s20 + $0x15b8] sm:$0xff] }
 0x606   : > { %v5222_v32 = vpack.c.bf16 %v1548_v27, %v1528_v26  ;;  %v1687_v26 = vld [vmem:[%s6695_s20 + $0x10a0] sm:$0xff] }
 0x607   : > { %5205 = vmatpush1.bf16.msra.mxu1 %v5204_v37  ;;  %v1549_v37 = vld [vmem:[%s6695_s20 + $0xc50] sm:$0xff]  ;;  %v1707_v27 = vld [vmem:[%s6695_s20 + $0x1140] sm:$0xff] }
 0x608   : > { %5333 = vmatpush1.bf16.msra.mxu0 %v5332_v40  ;;  %5207 = vmatprep.subr.bf16.mxu1 %v5206_v41  ;;  %v1568_v40 = vld [vmem:[%s6695_s20 + $0xce8] sm:$0xff] }
 0x609   : > { %5335 = vmatprep.subr.bf16.mxu0 %v5334_v46  ;;  %v1588_v41 = vld [vmem:[%s6695_s20 + $0xd88] sm:$0xff]  ;;  %v5352_v46 = vpack.c.bf16 %v1549_v37, %v1529_v35  ;;  %v5240_v35 = vpack.c.bf16 %v1707_v27, %v1687_v26  ;;  %v1890_v26 = vld [vmem:[%s6695_s20 + $0x16f8] sm:$0xff] }
 0x60a   : > { %v5226_v47 = vpack.c.bf16 %v1588_v41, %v1568_v40  ;;  %v1727_v40 = vld [vmem:[%s6695_s20 + $0x11e0] sm:$0xff]  ;;  %v1910_v27 = vld [vmem:[%s6695_s20 + $0x1798] sm:$0xff] }
 0x60b   : > { %5209 = vmatpush1.bf16.msra.mxu1 %v5208_v52  ;;  %v1589_v52 = vld [vmem:[%s6695_s20 + $0xd90] sm:$0xff]  ;;  %v1747_v41 = vld [vmem:[%s6695_s20 + $0x1280] sm:$0xff]  ;;  %v5386_v34 = vpack.c.bf16 %v1910_v27, %v1890_v26  ;;  %v2070_v26 = vld [vmem:[%s6695_s20 + $0x1c98] sm:$0xff] }
 0x60c   : > { %5337 = vmatpush1.bf16.msra.mxu0 %v5336_v54  ;;  %5211 = vmatprep.subr.bf16.mxu1 %v5210_v55  ;;  %v1608_v54 = vld [vmem:[%s6695_s20 + $0xe28] sm:$0xff] }
 0x60d   : > { %5339 = vmatprep.subr.bf16.mxu0 %v5338_v60  ;;  %v1628_v55 = vld [vmem:[%s6695_s20 + $0xec8] sm:$0xff]  ;;  %v5356_v60 = vpack.c.bf16 %v1589_v52, %v1569_v50  ;;  %v5244_v50 = vpack.c.bf16 %v1747_v41, %v1727_v40  ;;  %v1930_v40 = vld [vmem:[%s6695_s20 + $0x1838] sm:$0xff] }
 0x60e   : > { %v5230_v61 = vpack.c.bf16 %v1628_v55, %v1608_v54  ;;  %v1767_v54 = vld [vmem:[%s6695_s20 + $0x1320] sm:$0xff]  ;;  %v1950_v41 = vld [vmem:[%s6695_s20 + $0x18d8] sm:$0xff] }
 0x60f   : > { %5213 = vmatpush1.bf16.msra.mxu1 %v5212_v3  ;;  %v1629_v3 = vld [vmem:[%s6695_s20 + $0xed0] sm:$0xff]  ;;  %v1787_v55 = vld [vmem:[%s6695_s20 + $0x13c0] sm:$0xff]  ;;  %v5390_v49 = vpack.c.bf16 %v1950_v41, %v1930_v40  ;;  %v2088_v41 = vld [vmem:[%s6695_s20 + $0x1d28] sm:$0xff] }
 0x610   : > { %5341 = vmatpush1.bf16.msra.mxu0 %v5340_v4  ;;  %5215 = vmatprep.subr.bf16.mxu1 %v5214_v5  ;;  %v1648_v4 = vld [vmem:[%s6695_s20 + $0xf68] sm:$0xff]  ;;  %v2069_v40 = vld [vmem:[%s6695_s20 + $0x1c90] sm:$0xff] }
 0x611   : > { %5343 = vmatprep.subr.bf16.mxu0 %v5342_v10  ;;  %v1668_v5 = vld [vmem:[%s6695_s20 + $0x1008] sm:$0xff]  ;;  %v5360_v10 = vpack.c.bf16 %v1629_v3, %v1609_v1  ;;  %v5248_v1 = vpack.c.bf16 %v1787_v55, %v1767_v54  ;;  %v1970_v54 = vld [vmem:[%s6695_s20 + $0x1978] sm:$0xff] }
 0x612   : > { %v5234_v11 = vpack.c.bf16 %v1668_v5, %v1648_v4  ;;  %v1807_v4 = vld [vmem:[%s6695_s20 + $0x1460] sm:$0xff]  ;;  %v1990_v55 = vld [vmem:[%s6695_s20 + $0x1a18] sm:$0xff] }
 0x613   : > { %5217 = vmatpush1.bf16.msra.mxu1 %v5216_v15  ;;  %v1669_v15 = vld [vmem:[%s6695_s20 + $0x1010] sm:$0xff]  ;;  %v1827_v5 = vld [vmem:[%s6695_s20 + $0x1500] sm:$0xff]  ;;  %v5394_v0 = vpack.c.bf16 %v1990_v55, %v1970_v54 }
 0x614   : > { %5345 = vmatpush1.bf16.msra.mxu0 %v5344_v16  ;;  %5219 = vmatprep.subr.bf16.mxu1 %v5218_v19  ;;  %v1688_v16 = vld [vmem:[%s6695_s20 + $0x10a8] sm:$0xff]  ;;  %v5252_v12 = vpack.c.bf16 %v1827_v5, %v1807_v4  ;;  %v2459_v4 = vsub.s32 4, %v6707_v17  ;;  %v2010_v5 = vld [vmem:[%s6695_s20 + $0x1ab8] sm:$0xff] }
 0x615   : > { %5347 = vmatprep.subr.bf16.mxu0 %v5346_v24  ;;  %v1708_v19 = vld [vmem:[%s6695_s20 + $0x1148] sm:$0xff]  ;;  %v5364_v24 = vpack.c.bf16 %v1669_v15, %v1649_v38  ;;  %v1870_v38 = vld [vmem:[%s6695_s20 + $0x1658] sm:$0xff]  ;;  %v1847_v15 = vld [vmem:[%s6695_s20 + $0x15a0] sm:$0xff] }
 0x616   : > { %v5238_v25 = vpack.c.bf16 %v1708_v19, %v1688_v16  ;;  %v1867_v16 = vld [vmem:[%s6695_s20 + $0x1640] sm:$0xff]  ;;  %v1849_v19 = vld [vmem:[%s6695_s20 + $0x15b0] sm:$0xff] }
 0x617   : > { %5221 = vmatpush1.bf16.msra.mxu1 %v5220_v30  ;;  %v1709_v30 = vld [vmem:[%s6695_s20 + $0x1150] sm:$0xff] }
 0x618   : > { %5349 = vmatpush1.bf16.msra.mxu0 %v5348_v31  ;;  %5223 = vmatprep.subr.bf16.mxu1 %v5222_v32  ;;  %v1728_v31 = vld [vmem:[%s6695_s20 + $0x11e8] sm:$0xff] }
 0x619   : > { %5351 = vmatprep.subr.bf16.mxu0 %v5350_v36  ;;  %v1748_v32 = vld [vmem:[%s6695_s20 + $0x1288] sm:$0xff]  ;;  %v5368_v36 = vpack.c.bf16 %v1709_v30, %v1689_v28  ;;  %v5256_v28 = vpack.c.bf16 %v1867_v16, %v1847_v15  ;;  %v2009_v15 = vld [vmem:[%s6695_s20 + $0x1ab0] sm:$0xff] }
 0x61a   : > { %v5242_v37 = vpack.c.bf16 %v1748_v32, %v1728_v31  ;;  %v1887_v31 = vld [vmem:[%s6695_s20 + $0x16e0] sm:$0xff] }
 0x61b   : > { %5225 = vmatpush1.bf16.msra.mxu1 %v5224_v45  ;;  %v1749_v45 = vld [vmem:[%s6695_s20 + $0x1290] sm:$0xff]  ;;  %v1907_v32 = vld [vmem:[%s6695_s20 + $0x1780] sm:$0xff] }
 0x61c   : > { %5353 = vmatpush1.bf16.msra.mxu0 %v5352_v46  ;;  %5227 = vmatprep.subr.bf16.mxu1 %v5226_v47  ;;  %v1768_v46 = vld [vmem:[%s6695_s20 + $0x1328] sm:$0xff] }
 0x61d   : > { %5355 = vmatprep.subr.bf16.mxu0 %v5354_v51  ;;  %v1788_v47 = vld [vmem:[%s6695_s20 + $0x13c8] sm:$0xff]  ;;  %v5372_v51 = vpack.c.bf16 %v1749_v45, %v1729_v42  ;;  %v5260_v42 = vpack.c.bf16 %v1907_v32, %v1887_v31 }
 0x61e   : > { %v5246_v52 = vpack.c.bf16 %v1788_v47, %v1768_v46  ;;  %v1927_v46 = vld [vmem:[%s6695_s20 + $0x1820] sm:$0xff] }
 0x61f   : > { %5229 = vmatpush1.bf16.msra.mxu1 %v5228_v59  ;;  %v1789_v59 = vld [vmem:[%s6695_s20 + $0x13d0] sm:$0xff]  ;;  %v1947_v47 = vld [vmem:[%s6695_s20 + $0x18c0] sm:$0xff] }
 0x620   : > { %5357 = vmatpush1.bf16.msra.mxu0 %v5356_v60  ;;  %5231 = vmatprep.subr.bf16.mxu1 %v5230_v61  ;;  %v1808_v60 = vld [vmem:[%s6695_s20 + $0x1468] sm:$0xff] }
 0x621   : > { %5359 = vmatprep.subr.bf16.mxu0 %v5358_v2  ;;  %v1828_v61 = vld [vmem:[%s6695_s20 + $0x1508] sm:$0xff]  ;;  %v5376_v2 = vpack.c.bf16 %v1789_v59, %v1769_v56  ;;  %v5264_v56 = vpack.c.bf16 %v1947_v47, %v1927_v46  ;;  %v2090_v47 = vld [vmem:[%s6695_s20 + $0x1d38] sm:$0xff] }
 0x622   : > { %v5250_v3 = vpack.c.bf16 %v1828_v61, %v1808_v60  ;;  %v1967_v60 = vld [vmem:[%s6695_s20 + $0x1960] sm:$0xff] }
 0x623   : > { %5233 = vmatpush1.bf16.msra.mxu1 %v5232_v9  ;;  %v1829_v9 = vld [vmem:[%s6695_s20 + $0x1510] sm:$0xff]  ;;  %v1987_v61 = vld [vmem:[%s6695_s20 + $0x1a00] sm:$0xff] }
 0x624   : > { %5361 = vmatpush1.bf16.msra.mxu0 %v5360_v10  ;;  %5235 = vmatprep.subr.bf16.mxu1 %v5234_v11  ;;  %v1848_v10 = vld [vmem:[%s6695_s20 + $0x15a8] sm:$0xff] }
 0x625   : > { %5363 = vmatprep.subr.bf16.mxu0 %v5362_v14  ;;  %v1868_v11 = vld [vmem:[%s6695_s20 + $0x1648] sm:$0xff]  ;;  %v5380_v14 = vpack.c.bf16 %v1829_v9, %v1809_v7  ;;  %v5268_v7 = vpack.c.bf16 %v1987_v61, %v1967_v60  ;;  %v2467_v9 = vsub.s32 6, %v6707_v17  ;;  %v2107_v60 = vld [vmem:[%s6695_s20 + $0x1dc0] sm:$0xff]  ;;  %v2089_v61 = vld [vmem:[%s6695_s20 + $0x1d30] sm:$0xff] }
 0x626   : > { %v5254_v21 = vpack.c.bf16 %v1868_v11, %v1848_v10  ;;  %v2463_v10 = vsub.s32 5, %v6707_v17 }
 0x627   : > { %5237 = vmatpush1.bf16.msra.mxu1 %v5236_v23  ;;  %v1888_v23 = vld [vmem:[%s6695_s20 + $0x16e8] sm:$0xff] }
 0x628   : > { %5365 = vmatpush1.bf16.msra.mxu0 %v5364_v24  ;;  %5239 = vmatprep.subr.bf16.mxu1 %v5238_v25  ;;  %v1908_v24 = vld [vmem:[%s6695_s20 + $0x1788] sm:$0xff]  ;;  %v5382_v25 = vpack.c.bf16 %v1870_v38, %v1850_v13  ;;  %v2007_v38 = vld [vmem:[%s6695_s20 + $0x1aa0] sm:$0xff] }
 0x629   : > { %5367 = vmatprep.subr.bf16.mxu0 %v5366_v44  ;;  %v5384_v44 = vpack.c.bf16 %v1869_v22, %v1849_v19  ;;  %v5258_v30 = vpack.c.bf16 %v1908_v24, %v1888_v23  ;;  %v2029_v19 = vld [vmem:[%s6695_s20 + $0x1b50] sm:$0xff]  ;;  %v2068_v22 = vld [vmem:[%s6695_s20 + $0x1c88] sm:$0xff] }
 0x62a   : > { %v5889_v23 = vld [vmem:[%s7458_s17] sm:$0xff]  ;;  %v5400_v31 = vpack.c.bf16 %v2029_v19, %v2009_v15 }
 0x62b   : > { %5241 = vmatpush1.bf16.msra.mxu1 %v5240_v35  ;;  %v1909_v35 = vld [vmem:[%s6695_s20 + $0x1790] sm:$0xff]  ;;  %v2460_v24 = vrot.slane %v5889_v23, %v2459_v4  ;;  %v2468_v27 = vrot.slane %v5889_v23, %v2467_v9  ;;  %v2127_v15 = vld [vmem:[%s6695_s20 + $0x1e60] sm:$0xff] }
 0x62c   : > { %5369 = vmatpush1.bf16.msra.mxu0 %v5368_v36  ;;  %5243 = vmatprep.subr.bf16.mxu1 %v5242_v37  ;;  %v1928_v36 = vld [vmem:[%s6695_s20 + $0x1828] sm:$0xff]  ;;  %v2129_v19 = vld [vmem:[%s6695_s20 + $0x1e70] sm:$0xff] }
 0x62d   : > { %5371 = vmatprep.subr.bf16.mxu0 %v5370_v43  ;;  %v1948_v37 = vld [vmem:[%s6695_s20 + $0x18c8] sm:$0xff]  ;;  %v5388_v43 = vpack.c.bf16 %v1909_v35, %v1889_v33  ;;  %v2047_v33 = vld [vmem:[%s6695_s20 + $0x1be0] sm:$0xff]  ;;  %v2049_v35 = vld [vmem:[%s6695_s20 + $0x1bf0] sm:$0xff] }
 0x62e   : > { %v5262_v45 = vpack.c.bf16 %v1948_v37, %v1928_v36 }
 0x62f   : > { %5245 = vmatpush1.bf16.msra.mxu1 %v5244_v50  ;;  %v1949_v50 = vld [vmem:[%s6695_s20 + $0x18d0] sm:$0xff] }
 0x630   : > { %5373 = vmatpush1.bf16.msra.mxu0 %v5372_v51  ;;  %5247 = vmatprep.subr.bf16.mxu1 %v5246_v52  ;;  %v1968_v51 = vld [vmem:[%s6695_s20 + $0x1968] sm:$0xff] }
 0x631   : > { %5375 = vmatprep.subr.bf16.mxu0 %v5374_v57  ;;  %v1988_v52 = vld [vmem:[%s6695_s20 + $0x1a08] sm:$0xff]  ;;  %v5392_v57 = vpack.c.bf16 %v1949_v50, %v1929_v48  ;;  %v2110_v48 = vld [vmem:[%s6695_s20 + $0x1dd8] sm:$0xff] }
 0x632   : > { %v5266_v59 = vpack.c.bf16 %v1988_v52, %v1968_v51 }
 0x633   : > { %5249 = vmatpush1.bf16.msra.mxu1 %v5248_v1  ;;  %v1989_v1 = vld [vmem:[%s6695_s20 + $0x1a10] sm:$0xff] }
 0x634   : > { %5377 = vmatpush1.bf16.msra.mxu0 %v5376_v2  ;;  %5251 = vmatprep.subr.bf16.mxu1 %v5250_v3  ;;  %v2008_v2 = vld [vmem:[%s6695_s20 + $0x1aa8] sm:$0xff]  ;;  %v5396_v11 = vpack.c.bf16 %v1989_v1, %v1969_v62  ;;  %v5406_v1 = vpack.c.bf16 %v2110_v48, %v2090_v47  ;;  %v2209_v47 = vld [vmem:[%s6695_s20 + $0x20f0] sm:$0xff] }
 0x635   : > { %5379 = vmatprep.subr.bf16.mxu0 %v5378_v6  ;;  %v2028_v3 = vld [vmem:[%s6695_s20 + $0x1b48] sm:$0xff]  ;;  %v2030_v6 = vld [vmem:[%s6695_s20 + $0x1b58] sm:$0xff] }
 0x636   : > { %3458 = vmatmul.mubr.f32.vlgmr.msra.gmra.mrb[12].mxu1 %v6870_v63  ;;  %v5270_v13 = vpack.c.bf16 %v2028_v3, %v2008_v2  ;;  %v5398_v16 = vpack.c.bf16 %v2030_v6, %v2010_v5  ;;  %v2109_v2 = vld [vmem:[%s6695_s20 + $0x1dd0] sm:$0xff]  ;;  %v2128_v3 = vld [vmem:[%s6695_s20 + $0x1e68] sm:$0xff] }
 0x637   : > { %3600 = vmatmul.mubr.f32.vlgmr.msra.gmra.mrb[10].mxu0 %v6870_v63  ;;  %5253 = vmatpush1.bf16.msra.mxu1 %v5252_v12  ;;  %v2471_v12 = vsub.s32 7, %v6707_v17  ;;  %v2148_v5 = vld [vmem:[%s6695_s20 + $0x1f08] sm:$0xff]  ;;  %v2437_v17 = vld [vmem:[%s7458_s17 + $0x10] sm:$0xf] }
 0x638   : > { %3528 = vmatprep.mubr.f32.mxu1 %v6880_v8  ;;  %5381 = vmatpush1.bf16.msra.mxu0 %v5380_v14  ;;  %v2027_v14 = vld [vmem:[%s6695_s20 + $0x1b40] sm:$0xff] }
 0x639   : > { %3670 = vmatprep.mubr.f32.mxu0 %v6880_v8  ;;  %5255 = vmatprep.subr.bf16.mxu1 %v5254_v21  ;;  %v2048_v21 = vld [vmem:[%s6695_s20 + $0x1be8] sm:$0xff] }
 0x63a   : > { %5383 = vmatprep.subr.bf16.mxu0 %v5382_v25  ;;  %v2050_v25 = vld [vmem:[%s6695_s20 + $0x1bf8] sm:$0xff]  ;;  %v5274_v32 = vpack.c.bf16 %v2068_v22, %v2048_v21  ;;  %v2149_v22 = vld [vmem:[%s6695_s20 + $0x1f10] sm:$0xff] }
 0x63b   : > { %5257 = vmatpush1.bf16.msra.mxu1 %v5256_v28  ;;  %v2464_v28 = vrot.slane %v5889_v23, %v2463_v10  ;;  %v5402_v37 = vpack.c.bf16 %v2070_v26, %v2050_v25  ;;  %v2170_v25 = vld [vmem:[%s6695_s20 + $0x1fb8] sm:$0xff] }
 0x63c   : > { %5385 = vmatpush1.bf16.msra.mxu0 %v5384_v44  ;;  %5259 = vmatprep.subr.bf16.mxu1 %v5258_v30  ;;  %v5272_v44 = vpack.c.bf16 %v2027_v14, %v2007_v38  ;;  %v2472_v30 = vrot.slane %v5889_v23, %v2471_v12  ;;  %v5408_v38 = vpack.c.bf16 %v2109_v2, %v2089_v61  ;;  %v2168_v23 = vld [vmem:[%s6695_s20 + $0x1fa8] sm:$0xff]  ;;  %v2190_v26 = vld [vmem:[%s6695_s20 + $0x2058] sm:$0xff]  ;;  %v2249_v61 = vld [vmem:[%s6695_s20 + $0x2230] sm:$0xff] }
 0x63d   : > { %5387 = vmatprep.subr.bf16.mxu0 %v5386_v34  ;;  %v2067_v34 = vld [vmem:[%s6695_s20 + $0x1c80] sm:$0xff]  ;;  %v5282_v14 = vpack.c.bf16 %v2148_v5, %v2128_v3  ;;  %v2308_v2 = vld [vmem:[%s6695_s20 + $0x2408] sm:$0xff]  ;;  %v2290_v3 = vld [vmem:[%s6695_s20 + $0x2378] sm:$0xff] }
 0x63e   : > { %v5276_v52 = vpack.c.bf16 %v2067_v34, %v2047_v33  ;;  %v5414_v33 = vpack.c.bf16 %v2190_v26, %v2170_v25  ;;  %v2189_v34 = vld [vmem:[%s6695_s20 + $0x2050] sm:$0xff]  ;;  %v2310_v5 = vld [vmem:[%s6695_s20 + $0x2418] sm:$0xff] }
 0x63f   : > { %5261 = vmatpush1.bf16.msra.mxu1 %v5260_v42  ;;  %v2108_v42 = vld [vmem:[%s6695_s20 + $0x1dc8] sm:$0xff] }
 0x640   : > { %5389 = vmatpush1.bf16.msra.mxu0 %v5388_v43  ;;  %5263 = vmatprep.subr.bf16.mxu1 %v5262_v45 }
 0x641   : > { %5391 = vmatprep.subr.bf16.mxu0 %v5390_v49 }
 0x643   : > { %5265 = vmatpush1.bf16.msra.mxu1 %v5264_v56  ;;  %v5404_v56 = vpack.c.bf16 %v2069_v40, %v2049_v35  ;;  %v2208_v35 = vld [vmem:[%s6695_s20 + $0x20e8] sm:$0xff]  ;;  %v2230_v40 = vld [vmem:[%s6695_s20 + $0x2198] sm:$0xff] }
 0x644   : > { %5393 = vmatpush1.bf16.msra.mxu0 %v5392_v57  ;;  %5267 = vmatprep.subr.bf16.mxu1 %v5266_v59  ;;  %v5278_v57 = vpack.c.bf16 %v2108_v42, %v2088_v41  ;;  %v2087_v59 = vld [vmem:[%s6695_s20 + $0x1d20] sm:$0xff] }
 0x645   : > { %5395 = vmatprep.subr.bf16.mxu0 %v5394_v0 }
 0x647   : > { %5269 = vmatpush1.bf16.msra.mxu1 %v5268_v7  ;;  %v2130_v7 = vld [vmem:[%s6695_s20 + $0x1e78] sm:$0xff] }
 0x648   : > { %5397 = vmatpush1.bf16.msra.mxu0 %v5396_v11  ;;  %5271 = vmatprep.subr.bf16.mxu1 %v5270_v13  ;;  %v2150_v11 = vld [vmem:[%s6695_s20 + $0x1f18] sm:$0xff]  ;;  %v5280_v13 = vpack.c.bf16 %v2107_v60, %v2087_v59  ;;  %v2247_v59 = vld [vmem:[%s6695_s20 + $0x2220] sm:$0xff] }
 0x649   : > { %v2962_v36 = vpop.f32.mrb[8].mxu1  ;;  %5399 = vmatprep.subr.bf16.mxu0 %v5398_v16  ;;  %v2147_v16 = vld [vmem:[%s6695_s20 + $0x1f00] sm:$0xff]  ;;  %v5410_v21 = vpack.c.bf16 %v2150_v11, %v2130_v7 }
 0x64a   : > { %v5702_v43 = vadd.f32 %v2962_v36, %v2460_v24  ;;  %v3104_v45 = vpop.f32.mrb[6].mxu0  ;;  %v2964_v46 = vpop.f32.mrb[9].mxu1  ;;  %v2188_v24 = vld [vmem:[%s6695_s20 + $0x2048] sm:$0xff]  ;;  %v2267_v60 = vld [vmem:[%s6695_s20 + $0x22c0] sm:$0xff] }
 0x64b   : > { %v5704_v49 = vadd.f32 %v3104_v45, %v2468_v27  ;;  %v5703_v50 = vadd.f32 %v2964_v46, %v2464_v28  ;;  %v3106_v51 = vpop.f32.mrb[7].mxu0  ;;  %5273 = vmatpush1.bf16.msra.mxu1 %v5272_v44  ;;  %v5284_v27 = vpack.c.bf16 %v2147_v16, %v2127_v15  ;;  %v5412_v28 = vpack.c.bf16 %v2149_v22, %v2129_v19  ;;  %v2228_v36 = vld [vmem:[%s6695_s20 + $0x2188] sm:$0xff]  ;;  %v2207_v45 = vld [vmem:[%s6695_s20 + $0x20e0] sm:$0xff]  ;;  %v2309_v16 = vld [vmem:[%s6695_s20 + $0x2410] sm:$0xff] }
 0x64c   : > { %v3965_v54 = vmax.f32 %v5702_v43, 0.0  ;;  %v5705_v55 = vadd.f32 %v3106_v51, %v2472_v30  ;;  %5401 = vmatpush1.bf16.msra.mxu0 %v5400_v31  ;;  %5275 = vmatprep.subr.bf16.mxu1 %v5274_v32  ;;  %v5286_v44 = vpack.c.bf16 %v2188_v24, %v2168_v23  ;;  %v2167_v30 = vld [vmem:[%s6695_s20 + $0x1fa0] sm:$0xff]  ;;  %v2169_v32 = vld [vmem:[%s6695_s20 + $0x1fb0] sm:$0xff]  ;;  %v5290_v43 = vpack.c.bf16 %v2228_v36, %v2208_v35  ;;  %v2268_v51 = vld [vmem:[%s6695_s20 + $0x22c8] sm:$0xff] }
 0x64d   : > { %v3967_v62 = vmax.f32 %v5704_v49, 0.0  ;;  %v3966_v0 = vmax.f32 %v5703_v50, 0.0  ;;  %5403 = vmatprep.subr.bf16.mxu0 %v5402_v37  ;;  %v2187_v31 = vld [vmem:[%s6695_s20 + $0x2040] sm:$0xff]  ;;  %v2210_v37 = vld [vmem:[%s6695_s20 + $0x20f8] sm:$0xff]  ;;  %v5416_v42 = vpack.c.bf16 %v2189_v34, %v2169_v32  ;;  %v2229_v49 = vld [vmem:[%s6695_s20 + $0x2190] sm:$0xff]  ;;  %v5426_v15 = vpack.c.bf16 %v2310_v5, %v2290_v3 }
 0x64e   : > { %3985 = vst [vmem:[%s7491_s14 + $0x20] sm:$0xff] %v3965_v54  ;;  %v3968_v6 = vmax.f32 %v5705_v55, 0.0  ;;  %v5288_v41 = vpack.c.bf16 %v2187_v31, %v2167_v30  ;;  %v2227_v46 = vld [vmem:[%s6695_s20 + $0x2180] sm:$0xff]  ;;  %v5418_v48 = vpack.c.bf16 %v2230_v40, %v2210_v37  ;;  %v2248_v50 = vld [vmem:[%s6695_s20 + $0x2228] sm:$0xff]  ;;  %v2270_v54 = vld [vmem:[%s6695_s20 + $0x22d8] sm:$0xff] }
 0x64f   : > { %3987 = vst [vmem:[%s7491_s14 + $0x30] sm:$0xff] %v3967_v62  ;;  %3986 = vst [vmem:[%s7491_s14 + $0x28] sm:$0xff] %v3966_v0  ;;  %5277 = vmatpush1.bf16.msra.mxu1 %v5276_v52  ;;  %v2250_v52 = vld [vmem:[%s6695_s20 + $0x2238] sm:$0xff]  ;;  %v5292_v55 = vpack.c.bf16 %v2227_v46, %v2207_v45  ;;  %v2269_v0 = vld [vmem:[%s6695_s20 + $0x22d0] sm:$0xff] }
 0x650   : > { %3988 = vst [vmem:[%s7491_s14 + $0x38] sm:$0xff] %v3968_v6  ;;  %5405 = vmatpush1.bf16.msra.mxu0 %v5404_v56  ;;  %5279 = vmatprep.subr.bf16.mxu1 %v5278_v57  ;;  %v5420_v56 = vpack.c.bf16 %v2229_v49, %v2209_v47  ;;  %v5294_v57 = vpack.c.bf16 %v2268_v51, %v2248_v50  ;;  %v2328_v19 = vld [vmem:[%s6695_s20 + $0x24a8] sm:$0xff]  ;;  %v2330_v22 = vld [vmem:[%s6695_s20 + $0x24b8] sm:$0xff]  ;;  %v2349_v31 = vld [vmem:[%s6695_s20 + $0x2550] sm:$0xff] }
 0x651   : > { %5407 = vmatprep.subr.bf16.mxu0 %v5406_v1  ;;  %v5422_v62 = vpack.c.bf16 %v2270_v54, %v2250_v52  ;;  %v2288_v1 = vld [vmem:[%s6695_s20 + $0x2368] sm:$0xff]  ;;  %v5296_v6 = vpack.c.bf16 %v2267_v60, %v2247_v59  ;;  %v5424_v7 = vpack.c.bf16 %v2269_v0, %v2249_v61  ;;  %v2350_v23 = vld [vmem:[%s6695_s20 + $0x2558] sm:$0xff]  ;;  %v2389_v46 = vld [vmem:[%s6695_s20 + $0x2690] sm:$0xff] }
 0x652   : > { %v5298_v11 = vpack.c.bf16 %v2308_v2, %v2288_v1  ;;  %v5430_v30 = vpack.c.bf16 %v2350_v23, %v2330_v22  ;;  %v2368_v32 = vld [vmem:[%s6695_s20 + $0x25e8] sm:$0xff]  ;;  %v2370_v34 = vld [vmem:[%s6695_s20 + $0x25f8] sm:$0xff]  ;;  %v2429_v60 = vld [vmem:[%s6695_s20 + $0x27d0] sm:$0xff] }
 0x653   : > { %5281 = vmatpush1.bf16.msra.mxu1 %v5280_v13  ;;  %v2287_v13 = vld [vmem:[%s6695_s20 + $0x2360] sm:$0xff]  ;;  %v2390_v35 = vld [vmem:[%s6695_s20 + $0x2698] sm:$0xff]  ;;  %v2408_v47 = vld [vmem:[%s6695_s20 + $0x2728] sm:$0xff] }
 0x654   : > { %5409 = vmatpush1.bf16.msra.mxu0 %v5408_v38  ;;  %5283 = vmatprep.subr.bf16.mxu1 %v5282_v14  ;;  %v2307_v38 = vld [vmem:[%s6695_s20 + $0x2400] sm:$0xff]  ;;  %v2289_v14 = vld [vmem:[%s6695_s20 + $0x2370] sm:$0xff]  ;;  %v5434_v45 = vpack.c.bf16 %v2390_v35, %v2370_v34  ;;  %v2410_v49 = vld [vmem:[%s6695_s20 + $0x2738] sm:$0xff] }
 0x655   : > { %5411 = vmatprep.subr.bf16.mxu0 %v5410_v21  ;;  %v2348_v21 = vld [vmem:[%s6695_s20 + $0x2548] sm:$0xff]  ;;  %v5300_v24 = vpack.c.bf16 %v2307_v38, %v2287_v13  ;;  %v5428_v25 = vpack.c.bf16 %v2309_v16, %v2289_v14  ;;  %v2430_v50 = vld [vmem:[%s6695_s20 + $0x27d8] sm:$0xff]  ;;  %v1173_v13 = vld [vmem:[%s6695_s20 + $0x90] sm:$0xff] }
 0x656   : > { %v5302_v26 = vpack.c.bf16 %v2348_v21, %v2328_v19  ;;  %v5438_v59 = vpack.c.bf16 %v2430_v50, %v2410_v49  ;;  %v1172_v61 = vld [vmem:[%s6695_s20 + $0x88] sm:$0xff]  ;;  %v1174_v0 = vld [vmem:[%s6695_s20 + $0x98] sm:$0xff]  ;;  %v1193_v38 = vld [vmem:[%s6695_s20 + $0x130] sm:$0xff] }
 0x657   : > { %5285 = vmatpush1.bf16.msra.mxu1 %v5284_v27  ;;  %v2327_v27 = vld [vmem:[%s6695_s20 + $0x24a0] sm:$0xff]  ;;  %v1194_v1 = vld [vmem:[%s6695_s20 + $0x138] sm:$0xff]  ;;  %v1212_v14 = vld [vmem:[%s6695_s20 + $0x1c8] sm:$0xff]  ;;  %v5572_v22 = vpack.c.bf16 %v1193_v38, %v1173_v13 }
 0x658   : > { %5413 = vmatpush1.bf16.msra.mxu0 %v5412_v28  ;;  %5287 = vmatprep.subr.bf16.mxu1 %v5286_v44  ;;  %v2347_v28 = vld [vmem:[%s6695_s20 + $0x2540] sm:$0xff]  ;;  %v2329_v44 = vld [vmem:[%s6695_s20 + $0x24b0] sm:$0xff]  ;;  %v1214_v19 = vld [vmem:[%s6695_s20 + $0x1d8] sm:$0xff] }
 0x659   : > { %5415 = vmatprep.subr.bf16.mxu0 %v5414_v33  ;;  %v2388_v33 = vld [vmem:[%s6695_s20 + $0x2688] sm:$0xff]  ;;  %v5304_v36 = vpack.c.bf16 %v2347_v28, %v2327_v27  ;;  %v5432_v37 = vpack.c.bf16 %v2349_v31, %v2329_v44  ;;  %v1234_v21 = vld [vmem:[%s6695_s20 + $0x278] sm:$0xff]  ;;  %v1211_v23 = vld [vmem:[%s6695_s20 + $0x1c0] sm:$0xff] }
 0x65a   : > { %v5306_v40 = vpack.c.bf16 %v2388_v33, %v2368_v32  ;;  %v1233_v27 = vld [vmem:[%s6695_s20 + $0x270] sm:$0xff]  ;;  %v1252_v28 = vld [vmem:[%s6695_s20 + $0x308] sm:$0xff]  ;;  %v1254_v31 = vld [vmem:[%s6695_s20 + $0x318] sm:$0xff] }
 0x65b   : > { %5289 = vmatpush1.bf16.msra.mxu1 %v5288_v41  ;;  %v2367_v41 = vld [vmem:[%s6695_s20 + $0x25e0] sm:$0xff]  ;;  %v1272_v44 = vld [vmem:[%s6695_s20 + $0x3a8] sm:$0xff]  ;;  %v1274_v32 = vld [vmem:[%s6695_s20 + $0x3b8] sm:$0xff] }
 0x65c   : > { %5417 = vmatpush1.bf16.msra.mxu0 %v5416_v42  ;;  %5291 = vmatprep.subr.bf16.mxu1 %v5290_v43  ;;  %v2387_v42 = vld [vmem:[%s6695_s20 + $0x2680] sm:$0xff]  ;;  %v2369_v43 = vld [vmem:[%s6695_s20 + $0x25f0] sm:$0xff]  ;;  %v5450_v35 = vpack.c.bf16 %v1272_v44, %v1252_v28  ;;  %v1374_v13 = vld [vmem:[%s6695_s20 + $0x6d8] sm:$0xff] }
 0x65d   : > { %5419 = vmatprep.subr.bf16.mxu0 %v5418_v48  ;;  %v2428_v48 = vld [vmem:[%s6695_s20 + $0x27c8] sm:$0xff]  ;;  %v5308_v51 = vpack.c.bf16 %v2387_v42, %v2367_v41  ;;  %v5436_v52 = vpack.c.bf16 %v2389_v46, %v2369_v43  ;;  %v5578_v41 = vpack.c.bf16 %v1274_v32, %v1254_v31  ;;  %v1273_v42 = vld [vmem:[%s6695_s20 + $0x3b0] sm:$0xff]  ;;  %v1294_v46 = vld [vmem:[%s6695_s20 + $0x458] sm:$0xff] }
 0x65e   : > { %v5310_v54 = vpack.c.bf16 %v2428_v48, %v2408_v47  ;;  %v1292_v43 = vld [vmem:[%s6695_s20 + $0x448] sm:$0xff]  ;;  %v1314_v47 = vld [vmem:[%s6695_s20 + $0x4f8] sm:$0xff]  ;;  %v1291_v50 = vld [vmem:[%s6695_s20 + $0x440] sm:$0xff] }
 0x65f   : > { %5293 = vmatpush1.bf16.msra.mxu1 %v5292_v55  ;;  %v2407_v55 = vld [vmem:[%s6695_s20 + $0x2720] sm:$0xff]  ;;  %v1394_v38 = vld [vmem:[%s6695_s20 + $0x778] sm:$0xff] }
 0x660   : > { %5421 = vmatpush1.bf16.msra.mxu0 %v5420_v56  ;;  %5295 = vmatprep.subr.bf16.mxu1 %v5294_v57  ;;  %v2427_v56 = vld [vmem:[%s6695_s20 + $0x27c0] sm:$0xff]  ;;  %v2409_v57 = vld [vmem:[%s6695_s20 + $0x2730] sm:$0xff]  ;;  %v1434_v28 = vld [vmem:[%s6695_s20 + $0x8b8] sm:$0xff] }
 0x661   : > { %5423 = vmatprep.subr.bf16.mxu0 %v5422_v62  ;;  %v1192_v62 = vld [vmem:[%s6695_s20 + $0x128] sm:$0xff]  ;;  %v5312_v2 = vpack.c.bf16 %v2427_v56, %v2407_v55  ;;  %v5440_v3 = vpack.c.bf16 %v2429_v60, %v2409_v57  ;;  %v1313_v55 = vld [vmem:[%s6695_s20 + $0x4f0] sm:$0xff]  ;;  %v1354_v60 = vld [vmem:[%s6695_s20 + $0x638] sm:$0xff] }
 0x662   : > { %v5442_v5 = vpack.c.bf16 %v1192_v62, %v1172_v61  ;;  %v1332_v56 = vld [vmem:[%s6695_s20 + $0x588] sm:$0xff]  ;;  %v1411_v32 = vld [vmem:[%s6695_s20 + $0x800] sm:$0xff] }
 0x663   : > { %5297 = vmatpush1.bf16.msra.mxu1 %v5296_v6  ;;  %v1171_v6 = vld [vmem:[%s6695_s20 + $0x80] sm:$0xff]  ;;  %v1352_v57 = vld [vmem:[%s6695_s20 + $0x628] sm:$0xff] }
 0x664   : > { %5425 = vmatpush1.bf16.msra.mxu0 %v5424_v7  ;;  %5299 = vmatprep.subr.bf16.mxu1 %v5298_v11  ;;  %v1191_v7 = vld [vmem:[%s6695_s20 + $0x120] sm:$0xff]  ;;  %v5570_v11 = vpack.c.bf16 %v1194_v1, %v1174_v0  ;;  %v5458_v0 = vpack.c.bf16 %v1352_v57, %v1332_v56 }
 0x665   : > { %5427 = vmatprep.subr.bf16.mxu0 %v5426_v15  ;;  %v1232_v15 = vld [vmem:[%s6695_s20 + $0x268] sm:$0xff]  ;;  %v5444_v16 = vpack.c.bf16 %v1191_v7, %v1171_v6  ;;  %v1331_v1 = vld [vmem:[%s6695_s20 + $0x580] sm:$0xff]  ;;  %v1353_v6 = vld [vmem:[%s6695_s20 + $0x630] sm:$0xff] }
 0x666   : > { %v1372_v7 = vld [vmem:[%s6695_s20 + $0x6c8] sm:$0xff] }
 0x667   : > { %5301 = vmatpush1.bf16.msra.mxu1 %v5300_v24  ;;  %v1231_v24 = vld [vmem:[%s6695_s20 + $0x260] sm:$0xff] }
 0x668   : > { %5429 = vmatpush1.bf16.msra.mxu0 %v5428_v25  ;;  %5303 = vmatprep.subr.bf16.mxu1 %v5302_v26  ;;  %v1213_v25 = vld [vmem:[%s6695_s20 + $0x1d0] sm:$0xff]  ;;  %v5446_v26 = vpack.c.bf16 %v1232_v15, %v1212_v14  ;;  %v5448_v33 = vpack.c.bf16 %v1231_v24, %v1211_v23  ;;  %v5590_v23 = vpack.c.bf16 %v1394_v38, %v1374_v13  ;;  %v1531_v38 = vld [vmem:[%s6695_s20 + $0xbc0] sm:$0xff] }
 0x669   : > { %5431 = vmatprep.subr.bf16.mxu0 %v5430_v30  ;;  %v5574_v30 = vpack.c.bf16 %v1234_v21, %v1214_v19  ;;  %v5576_v34 = vpack.c.bf16 %v1233_v27, %v1213_v25  ;;  %v1371_v19 = vld [vmem:[%s6695_s20 + $0x6c0] sm:$0xff]  ;;  %v1393_v24 = vld [vmem:[%s6695_s20 + $0x770] sm:$0xff]  ;;  %v1412_v25 = vld [vmem:[%s6695_s20 + $0x808] sm:$0xff] }
 0x66a   : > { %v1391_v21 = vld [vmem:[%s6695_s20 + $0x760] sm:$0xff]  ;;  %v1414_v27 = vld [vmem:[%s6695_s20 + $0x818] sm:$0xff] }
 0x66b   : > { %5305 = vmatpush1.bf16.msra.mxu1 %v5304_v36  ;;  %v1251_v36 = vld [vmem:[%s6695_s20 + $0x300] sm:$0xff]  ;;  %v5464_v44 = vpack.c.bf16 %v1391_v21, %v1371_v19  ;;  %v1553_v19 = vld [vmem:[%s6695_s20 + $0xc70] sm:$0xff]  ;;  %v1572_v21 = vld [vmem:[%s6695_s20 + $0xd08] sm:$0xff] }
 0x66c   : > { %5433 = vmatpush1.bf16.msra.mxu0 %v5432_v37  ;;  %5307 = vmatprep.subr.bf16.mxu1 %v5306_v40  ;;  %v1271_v37 = vld [vmem:[%s6695_s20 + $0x3a0] sm:$0xff]  ;;  %v1253_v40 = vld [vmem:[%s6695_s20 + $0x310] sm:$0xff] }
 0x66d   : > { %5435 = vmatprep.subr.bf16.mxu0 %v5434_v45  ;;  %v1312_v45 = vld [vmem:[%s6695_s20 + $0x4e8] sm:$0xff]  ;;  %v5452_v48 = vpack.c.bf16 %v1271_v37, %v1251_v36  ;;  %v1433_v36 = vld [vmem:[%s6695_s20 + $0x8b0] sm:$0xff] }
 0x66e   : > { %v5454_v49 = vpack.c.bf16 %v1312_v45, %v1292_v43  ;;  %v1452_v37 = vld [vmem:[%s6695_s20 + $0x948] sm:$0xff] }
 0x66f   : > { %5309 = vmatpush1.bf16.msra.mxu1 %v5308_v51  ;;  %v1311_v51 = vld [vmem:[%s6695_s20 + $0x4e0] sm:$0xff] }
 0x670   : > { %5437 = vmatpush1.bf16.msra.mxu0 %v5436_v52  ;;  %5311 = vmatprep.subr.bf16.mxu1 %v5310_v54  ;;  %v1293_v52 = vld [vmem:[%s6695_s20 + $0x450] sm:$0xff]  ;;  %v5582_v54 = vpack.c.bf16 %v1314_v47, %v1294_v46  ;;  %v5456_v61 = vpack.c.bf16 %v1311_v51, %v1291_v50  ;;  %v1451_v47 = vld [vmem:[%s6695_s20 + $0x940] sm:$0xff]  ;;  %v1492_v51 = vld [vmem:[%s6695_s20 + $0xa88] sm:$0xff] }
 0x671   : > { %5439 = vmatprep.subr.bf16.mxu0 %v5438_v59  ;;  %v1334_v59 = vld [vmem:[%s6695_s20 + $0x598] sm:$0xff]  ;;  %v5584_v62 = vpack.c.bf16 %v1313_v55, %v1293_v52  ;;  %v1473_v50 = vld [vmem:[%s6695_s20 + $0x9f0] sm:$0xff]  ;;  %v1512_v52 = vld [vmem:[%s6695_s20 + $0xb28] sm:$0xff] }
 0x672   : > { %v1514_v55 = vld [vmem:[%s6695_s20 + $0xb38] sm:$0xff] }
 0x673   : > { %5313 = vmatpush1.bf16.msra.mxu1 %v5312_v2  ;;  %v1351_v2 = vld [vmem:[%s6695_s20 + $0x620] sm:$0xff] }
 0x674   : > { %5441 = vmatpush1.bf16.msra.mxu0 %v5440_v3  ;;  %5443 = vmatprep.subr.bf16.mxu1 %v5442_v5  ;;  %v1333_v3 = vld [vmem:[%s6695_s20 + $0x590] sm:$0xff]  ;;  %v5586_v5 = vpack.c.bf16 %v1354_v60, %v1334_v59  ;;  %v5460_v14 = vpack.c.bf16 %v1351_v2, %v1331_v1  ;;  %v5474_v59 = vpack.c.bf16 %v1512_v52, %v1492_v51  ;;  %v1491_v60 = vld [vmem:[%s6695_s20 + $0xa80] sm:$0xff]  ;;  %v1532_v2 = vld [vmem:[%s6695_s20 + $0xbc8] sm:$0xff] }
 0x675   : > { %5571 = vmatprep.subr.bf16.mxu0 %v5570_v11  ;;  %v1392_v11 = vld [vmem:[%s6695_s20 + $0x768] sm:$0xff]  ;;  %v5588_v15 = vpack.c.bf16 %v1353_v6, %v1333_v3  ;;  %v1513_v1 = vld [vmem:[%s6695_s20 + $0xb30] sm:$0xff]  ;;  %v1554_v6 = vld [vmem:[%s6695_s20 + $0xc78] sm:$0xff] }
 0x676   : > { %3529 = vmatmul.mubr.f32.vlgmr.msra.gmra.mrb[12].mxu1 %v7012_v29  ;;  %v1552_v3 = vld [vmem:[%s6695_s20 + $0xc68] sm:$0xff] }
 0x677   : > { %3671 = vmatmul.mubr.f32.vlgmr.msra.gmra.mrb[10].mxu0 %v7012_v29  ;;  %5445 = vmatpush1.bf16.msra.mxu1 %v5444_v16  ;;  %v5462_v16 = vpack.c.bf16 %v1392_v11, %v1372_v7  ;;  %v5478_v13 = vpack.c.bf16 %v1552_v3, %v1532_v2 }
 0x678   : > { %3741 = vmatprep.mubr.f32.mxu1 %v6866_v58  ;;  %5573 = vmatpush1.bf16.msra.mxu0 %v5572_v22  ;;  %v1373_v22 = vld [vmem:[%s6695_s20 + $0x6d0] sm:$0xff] }
 0x679   : > { %3883 = vmatprep.mubr.f32.mxu0 %v6866_v58  ;;  %5447 = vmatprep.subr.bf16.mxu1 %v5446_v26  ;;  %v5580_v58 = vpack.c.bf16 %v1273_v42, %v1253_v40  ;;  %v1432_v26 = vld [vmem:[%s6695_s20 + $0x8a8] sm:$0xff]  ;;  %v1474_v42 = vld [vmem:[%s6695_s20 + $0x9f8] sm:$0xff] }
 0x67a   : > { %5575 = vmatprep.subr.bf16.mxu0 %v5574_v30  ;;  %v5592_v30 = vpack.c.bf16 %v1393_v24, %v1373_v22  ;;  %v5466_v31 = vpack.c.bf16 %v1432_v26, %v1412_v25  ;;  %v1472_v40 = vld [vmem:[%s6695_s20 + $0x9e8] sm:$0xff]  ;;  %v1594_v24 = vld [vmem:[%s6695_s20 + $0xdb8] sm:$0xff] }
 0x67b   : > { %5449 = vmatpush1.bf16.msra.mxu1 %v5448_v33  ;;  %v1431_v33 = vld [vmem:[%s6695_s20 + $0x8a0] sm:$0xff]  ;;  %v5470_v46 = vpack.c.bf16 %v1472_v40, %v1452_v37  ;;  %v1592_v22 = vld [vmem:[%s6695_s20 + $0xda8] sm:$0xff] }
 0x67c   : > { %5577 = vmatpush1.bf16.msra.mxu0 %v5576_v34  ;;  %5451 = vmatprep.subr.bf16.mxu1 %v5450_v35  ;;  %v1413_v34 = vld [vmem:[%s6695_s20 + $0x810] sm:$0xff]  ;;  %v5594_v35 = vpack.c.bf16 %v1434_v28, %v1414_v27  ;;  %v5468_v43 = vpack.c.bf16 %v1431_v33, %v1411_v32  ;;  %v5482_v27 = vpack.c.bf16 %v1592_v22, %v1572_v21  ;;  %v1571_v28 = vld [vmem:[%s6695_s20 + $0xd00] sm:$0xff]  ;;  %v1612_v33 = vld [vmem:[%s6695_s20 + $0xe48] sm:$0xff] }
 0x67d   : > { %5579 = vmatprep.subr.bf16.mxu0 %v5578_v41  ;;  %v1454_v41 = vld [vmem:[%s6695_s20 + $0x958] sm:$0xff]  ;;  %v5596_v45 = vpack.c.bf16 %v1433_v36, %v1413_v34  ;;  %v1593_v32 = vld [vmem:[%s6695_s20 + $0xdb0] sm:$0xff]  ;;  %v1632_v34 = vld [vmem:[%s6695_s20 + $0xee8] sm:$0xff] }
 0x67e   : > { %v1634_v36 = vld [vmem:[%s6695_s20 + $0xef8] sm:$0xff] }
 0x67f   : > { %5453 = vmatpush1.bf16.msra.mxu1 %v5452_v48  ;;  %v1471_v48 = vld [vmem:[%s6695_s20 + $0x9e0] sm:$0xff] }
 0x680   : > { %5581 = vmatpush1.bf16.msra.mxu0 %v5580_v58  ;;  %5455 = vmatprep.subr.bf16.mxu1 %v5454_v49  ;;  %v1453_v58 = vld [vmem:[%s6695_s20 + $0x950] sm:$0xff]  ;;  %v5598_v49 = vpack.c.bf16 %v1474_v42, %v1454_v41  ;;  %v5472_v56 = vpack.c.bf16 %v1471_v48, %v1451_v47  ;;  %v5486_v41 = vpack.c.bf16 %v1632_v34, %v1612_v33  ;;  %v1611_v42 = vld [vmem:[%s6695_s20 + $0xe40] sm:$0xff]  ;;  %v1652_v48 = vld [vmem:[%s6695_s20 + $0xf88] sm:$0xff] }
 0x681   : > { %5583 = vmatprep.subr.bf16.mxu0 %v5582_v54  ;;  %v1494_v54 = vld [vmem:[%s6695_s20 + $0xa98] sm:$0xff]  ;;  %v5600_v57 = vpack.c.bf16 %v1473_v50, %v1453_v58  ;;  %v1633_v47 = vld [vmem:[%s6695_s20 + $0xef0] sm:$0xff]  ;;  %v1672_v58 = vld [vmem:[%s6695_s20 + $0x1028] sm:$0xff] }
 0x682   : > { %v1674_v50 = vld [vmem:[%s6695_s20 + $0x1038] sm:$0xff] }
 0x683   : > { %5457 = vmatpush1.bf16.msra.mxu1 %v5456_v61  ;;  %v1511_v61 = vld [vmem:[%s6695_s20 + $0xb20] sm:$0xff] }
 0x684   : > { %5585 = vmatpush1.bf16.msra.mxu0 %v5584_v62  ;;  %5459 = vmatprep.subr.bf16.mxu1 %v5458_v0  ;;  %v1493_v62 = vld [vmem:[%s6695_s20 + $0xa90] sm:$0xff]  ;;  %v5602_v0 = vpack.c.bf16 %v1514_v55, %v1494_v54  ;;  %v5476_v7 = vpack.c.bf16 %v1511_v61, %v1491_v60  ;;  %v5490_v54 = vpack.c.bf16 %v1672_v58, %v1652_v48  ;;  %v1651_v55 = vld [vmem:[%s6695_s20 + $0xf80] sm:$0xff]  ;;  %v1692_v61 = vld [vmem:[%s6695_s20 + $0x10c8] sm:$0xff] }
 0x685   : > { %5587 = vmatprep.subr.bf16.mxu0 %v5586_v5  ;;  %v1534_v5 = vld [vmem:[%s6695_s20 + $0xbd8] sm:$0xff]  ;;  %v5604_v11 = vpack.c.bf16 %v1513_v1, %v1493_v62  ;;  %v1673_v60 = vld [vmem:[%s6695_s20 + $0x1030] sm:$0xff]  ;;  %v1712_v62 = vld [vmem:[%s6695_s20 + $0x1168] sm:$0xff] }
 0x686   : > { %v1714_v1 = vld [vmem:[%s6695_s20 + $0x1178] sm:$0xff] }
 0x687   : > { %5461 = vmatpush1.bf16.msra.mxu1 %v5460_v14  ;;  %v1551_v14 = vld [vmem:[%s6695_s20 + $0xc60] sm:$0xff] }
 0x688   : > { %5589 = vmatpush1.bf16.msra.mxu0 %v5588_v15  ;;  %5463 = vmatprep.subr.bf16.mxu1 %v5462_v16  ;;  %v1533_v15 = vld [vmem:[%s6695_s20 + $0xbd0] sm:$0xff]  ;;  %v5606_v16 = vpack.c.bf16 %v1554_v6, %v1534_v5  ;;  %v5480_v25 = vpack.c.bf16 %v1551_v14, %v1531_v38  ;;  %v5494_v5 = vpack.c.bf16 %v1712_v62, %v1692_v61  ;;  %v1691_v6 = vld [vmem:[%s6695_s20 + $0x10c0] sm:$0xff]  ;;  %v1732_v14 = vld [vmem:[%s6695_s20 + $0x1208] sm:$0xff] }
 0x689   : > { %5591 = vmatprep.subr.bf16.mxu0 %v5590_v23  ;;  %v1574_v23 = vld [vmem:[%s6695_s20 + $0xd18] sm:$0xff]  ;;  %v5608_v26 = vpack.c.bf16 %v1553_v19, %v1533_v15  ;;  %v1713_v38 = vld [vmem:[%s6695_s20 + $0x1170] sm:$0xff]  ;;  %v1752_v15 = vld [vmem:[%s6695_s20 + $0x12a8] sm:$0xff] }
 0x68a   : > { %v1754_v19 = vld [vmem:[%s6695_s20 + $0x12b8] sm:$0xff] }
 0x68b   : > { %5465 = vmatpush1.bf16.msra.mxu1 %v5464_v44  ;;  %v1591_v44 = vld [vmem:[%s6695_s20 + $0xda0] sm:$0xff]  ;;  %v1874_v61 = vld [vmem:[%s6695_s20 + $0x1678] sm:$0xff] }
 0x68c   : > { %5593 = vmatpush1.bf16.msra.mxu0 %v5592_v30  ;;  %5467 = vmatprep.subr.bf16.mxu1 %v5466_v31  ;;  %v1573_v30 = vld [vmem:[%s6695_s20 + $0xd10] sm:$0xff]  ;;  %v5610_v31 = vpack.c.bf16 %v1594_v24, %v1574_v23  ;;  %v5484_v37 = vpack.c.bf16 %v1591_v44, %v1571_v28  ;;  %v5498_v23 = vpack.c.bf16 %v1752_v15, %v1732_v14  ;;  %v1731_v24 = vld [vmem:[%s6695_s20 + $0x1200] sm:$0xff]  ;;  %v1772_v44 = vld [vmem:[%s6695_s20 + $0x1348] sm:$0xff] }
 0x68d   : > { %5595 = vmatprep.subr.bf16.mxu0 %v5594_v35  ;;  %v1614_v35 = vld [vmem:[%s6695_s20 + $0xe58] sm:$0xff]  ;;  %v5612_v40 = vpack.c.bf16 %v1593_v32, %v1573_v30  ;;  %v1753_v28 = vld [vmem:[%s6695_s20 + $0x12b0] sm:$0xff]  ;;  %v1792_v30 = vld [vmem:[%s6695_s20 + $0x13e8] sm:$0xff] }
 0x68e   : > { %v1794_v32 = vld [vmem:[%s6695_s20 + $0x13f8] sm:$0xff] }
 0x68f   : > { %5469 = vmatpush1.bf16.msra.mxu1 %v5468_v43  ;;  %v1631_v43 = vld [vmem:[%s6695_s20 + $0xee0] sm:$0xff] }
 0x690   : > { %5597 = vmatpush1.bf16.msra.mxu0 %v5596_v45  ;;  %5471 = vmatprep.subr.bf16.mxu1 %v5470_v46  ;;  %v1613_v45 = vld [vmem:[%s6695_s20 + $0xe50] sm:$0xff]  ;;  %v5614_v46 = vpack.c.bf16 %v1634_v36, %v1614_v35  ;;  %v5488_v51 = vpack.c.bf16 %v1631_v43, %v1611_v42  ;;  %v5502_v35 = vpack.c.bf16 %v1792_v30, %v1772_v44  ;;  %v1771_v36 = vld [vmem:[%s6695_s20 + $0x1340] sm:$0xff]  ;;  %v1812_v43 = vld [vmem:[%s6695_s20 + $0x1488] sm:$0xff] }
 0x691   : > { %5599 = vmatprep.subr.bf16.mxu0 %v5598_v49  ;;  %v1654_v49 = vld [vmem:[%s6695_s20 + $0xf98] sm:$0xff]  ;;  %v5616_v52 = vpack.c.bf16 %v1633_v47, %v1613_v45  ;;  %v1793_v42 = vld [vmem:[%s6695_s20 + $0x13f0] sm:$0xff]  ;;  %v1832_v45 = vld [vmem:[%s6695_s20 + $0x1528] sm:$0xff] }
 0x692   : > { %v1834_v47 = vld [vmem:[%s6695_s20 + $0x1538] sm:$0xff]  ;;  %v1931_v30 = vld [vmem:[%s6695_s20 + $0x1840] sm:$0xff] }
 0x693   : > { %5473 = vmatpush1.bf16.msra.mxu1 %v5472_v56  ;;  %v1671_v56 = vld [vmem:[%s6695_s20 + $0x1020] sm:$0xff] }
 0x694   : > { %5601 = vmatpush1.bf16.msra.mxu0 %v5600_v57  ;;  %5475 = vmatprep.subr.bf16.mxu1 %v5474_v59  ;;  %v1653_v57 = vld [vmem:[%s6695_s20 + $0xf90] sm:$0xff]  ;;  %v5618_v59 = vpack.c.bf16 %v1674_v50, %v1654_v49  ;;  %v5492_v2 = vpack.c.bf16 %v1671_v56, %v1651_v55  ;;  %v5506_v49 = vpack.c.bf16 %v1832_v45, %v1812_v43  ;;  %v1811_v50 = vld [vmem:[%s6695_s20 + $0x1480] sm:$0xff]  ;;  %v1852_v56 = vld [vmem:[%s6695_s20 + $0x15c8] sm:$0xff] }
 0x695   : > { %5603 = vmatprep.subr.bf16.mxu0 %v5602_v0  ;;  %v1694_v0 = vld [vmem:[%s6695_s20 + $0x10d8] sm:$0xff]  ;;  %v5620_v3 = vpack.c.bf16 %v1673_v60, %v1653_v57  ;;  %v1833_v55 = vld [vmem:[%s6695_s20 + $0x1530] sm:$0xff]  ;;  %v1872_v57 = vld [vmem:[%s6695_s20 + $0x1668] sm:$0xff] }
 0x696   : > { %v1854_v60 = vld [vmem:[%s6695_s20 + $0x15d8] sm:$0xff]  ;;  %v1971_v45 = vld [vmem:[%s6695_s20 + $0x1980] sm:$0xff] }
 0x697   : > { %5477 = vmatpush1.bf16.msra.mxu1 %v5476_v7  ;;  %v1711_v7 = vld [vmem:[%s6695_s20 + $0x1160] sm:$0xff] }
 0x698   : > { %5605 = vmatpush1.bf16.msra.mxu0 %v5604_v11  ;;  %5479 = vmatprep.subr.bf16.mxu1 %v5478_v13  ;;  %v1693_v11 = vld [vmem:[%s6695_s20 + $0x10d0] sm:$0xff]  ;;  %v5622_v13 = vpack.c.bf16 %v1714_v1, %v1694_v0  ;;  %v5496_v21 = vpack.c.bf16 %v1711_v7, %v1691_v6  ;;  %v1851_v0 = vld [vmem:[%s6695_s20 + $0x15c0] sm:$0xff]  ;;  %v1892_v6 = vld [vmem:[%s6695_s20 + $0x1708] sm:$0xff] }
 0x699   : > { %5607 = vmatprep.subr.bf16.mxu0 %v5606_v16  ;;  %v1734_v16 = vld [vmem:[%s6695_s20 + $0x1218] sm:$0xff]  ;;  %v5624_v22 = vpack.c.bf16 %v1713_v38, %v1693_v11  ;;  %v1871_v1 = vld [vmem:[%s6695_s20 + $0x1660] sm:$0xff]  ;;  %v1912_v7 = vld [vmem:[%s6695_s20 + $0x17a8] sm:$0xff]  ;;  %v5638_v11 = vpack.c.bf16 %v1874_v61, %v1854_v60 }
 0x69a   : > { %v1914_v38 = vld [vmem:[%s6695_s20 + $0x17b8] sm:$0xff]  ;;  %v5512_v14 = vpack.c.bf16 %v1871_v1, %v1851_v0  ;;  %v2031_v60 = vld [vmem:[%s6695_s20 + $0x1b60] sm:$0xff]  ;;  %v2013_v61 = vld [vmem:[%s6695_s20 + $0x1ad0] sm:$0xff] }
 0x69b   : > { %5481 = vmatpush1.bf16.msra.mxu1 %v5480_v25  ;;  %v1751_v25 = vld [vmem:[%s6695_s20 + $0x12a0] sm:$0xff]  ;;  %v2033_v0 = vld [vmem:[%s6695_s20 + $0x1b70] sm:$0xff]  ;;  %v2052_v1 = vld [vmem:[%s6695_s20 + $0x1c08] sm:$0xff] }
 0x69c   : > { %5609 = vmatpush1.bf16.msra.mxu0 %v5608_v26  ;;  %5483 = vmatprep.subr.bf16.mxu1 %v5482_v27  ;;  %v1733_v26 = vld [vmem:[%s6695_s20 + $0x1210] sm:$0xff]  ;;  %v5626_v27 = vpack.c.bf16 %v1754_v19, %v1734_v16  ;;  %v5500_v33 = vpack.c.bf16 %v1751_v25, %v1731_v24  ;;  %v5514_v16 = vpack.c.bf16 %v1912_v7, %v1892_v6  ;;  %v1891_v19 = vld [vmem:[%s6695_s20 + $0x1700] sm:$0xff]  ;;  %v1932_v24 = vld [vmem:[%s6695_s20 + $0x1848] sm:$0xff] }
 0x69d   : > { %5611 = vmatprep.subr.bf16.mxu0 %v5610_v31  ;;  %v1774_v31 = vld [vmem:[%s6695_s20 + $0x1358] sm:$0xff]  ;;  %v5628_v34 = vpack.c.bf16 %v1753_v28, %v1733_v26  ;;  %v1952_v25 = vld [vmem:[%s6695_s20 + $0x18e8] sm:$0xff] }
 0x69e   : > { %v1934_v26 = vld [vmem:[%s6695_s20 + $0x1858] sm:$0xff]  ;;  %v5518_v44 = vpack.c.bf16 %v1952_v25, %v1932_v24  ;;  %v2092_v24 = vld [vmem:[%s6695_s20 + $0x1d48] sm:$0xff] }
 0x69f   : > { %5485 = vmatpush1.bf16.msra.mxu1 %v5484_v37  ;;  %v1791_v37 = vld [vmem:[%s6695_s20 + $0x13e0] sm:$0xff]  ;;  %v2074_v6 = vld [vmem:[%s6695_s20 + $0x1cb8] sm:$0xff]  ;;  %v2112_v25 = vld [vmem:[%s6695_s20 + $0x1de8] sm:$0xff] }
 0x6a0   : > { %5613 = vmatpush1.bf16.msra.mxu0 %v5612_v40  ;;  %5487 = vmatprep.subr.bf16.mxu1 %v5486_v41  ;;  %v1773_v40 = vld [vmem:[%s6695_s20 + $0x1350] sm:$0xff]  ;;  %v5630_v41 = vpack.c.bf16 %v1794_v32, %v1774_v31  ;;  %v5504_v48 = vpack.c.bf16 %v1791_v37, %v1771_v36  ;;  %v1951_v31 = vld [vmem:[%s6695_s20 + $0x18e0] sm:$0xff]  ;;  %v1992_v36 = vld [vmem:[%s6695_s20 + $0x1a28] sm:$0xff] }
 0x6a1   : > { %5615 = vmatprep.subr.bf16.mxu0 %v5614_v46  ;;  %v1814_v46 = vld [vmem:[%s6695_s20 + $0x1498] sm:$0xff]  ;;  %v5632_v58 = vpack.c.bf16 %v1793_v42, %v1773_v40  ;;  %v1933_v32 = vld [vmem:[%s6695_s20 + $0x1850] sm:$0xff] }
 0x6a2   : > { %v1974_v37 = vld [vmem:[%s6695_s20 + $0x1998] sm:$0xff] }
 0x6a3   : > { %5489 = vmatpush1.bf16.msra.mxu1 %v5488_v51  ;;  %v1831_v51 = vld [vmem:[%s6695_s20 + $0x1520] sm:$0xff]  ;;  %v1994_v40 = vld [vmem:[%s6695_s20 + $0x1a38] sm:$0xff] }
 0x6a4   : > { %5617 = vmatpush1.bf16.msra.mxu0 %v5616_v52  ;;  %5491 = vmatprep.subr.bf16.mxu1 %v5490_v54  ;;  %v5634_v52 = vpack.c.bf16 %v1834_v47, %v1814_v46  ;;  %v1813_v54 = vld [vmem:[%s6695_s20 + $0x1490] sm:$0xff]  ;;  %v1991_v46 = vld [vmem:[%s6695_s20 + $0x1a20] sm:$0xff] }
 0x6a5   : > { %5619 = vmatprep.subr.bf16.mxu0 %v5618_v59  ;;  %v5508_v59 = vpack.c.bf16 %v1831_v51, %v1811_v50  ;;  %v5636_v62 = vpack.c.bf16 %v1833_v55, %v1813_v54  ;;  %v1973_v47 = vld [vmem:[%s6695_s20 + $0x1990] sm:$0xff]  ;;  %v2032_v50 = vld [vmem:[%s6695_s20 + $0x1b68] sm:$0xff]  ;;  %v2014_v51 = vld [vmem:[%s6695_s20 + $0x1ad8] sm:$0xff]  ;;  %v5524_v54 = vpack.c.bf16 %v1991_v46, %v1971_v45 }
 0x6a6   : > { %v8027_v55 = vld [vmem:[%s7458_s17 + $0x8] sm:$0xff] }
 0x6a7   : > { %5493 = vmatpush1.bf16.msra.mxu1 %v5492_v2  ;;  %v1853_v2 = vld [vmem:[%s6695_s20 + $0x15d0] sm:$0xff]  ;;  %v2484_v7 = vrot.slane %v8027_v55, %v6985_v53 }
 0x6a8   : > { %5621 = vmatpush1.bf16.msra.mxu0 %v5620_v3  ;;  %5495 = vmatprep.subr.bf16.mxu1 %v5494_v5  ;;  %v5510_v3 = vpack.c.bf16 %v1872_v57, %v1852_v56  ;;  %v1873_v5 = vld [vmem:[%s6695_s20 + $0x1670] sm:$0xff] }
 0x6a9   : > { %5623 = vmatprep.subr.bf16.mxu0 %v5622_v13  ;;  %v1894_v13 = vld [vmem:[%s6695_s20 + $0x1718] sm:$0xff]  ;;  %v5640_v15 = vpack.c.bf16 %v1873_v5, %v1853_v2  ;;  %v2072_v2 = vld [vmem:[%s6695_s20 + $0x1ca8] sm:$0xff] }
 0x6aa   : > { %v2054_v5 = vld [vmem:[%s6695_s20 + $0x1c18] sm:$0xff] }
 0x6ab   : > { %5497 = vmatpush1.bf16.msra.mxu1 %v5496_v21  ;;  %v1911_v21 = vld [vmem:[%s6695_s20 + $0x17a0] sm:$0xff] }
 0x6ac   : > { %5625 = vmatpush1.bf16.msra.mxu0 %v5624_v22  ;;  %5499 = vmatprep.subr.bf16.mxu1 %v5498_v23  ;;  %v1893_v22 = vld [vmem:[%s6695_s20 + $0x1710] sm:$0xff]  ;;  %v5642_v23 = vpack.c.bf16 %v1914_v38, %v1894_v13  ;;  %v5516_v28 = vpack.c.bf16 %v1911_v21, %v1891_v19  ;;  %v2488_v38 = vrot.slane %v8027_v55, %v6848_v39  ;;  %v2071_v19 = vld [vmem:[%s6695_s20 + $0x1ca0] sm:$0xff] }
 0x6ad   : > { %5627 = vmatprep.subr.bf16.mxu0 %v5626_v27  ;;  %v1954_v27 = vld [vmem:[%s6695_s20 + $0x18f8] sm:$0xff]  ;;  %v2053_v21 = vld [vmem:[%s6695_s20 + $0x1c10] sm:$0xff] }
 0x6af   : > { %5501 = vmatpush1.bf16.msra.mxu1 %v5500_v33  ;;  %v5646_v33 = vpack.c.bf16 %v1954_v27, %v1934_v26 }
 0x6b0   : > { %5629 = vmatpush1.bf16.msra.mxu0 %v5628_v34  ;;  %5503 = vmatprep.subr.bf16.mxu1 %v5502_v35  ;;  %v1953_v34 = vld [vmem:[%s6695_s20 + $0x18f0] sm:$0xff]  ;;  %v1972_v35 = vld [vmem:[%s6695_s20 + $0x1988] sm:$0xff] }
 0x6b1   : > { %5631 = vmatprep.subr.bf16.mxu0 %v5630_v41  ;;  %v5520_v41 = vpack.c.bf16 %v1951_v31, %v1931_v30  ;;  %v5648_v42 = vpack.c.bf16 %v1953_v34, %v1933_v32  ;;  %v5522_v43 = vpack.c.bf16 %v1992_v36, %v1972_v35 }
 0x6b3   : > { %5505 = vmatpush1.bf16.msra.mxu1 %v5504_v48  ;;  %v5650_v48 = vpack.c.bf16 %v1994_v40, %v1974_v37  ;;  %v5534_v37 = vpack.c.bf16 %v2112_v25, %v2092_v24  ;;  %v2091_v40 = vld [vmem:[%s6695_s20 + $0x1d40] sm:$0xff] }
 0x6b4   : > { %5633 = vmatpush1.bf16.msra.mxu0 %v5632_v58  ;;  %5507 = vmatprep.subr.bf16.mxu1 %v5506_v49  ;;  %v1993_v58 = vld [vmem:[%s6695_s20 + $0x1a30] sm:$0xff]  ;;  %v2012_v49 = vld [vmem:[%s6695_s20 + $0x1ac8] sm:$0xff]  ;;  %v2211_v25 = vld [vmem:[%s6695_s20 + $0x2100] sm:$0xff] }
 0x6b5   : > { %5635 = vmatprep.subr.bf16.mxu0 %v5634_v52  ;;  %v2034_v52 = vld [vmem:[%s6695_s20 + $0x1b78] sm:$0xff]  ;;  %v5652_v56 = vpack.c.bf16 %v1993_v58, %v1973_v47  ;;  %v5526_v57 = vpack.c.bf16 %v2032_v50, %v2012_v49  ;;  %v2113_v47 = vld [vmem:[%s6695_s20 + $0x1df0] sm:$0xff]  ;;  %v2152_v58 = vld [vmem:[%s6695_s20 + $0x1f28] sm:$0xff] }
 0x6b6   : > { %3742 = vmatmul.mubr.f32.vlgmr.msra.gmra.mrb[14].mxu1 %v6870_v63  ;;  %v2134_v50 = vld [vmem:[%s6695_s20 + $0x1e98] sm:$0xff] }
 0x6b7   : > { %3884 = vmatmul.mubr.f32.vlgmr.msra.gmra.mrb[12].mxu0 %v6870_v63  ;;  %5509 = vmatpush1.bf16.msra.mxu1 %v5508_v59  ;;  %v1913_v63 = vld [vmem:[%s6695_s20 + $0x17b0] sm:$0xff]  ;;  %v2011_v59 = vld [vmem:[%s6695_s20 + $0x1ac0] sm:$0xff] }
 0x6b8   : > { %3812 = vmatprep.mubr.f32.mxu1 %v6880_v8  ;;  %5637 = vmatpush1.bf16.msra.mxu0 %v5636_v62  ;;  %v5654_v62 = vpack.c.bf16 %v2034_v52, %v2014_v51  ;;  %v5528_v13 = vpack.c.bf16 %v2031_v60, %v2011_v59  ;;  %v2154_v51 = vld [vmem:[%s6695_s20 + $0x1f38] sm:$0xff]  ;;  %v2151_v59 = vld [vmem:[%s6695_s20 + $0x1f20] sm:$0xff]  ;;  %v2133_v60 = vld [vmem:[%s6695_s20 + $0x1e90] sm:$0xff] }
 0x6b9   : > { %3954 = vmatprep.mubr.f32.mxu0 %v6880_v8  ;;  %5511 = vmatprep.subr.bf16.mxu1 %v5510_v3  ;;  %v5644_v8 = vpack.c.bf16 %v1913_v63, %v1893_v22  ;;  %v2476_v3 = vrot.slane %v8027_v55, %v6710_v18  ;;  %v2073_v63 = vld [vmem:[%s6695_s20 + $0x1cb0] sm:$0xff] }
 0x6ba   : > { %5639 = vmatprep.subr.bf16.mxu0 %v5638_v11  ;;  %v2480_v11 = vrot.slane %v8027_v55, %v6713_v20  ;;  %v5660_v36 = vpack.c.bf16 %v2073_v63, %v2053_v21  ;;  %v2214_v21 = vld [vmem:[%s6695_s20 + $0x2118] sm:$0xff] }
 0x6bb   : > { %5513 = vmatpush1.bf16.msra.mxu1 %v5512_v14  ;;  %v5656_v14 = vpack.c.bf16 %v2033_v0, %v2013_v61  ;;  %v5666_v61 = vpack.c.bf16 %v2154_v51, %v2134_v50  ;;  %v2172_v0 = vld [vmem:[%s6695_s20 + $0x1fc8] sm:$0xff]  ;;  %v2291_v50 = vld [vmem:[%s6695_s20 + $0x2380] sm:$0xff] }
 0x6bc   : > { %5641 = vmatpush1.bf16.msra.mxu0 %v5640_v15  ;;  %5515 = vmatprep.subr.bf16.mxu1 %v5514_v16  ;;  %v5530_v15 = vpack.c.bf16 %v2072_v2, %v2052_v1  ;;  %v2051_v16 = vld [vmem:[%s6695_s20 + $0x1c00] sm:$0xff]  ;;  %v2192_v1 = vld [vmem:[%s6695_s20 + $0x2068] sm:$0xff]  ;;  %v2174_v2 = vld [vmem:[%s6695_s20 + $0x1fd8] sm:$0xff] }
 0x6bd   : > { %5643 = vmatprep.subr.bf16.mxu0 %v5642_v23  ;;  %v5658_v23 = vpack.c.bf16 %v2074_v6, %v2054_v5  ;;  %v2311_v51 = vld [vmem:[%s6695_s20 + $0x2420] sm:$0xff] }
 0x6bf   : > { %5517 = vmatpush1.bf16.msra.mxu1 %v5516_v28 }
 0x6c0   : > { %5645 = vmatpush1.bf16.msra.mxu0 %v5644_v8  ;;  %5519 = vmatprep.subr.bf16.mxu1 %v5518_v44  ;;  %v2094_v8 = vld [vmem:[%s6695_s20 + $0x1d58] sm:$0xff] }
 0x6c1   : > { %5647 = vmatprep.subr.bf16.mxu0 %v5646_v33  ;;  %v2114_v44 = vld [vmem:[%s6695_s20 + $0x1df8] sm:$0xff]  ;;  %v5532_v33 = vpack.c.bf16 %v2071_v19, %v2051_v16  ;;  %v2212_v16 = vld [vmem:[%s6695_s20 + $0x2108] sm:$0xff] }
 0x6c2   : > { %v5662_v46 = vpack.c.bf16 %v2114_v44, %v2094_v8  ;;  %v2232_v19 = vld [vmem:[%s6695_s20 + $0x21a8] sm:$0xff]  ;;  %v2233_v8 = vld [vmem:[%s6695_s20 + $0x21b0] sm:$0xff] }
 0x6c3   : > { %5521 = vmatpush1.bf16.msra.mxu1 %v5520_v41  ;;  %v2111_v41 = vld [vmem:[%s6695_s20 + $0x1de0] sm:$0xff]  ;;  %v5546_v24 = vpack.c.bf16 %v2232_v19, %v2212_v16  ;;  %v2252_v44 = vld [vmem:[%s6695_s20 + $0x2248] sm:$0xff] }
 0x6c4   : > { %5649 = vmatpush1.bf16.msra.mxu0 %v5648_v42  ;;  %5523 = vmatprep.subr.bf16.mxu1 %v5522_v43  ;;  %v2093_v42 = vld [vmem:[%s6695_s20 + $0x1d50] sm:$0xff]  ;;  %v5536_v52 = vpack.c.bf16 %v2111_v41, %v2091_v40 }
 0x6c5   : > { %5651 = vmatprep.subr.bf16.mxu0 %v5650_v48  ;;  %v2132_v48 = vld [vmem:[%s6695_s20 + $0x1e88] sm:$0xff]  ;;  %v2253_v40 = vld [vmem:[%s6695_s20 + $0x2250] sm:$0xff] }
 0x6c7   : > { %5525 = vmatpush1.bf16.msra.mxu1 %v5524_v54  ;;  %v5664_v54 = vpack.c.bf16 %v2113_v47, %v2093_v42  ;;  %v2273_v42 = vld [vmem:[%s6695_s20 + $0x22f0] sm:$0xff]  ;;  %v2314_v47 = vld [vmem:[%s6695_s20 + $0x2438] sm:$0xff] }
 0x6c8   : > { %5653 = vmatpush1.bf16.msra.mxu0 %v5652_v56  ;;  %5527 = vmatprep.subr.bf16.mxu1 %v5526_v57  ;;  %v5538_v56 = vpack.c.bf16 %v2152_v58, %v2132_v48  ;;  %v2131_v57 = vld [vmem:[%s6695_s20 + $0x1e80] sm:$0xff]  ;;  %v5680_v58 = vpack.c.bf16 %v2273_v42, %v2253_v40  ;;  %v2492_v40 = vrot.slane %v8027_v55, %v2459_v4 }
 0x6c9   : > { %v3246_v22 = vpop.f32.mrb[10].mxu1  ;;  %5655 = vmatprep.subr.bf16.mxu0 %v5654_v62  ;;  %v2153_v62 = vld [vmem:[%s6695_s20 + $0x1f30] sm:$0xff]  ;;  %v5540_v5 = vpack.c.bf16 %v2151_v59, %v2131_v57  ;;  %v2332_v57 = vld [vmem:[%s6695_s20 + $0x24c8] sm:$0xff]  ;;  %v2496_v42 = vrot.slane %v8027_v55, %v2463_v10 }
 0x6ca   : > { %v5706_v26 = vadd.f32 %v3246_v22, %v2476_v3  ;;  %v3388_v27 = vpop.f32.mrb[8].mxu0  ;;  %v3248_v28 = vpop.f32.mrb[11].mxu1  ;;  %v2194_v3 = vld [vmem:[%s6695_s20 + $0x2078] sm:$0xff]  ;;  %v5668_v6 = vpack.c.bf16 %v2153_v62, %v2133_v60  ;;  %v2352_v59 = vld [vmem:[%s6695_s20 + $0x2568] sm:$0xff]  ;;  %v5556_v62 = vpack.c.bf16 %v2311_v51, %v2291_v50 }
 0x6cb   : > { %v5708_v30 = vadd.f32 %v3388_v27, %v2484_v7  ;;  %v5707_v31 = vadd.f32 %v3248_v28, %v2480_v11  ;;  %v3390_v32 = vpop.f32.mrb[9].mxu0  ;;  %5529 = vmatpush1.bf16.msra.mxu1 %v5528_v13  ;;  %v5542_v7 = vpack.c.bf16 %v2192_v1, %v2172_v0  ;;  %v2171_v11 = vld [vmem:[%s6695_s20 + $0x1fc0] sm:$0xff]  ;;  %v2234_v22 = vld [vmem:[%s6695_s20 + $0x21b8] sm:$0xff]  ;;  %v2213_v27 = vld [vmem:[%s6695_s20 + $0x2110] sm:$0xff]  ;;  %v5558_v1 = vpack.c.bf16 %v2352_v59, %v2332_v57 }
 0x6cc   : > { %v3969_v34 = vmax.f32 %v5706_v26, 0.0  ;;  %v5709_v35 = vadd.f32 %v3390_v32, %v2488_v38  ;;  %5657 = vmatpush1.bf16.msra.mxu0 %v5656_v14  ;;  %5531 = vmatprep.subr.bf16.mxu1 %v5530_v15  ;;  %v2191_v13 = vld [vmem:[%s6695_s20 + $0x2060] sm:$0xff]  ;;  %v2173_v38 = vld [vmem:[%s6695_s20 + $0x1fd0] sm:$0xff]  ;;  %v5670_v14 = vpack.c.bf16 %v2194_v3, %v2174_v2  ;;  %v5674_v28 = vpack.c.bf16 %v2234_v22, %v2214_v21  ;;  %v2274_v32 = vld [vmem:[%s6695_s20 + $0x22f8] sm:$0xff] }
 0x6cd   : > { %v3971_v43 = vmax.f32 %v5708_v30, 0.0  ;;  %v3970_v45 = vmax.f32 %v5707_v31, 0.0  ;;  %5659 = vmatprep.subr.bf16.mxu0 %v5658_v23  ;;  %v2193_v15 = vld [vmem:[%s6695_s20 + $0x2070] sm:$0xff]  ;;  %v5544_v23 = vpack.c.bf16 %v2191_v13, %v2171_v11  ;;  %v2231_v26 = vld [vmem:[%s6695_s20 + $0x21a0] sm:$0xff]  ;;  %v2272_v30 = vld [vmem:[%s6695_s20 + $0x22e8] sm:$0xff] }
 0x6ce   : > { %3989 = vst [vmem:[%s7491_s14 + $0x40] sm:$0xff] %v3969_v34  ;;  %v3972_v49 = vmax.f32 %v5709_v35, 0.0  ;;  %v5672_v63 = vpack.c.bf16 %v2193_v15, %v2173_v38  ;;  %v2254_v31 = vld [vmem:[%s6695_s20 + $0x2258] sm:$0xff]  ;;  %v5676_v34 = vpack.c.bf16 %v2233_v8, %v2213_v27  ;;  %v5550_v35 = vpack.c.bf16 %v2272_v30, %v2252_v44  ;;  %v2331_v2 = vld [vmem:[%s6695_s20 + $0x24c0] sm:$0xff]  ;;  %v2372_v11 = vld [vmem:[%s6695_s20 + $0x2608] sm:$0xff] }
 0x6cf   : > { %3991 = vst [vmem:[%s7491_s14 + $0x50] sm:$0xff] %v3971_v43  ;;  %3990 = vst [vmem:[%s7491_s14 + $0x48] sm:$0xff] %v3970_v45  ;;  %5533 = vmatpush1.bf16.msra.mxu1 %v5532_v33  ;;  %v5548_v33 = vpack.c.bf16 %v2231_v26, %v2211_v25  ;;  %v5678_v41 = vpack.c.bf16 %v2274_v32, %v2254_v31  ;;  %v2292_v43 = vld [vmem:[%s6695_s20 + $0x2388] sm:$0xff]  ;;  %v2334_v60 = vld [vmem:[%s6695_s20 + $0x24d8] sm:$0xff] }
 0x6d0   : > { %3992 = vst [vmem:[%s7491_s14 + $0x58] sm:$0xff] %v3972_v49  ;;  %5661 = vmatpush1.bf16.msra.mxu0 %v5660_v36  ;;  %5535 = vmatprep.subr.bf16.mxu1 %v5534_v37  ;;  %v2251_v36 = vld [vmem:[%s6695_s20 + $0x2240] sm:$0xff]  ;;  %v2312_v45 = vld [vmem:[%s6695_s20 + $0x2428] sm:$0xff]  ;;  %v2374_v38 = vld [vmem:[%s6695_s20 + $0x2618] sm:$0xff] }
 0x6d1   : > { %5663 = vmatprep.subr.bf16.mxu0 %v5662_v46  ;;  %v2271_v37 = vld [vmem:[%s6695_s20 + $0x22e0] sm:$0xff]  ;;  %v2294_v46 = vld [vmem:[%s6695_s20 + $0x2398] sm:$0xff]  ;;  %v5554_v49 = vpack.c.bf16 %v2312_v45, %v2292_v43  ;;  %v2392_v13 = vld [vmem:[%s6695_s20 + $0x26a8] sm:$0xff]  ;;  %v2504_v43 = vrot.slane %v8027_v55, %v2471_v12  ;;  %v2508_v12 = vrot.slane %v2437_v17, %v6710_v18 }
 0x6d2   : > { %v5552_v48 = vpack.c.bf16 %v2271_v37, %v2251_v36  ;;  %v2351_v3 = vld [vmem:[%s6695_s20 + $0x2560] sm:$0xff]  ;;  %v5562_v19 = vpack.c.bf16 %v2392_v13, %v2372_v11  ;;  %v2412_v25 = vld [vmem:[%s6695_s20 + $0x2748] sm:$0xff]  ;;  %v2414_v27 = vld [vmem:[%s6695_s20 + $0x2758] sm:$0xff] }
 0x6d3   : > { %5537 = vmatpush1.bf16.msra.mxu1 %v5536_v52  ;;  %v2293_v52 = vld [vmem:[%s6695_s20 + $0x2390] sm:$0xff]  ;;  %v5560_v15 = vpack.c.bf16 %v2351_v3, %v2331_v2  ;;  %v2371_v21 = vld [vmem:[%s6695_s20 + $0x2600] sm:$0xff]  ;;  %v2432_v26 = vld [vmem:[%s6695_s20 + $0x27e8] sm:$0xff] }
 0x6d4   : > { %5665 = vmatpush1.bf16.msra.mxu0 %v5664_v54  ;;  %5539 = vmatprep.subr.bf16.mxu1 %v5538_v56  ;;  %v5682_v54 = vpack.c.bf16 %v2314_v47, %v2294_v46  ;;  %v2313_v56 = vld [vmem:[%s6695_s20 + $0x2430] sm:$0xff]  ;;  %v2391_v22 = vld [vmem:[%s6695_s20 + $0x26a0] sm:$0xff]  ;;  %v5566_v30 = vpack.c.bf16 %v2432_v26, %v2412_v25 }
 0x6d5   : > { %5667 = vmatprep.subr.bf16.mxu0 %v5666_v61  ;;  %v2354_v61 = vld [vmem:[%s6695_s20 + $0x2578] sm:$0xff]  ;;  %v5684_v0 = vpack.c.bf16 %v2313_v56, %v2293_v52  ;;  %v5564_v8 = vpack.c.bf16 %v2391_v22, %v2371_v21  ;;  %v2411_v31 = vld [vmem:[%s6695_s20 + $0x2740] sm:$0xff]  ;;  %v2512_v52 = vrot.slane %v2437_v17, %v6713_v20 }
 0x6d6   : > { %v2431_v32 = vld [vmem:[%s6695_s20 + $0x27e0] sm:$0xff] }
 0x6d7   : > { %5541 = vmatpush1.bf16.msra.mxu1 %v5540_v5  ;;  %v2333_v5 = vld [vmem:[%s6695_s20 + $0x24d0] sm:$0xff]  ;;  %v5568_v36 = vpack.c.bf16 %v2431_v32, %v2411_v31 }
 0x6d8   : > { %5669 = vmatpush1.bf16.msra.mxu0 %v5668_v6  ;;  %5543 = vmatprep.subr.bf16.mxu1 %v5542_v7  ;;  %v5686_v6 = vpack.c.bf16 %v2354_v61, %v2334_v60  ;;  %v2353_v7 = vld [vmem:[%s6695_s20 + $0x2570] sm:$0xff] }
 0x6d9   : > { %5671 = vmatprep.subr.bf16.mxu0 %v5670_v14  ;;  %v2394_v14 = vld [vmem:[%s6695_s20 + $0x26b8] sm:$0xff]  ;;  %v5688_v16 = vpack.c.bf16 %v2353_v7, %v2333_v5 }
 0x6db   : > { %5545 = vmatpush1.bf16.msra.mxu1 %v5544_v23  ;;  %v2373_v23 = vld [vmem:[%s6695_s20 + $0x2610] sm:$0xff] }
 0x6dc   : > { %5673 = vmatpush1.bf16.msra.mxu0 %v5672_v63  ;;  %5547 = vmatprep.subr.bf16.mxu1 %v5546_v24  ;;  %v5690_v63 = vpack.c.bf16 %v2394_v14, %v2374_v38  ;;  %v2393_v24 = vld [vmem:[%s6695_s20 + $0x26b0] sm:$0xff] }
 0x6dd   : > { %5675 = vmatprep.subr.bf16.mxu0 %v5674_v28  ;;  %v2434_v28 = vld [vmem:[%s6695_s20 + $0x27f8] sm:$0xff]  ;;  %v5692_v44 = vpack.c.bf16 %v2393_v24, %v2373_v23 }
 0x6df   : > { %5549 = vmatpush1.bf16.msra.mxu1 %v5548_v33  ;;  %v5694_v33 = vpack.c.bf16 %v2434_v28, %v2414_v27 }
 0x6e0   : > { %5677 = vmatpush1.bf16.msra.mxu0 %v5676_v34  ;;  %5551 = vmatprep.subr.bf16.mxu1 %v5550_v35  ;;  %v2413_v34 = vld [vmem:[%s6695_s20 + $0x2750] sm:$0xff] }
 0x6e1   : > { %5679 = vmatprep.subr.bf16.mxu0 %v5678_v41  ;;  %v2433_v35 = vld [vmem:[%s6695_s20 + $0x27f0] sm:$0xff]  ;;  %v2500_v41 = vrot.slane %v8027_v55, %v2467_v9  ;;  %v2516_v55 = vrot.slane %v2437_v17, %v6985_v53 }
 0x6e2   : > { %v5696_v37 = vpack.c.bf16 %v2433_v35, %v2413_v34 }
 0x6e3   : > { %5553 = vmatpush1.bf16.msra.mxu1 %v5552_v48 }
 0x6e4   : > { %5681 = vmatpush1.bf16.msra.mxu0 %v5680_v58  ;;  %5555 = vmatprep.subr.bf16.mxu1 %v5554_v49 }
 0x6e5   : > { %5683 = vmatprep.subr.bf16.mxu0 %v5682_v54  ;;  %v2520_v54 = vrot.slane %v2437_v17, %v6848_v39 }
 0x6e7   : > { %5557 = vmatpush1.bf16.msra.mxu1 %v5556_v62 }
 0x6e8   : > { %5685 = vmatpush1.bf16.msra.mxu0 %v5684_v0  ;;  %5559 = vmatprep.subr.bf16.mxu1 %v5558_v1 }
 0x6e9   : > { %5687 = vmatprep.subr.bf16.mxu0 %v5686_v6 }
 0x6eb   : > { %5561 = vmatpush1.bf16.msra.mxu1 %v5560_v15 }
 0x6ec   : > { %5689 = vmatpush1.bf16.msra.mxu0 %v5688_v16  ;;  %5563 = vmatprep.subr.bf16.mxu1 %v5562_v19 }
 0x6ed   : > { %5691 = vmatprep.subr.bf16.mxu0 %v5690_v63 }
 0x6ef   : > { %5565 = vmatpush1.bf16.msra.mxu1 %v5564_v8 }
 0x6f0   : > { %5693 = vmatpush1.bf16.msra.mxu0 %v5692_v44  ;;  %5567 = vmatprep.subr.bf16.mxu1 %v5566_v30 }
 0x6f1   : > { %5695 = vmatprep.subr.bf16.mxu0 %v5694_v33 }
 0x6f3   : > { %5569 = vmatpush1.bf16.msra.mxu1 %v5568_v36 }
 0x6f4   : > { %5697 = vmatpush1.bf16.msra.mxu0 %v5696_v37 }
 0x6f6   : > { %3813 = vmatmul.mubr.f32.vlgmr.msra.gmra.mrb[14].mxu1 %v7012_v29 }
 0x6f7   : > { %3955 = vmatmul.mubr.f32.vlgmr.msra.gmra.mrb[12].mxu0 %v7012_v29 }
 0x749   : > { %v3530_v29 = vpop.f32.mrb[12].mxu1 }
 0x74a   : > { %v5710_v45 = vadd.f32 %v3530_v29, %v2492_v40  ;;  %v3672_v46 = vpop.f32.mrb[10].mxu0  ;;  %v3532_v4 = vpop.f32.mrb[13].mxu1 }
 0x74b   : > { %v5712_v47 = vadd.f32 %v3672_v46, %v2500_v41  ;;  %v5711_v48 = vadd.f32 %v3532_v4, %v2496_v42  ;;  %v3674_v58 = vpop.f32.mrb[11].mxu0 }
 0x74c   : > { %v3973_v9 = vmax.f32 %v5710_v45, 0.0  ;;  %v5713_v49 = vadd.f32 %v3674_v58, %v2504_v43 }
 0x74d   : > { %v3975_v50 = vmax.f32 %v5712_v47, 0.0  ;;  %v3974_v51 = vmax.f32 %v5711_v48, 0.0 }
 0x74e   : > { %3993 = vst [vmem:[%s7491_s14 + $0x60] sm:$0xff] %v3973_v9  ;;  %v3976_v10 = vmax.f32 %v5713_v49, 0.0 }
 0x74f   : > { %3995 = vst [vmem:[%s7491_s14 + $0x70] sm:$0xff] %v3975_v50  ;;  %3994 = vst [vmem:[%s7491_s14 + $0x68] sm:$0xff] %v3974_v51 }
 0x750   : > { %3996 = vst [vmem:[%s7491_s14 + $0x78] sm:$0xff] %v3976_v10 }
 0x7c9   : > { %v3814_v56 = vpop.f32.mrb[14].mxu1 }
 0x7ca   : > { %v5714_v57 = vadd.f32 %v3814_v56, %v2508_v12  ;;  %v3956_v59 = vpop.f32.mrb[12].mxu0  ;;  %v3816_v60 = vpop.f32.mrb[15].mxu1 }
 0x7cb   : > { %v5716_v61 = vadd.f32 %v3956_v59, %v2516_v55  ;;  %v5715_v62 = vadd.f32 %v3816_v60, %v2512_v52  ;;  %v3958_v0 = vpop.f32.mrb[13].mxu0 }
 0x7cc   : > { %v3977_v1 = vmax.f32 %v5714_v57, 0.0  ;;  %v5717_v2 = vadd.f32 %v3958_v0, %v2520_v54 }
 0x7cd   : > { %v3979_v3 = vmax.f32 %v5716_v61, 0.0  ;;  %v3978_v18 = vmax.f32 %v5715_v62, 0.0 }
 0x7ce   : > { %3997 = vst [vmem:[%s7491_s14 + $0x80] sm:$0xff] %v3977_v1  ;;  %v3980_v53 = vmax.f32 %v5717_v2, 0.0 }
 0x7cf   : > { %3999 = vst [vmem:[%s7491_s14 + $0x90] sm:$0xff] %v3979_v3  ;;  %3998 = vst [vmem:[%s7491_s14 + $0x88] sm:$0xff] %v3978_v18 }
 0x7d0   : > { %4000 = vst [vmem:[%s7491_s14 + $0x98] sm:$0xff] %v3980_v53 }
 0x7d1 PF: > { %s8226_s20 = sld [smem:[#allocation25_spill]]  ;;  %s8227_s27 = sld [smem:[#allocation26_spill]] }
 0x7d2   : > { %s8228_s17 = smov %s6248_s18  ;;  %s8229_s18 = smov %s6252_s19 }
 0x7d7   : > { %p26_p10 = scmp.ge.s32.totalorder %s8226_s20, 6   ;;  %s8230_s19 = smov %s8227_s27 }
 0x7d9   :  { %28 = sbr.rel (!%p26_p10) target bundleno = 15 (0xf), region = 152 }
 0x7e0   :  { %4023 = vsyncpa [#allocation3], 1 }
 0x7e1   :  { %4025 = vsyncpa [#allocation3 + $0x1], 1 }
 0x7e2   :  { %4026 = vsyncpa [#allocation5], 1 }
 0x7e3   :  { %4027 = vsyncpa [#allocation8], 1 }
 0x7e4   :  { %4028 = vsyncpa [#allocation11], 1 }
 0x7e5   :  { %4029 = vsyncpa [#allocation14], 1 }
 0x7e6   :  { %4030 = vsyncpa [#allocation17], 1 }
 0x7e7   :  { %4032 = vsyncpa [#allocation17 + $0x1], 1 }

</bundles_post_ra>
